<compile_context>
chip_gen: v5e
topology: v5e:2x2
jax: 0.10.0
libtpu: 0.0.40
codegen_flags: <defaults>
</compile_context>

<pallas_src>
import functools

import jax
import jax.numpy as jnp
from jax.experimental import pallas as pl
from jax.experimental.pallas import tpu as pltpu


# ----------------------------------------------------------------------------
# Fused forward kernel (one batch tile per grid step)
# ----------------------------------------------------------------------------
def _vpn_kernel(xw_ref, w1_ref, b1_ref, w2_ref, b2_ref, wfc_ref, bfc_ref,
                wh_ref, bh_ref, out_ref, *, BT, C0, C1, C2, OH1, OW1, OH2,
                OW2):
    """Fused conv1 -> conv2 -> fc -> merged heads for one batch tile.

    xw_ref: (8, BT, R2, Q4, C0) phase-decomposed padded input,
            xw[pr*4 + mc, b, r, qc, c] = xpad[b, c, 2*r + pr, 4*qc + mc]
            (rows mod-2, cols mod-4: every stride-2 3x3 tap of conv1 becomes a
            static contiguous slice; no strided loads anywhere).
    """
    f32 = jnp.float32
    RX = OW1 // 2                       # conv1 output columns per parity class

    # ---------------- conv1: one im2col patch, ONE matmul --------------------
    # Patch rows are ordered (b, oy, ox % 2, ox // 2) so conv2 below can slice
    # the conv1 result contiguously; K columns are (i, j, cin), matching w1.
    row_blocks = []
    for b in range(BT):
        for oy in range(OH1):
            tiles = {}
            for i in range(3):
                for mc in range(4):
                    tiles[(i, mc)] = xw_ref[(i % 2) * 4 + mc, b,
                                            oy + i // 2, :, :]     # (Q4, C0)
            for pox in range(2):                      # output-column parity
                taps = []
                for i in range(3):
                    for j in range(3):
                        t = 2 * pox + j               # padded col = 4*rx + t
                        src = tiles[(i, t % 4)]
                        off = t // 4
                        taps.append(src[off:off + RX, :])          # (RX, C0)
                row_blocks.append(jnp.concatenate(taps, axis=1))   # (RX, 9*C0)
    patch1 = jnp.concatenate(row_blocks, axis=0)      # (BT*OH1*OW1, 9*C0)
    h1 = jnp.maximum(
        jnp.dot(patch1, w1_ref[...], preferred_element_type=f32)
        + b1_ref[...], 0.0)                           # rows = (b, oy, pox, rx)

    # ------------- conv2: im2col straight from the h1 value, ONE matmul ------
    zrow = jnp.zeros((1, C1), f32)
    blocks2 = []
    for b in range(BT):
        for dy in range(OH2):
            taps = []
            for i in range(3):
                oy = 2 * dy + i - 1
                for j in range(3):
                    if oy < 0:                        # top padding row
                        taps.append(jnp.zeros((OW2, C1), f32))
                        continue
                    pox = 0 if j == 1 else 1          # parity of ox = 2*dx+j-1
                    base = ((b * OH1 + oy) * 2 + pox) * RX
                    if j == 0:                        # rx = dx - 1 (left pad)
                        taps.append(jnp.concatenate(
                            [zrow, h1[base:base + OW2 - 1, :]], axis=0))
                    else:                             # rx = dx
                        taps.append(h1[base:base + OW2, :])
            blocks2.append(jnp.concatenate(taps, axis=1))          # (OW2, 9*C1)
    patch2 = jnp.concatenate(blocks2, axis=0)         # (BT*OH2*OW2, 9*C1)
    h2 = jnp.maximum(
        jnp.dot(patch2, w2_ref[...], preferred_element_type=f32)
        + b2_ref[...], 0.0)                           # rows = (b, dy, dx)

    # -------- fc: ONE (BT, S2*C2) x (S2*C2, hidden) matmul -------------------
    # Build the per-sample (dy, dx, c) flatten with lane concatenates instead
    # of an in-kernel reshape relayout.
    S2 = OH2 * OW2
    flat_rows = []
    for b in range(BT):
        cols = [h2[b * S2 + s:b * S2 + s + 1, :] for s in range(S2)]
        flat_rows.append(jnp.concatenate(cols, axis=1))            # (1, S2*C2)
    flat = jnp.concatenate(flat_rows, axis=0)                      # (BT, S2*C2)
    hfc = jnp.maximum(
        jnp.dot(flat, wfc_ref[...], preferred_element_type=f32)
        + bfc_ref[...], 0.0)

    # -------- merged policy/value heads: lane-dense (BT, 128) output ---------
    out = jnp.dot(hfc, wh_ref[...], preferred_element_type=f32) + bh_ref[...]
    out_ref[...] = out.astype(out_ref.dtype)


def _fused_forward(xw, params, *, B, BT, C0, C1, C2, OH1, OW1, OH2, OW2):
    head = params["wh"].shape[1]
    _, _, R2, Q4, _ = xw.shape

    def const_spec(a):
        rank = a.ndim
        return pl.BlockSpec(a.shape, lambda bt, _r=rank: (0,) * _r)

    weights = (params["w1"], params["b1"], params["w2"], params["b2"],
               params["wfc"], params["bfc"], params["wh"], params["bh"])
    kernel = functools.partial(_vpn_kernel, BT=BT, C0=C0, C1=C1, C2=C2,
                               OH1=OH1, OW1=OW1, OH2=OH2, OW2=OW2)
    return pl.pallas_call(
        kernel,
        out_shape=jax.ShapeDtypeStruct((B, head), jnp.float32),
        grid=(B // BT,),
        in_specs=[pl.BlockSpec((8, BT, R2, Q4, C0),
                               lambda bt: (0, bt, 0, 0, 0))]
                 + [const_spec(a) for a in weights],
        out_specs=pl.BlockSpec((BT, head), lambda bt: (bt, 0)),
        compiler_params=pltpu.CompilerParams(
            dimension_semantics=("parallel",)),
    )(xw, *weights)


# ----------------------------------------------------------------------------
# Parameters (pre-laid-out ONCE at init into matmul layout)
# ----------------------------------------------------------------------------
def init_params(obs_space, n_actions, hidden=32, head_width=128,
                key=jax.random.PRNGKey(42)):
    C, H, W = obs_space
    assert H % 4 == 0 and W % 4 == 0, "two stride-2 convs need H, W % 4 == 0"
    assert n_actions + 1 <= head_width
    C1, C2 = 8, 16
    UH, UW = H // 4, W // 4
    flat = UH * UW * C2
    k1, k2, k3, k4, k5 = jax.random.split(key, 5)

    def dense(k, fan_in, shape):
        return (jax.random.normal(k, shape, jnp.float32)
                / jnp.sqrt(jnp.float32(fan_in)))

    # Conv weights drawn in PyTorch (OC, IC, KH, KW) layout, converted once to
    # the (KH*KW*IC, OC) im2col matmul layout the kernel consumes.
    w1_pt = dense(k1, C * 9, (C1, C, 3, 3))
    w2_pt = dense(k2, C1 * 9, (C2, C1, 3, 3))
    w1 = jnp.transpose(w1_pt, (2, 3, 1, 0)).reshape(9 * C, C1)
    w2 = jnp.transpose(w2_pt, (2, 3, 1, 0)).reshape(9 * C1, C2)

    wfc = dense(k3, flat, (flat, hidden))
    pi_w = dense(k4, hidden, (hidden, n_actions))
    v_w = dense(k5, hidden, (hidden, 1))

    # Merged, lane-padded heads: cols [0:n_actions] = policy, [n_actions] =
    # value, remaining lanes (weights AND bias) stay exactly zero.
    wh = jnp.zeros((hidden, head_width), jnp.float32)
    wh = wh.at[:, :n_actions].set(pi_w)
    wh = wh.at[:, n_actions:n_actions + 1].set(v_w)
    bh = jnp.zeros((1, head_width), jnp.float32)

    return {
        "w1": w1, "b1": jnp.zeros((1, C1), jnp.float32),
        "w2": w2, "b2": jnp.zeros((1, C2), jnp.float32),
        "wfc": wfc, "bfc": jnp.zeros((1, hidden), jnp.float32),
        "wh": wh, "bh": bh,
    }


# ----------------------------------------------------------------------------
# Forward wrapper (PyTorch-style NCHW input)
# ----------------------------------------------------------------------------
def vpn_forward(params, x, *, n_actions):
    """x: (B, C, H, W) float32 NCHW.  Returns (policy_logits, value)."""
    B, C, H, W = x.shape
    assert H % 4 == 0 and W % 4 == 0 and H >= 8 and W >= 8
    C1 = params["w1"].shape[1]
    C2 = params["w2"].shape[1]
    OH1, OW1 = H // 2, W // 2
    OH2, OW2 = H // 4, W // 4
    BT = B if B <= 8 else 8            # batch-tile per grid step
    assert B % BT == 0

    # Tiny wrapper-side layout prep (pad -> reshape -> transpose -> reshape):
    # zero-pad to (H+2, W+4) and phase-decompose rows mod-2 / cols mod-4 so
    # every conv1 tap is a contiguous static slice inside the kernel.
    xpad = jnp.pad(x.astype(jnp.float32), ((0, 0), (0, 0), (1, 1), (1, 3)))
    R2, Q4 = (H + 2) // 2, (W + 4) // 4
    xw = (xpad.reshape(B, C, R2, 2, Q4, 4)
              .transpose(3, 5, 0, 2, 4, 1)            # (2, 4, B, R2, Q4, C)
              .reshape(8, B, R2, Q4, C))

    out = _fused_forward(xw, params, B=B, BT=BT, C0=C, C1=C1, C2=C2,
                         OH1=OH1, OW1=OW1, OH2=OH2, OW2=OW2)
    logits = out[:, :n_actions]
    value = out[:, n_actions:n_actions + 1]
    return logits, value


# ----------------------------------------------------------------------------
# Pure-XLA reference of the same network (for validation only)
# ----------------------------------------------------------------------------
def vpn_reference(params, x, *, n_actions):
    hi = jax.lax.Precision.HIGHEST

    def conv(h, w_mat, b):
        cin = h.shape[1]
        cout = w_mat.shape[1]
        w = w_mat.reshape(3, 3, cin, cout).transpose(3, 2, 0, 1)   # OIHW
        y = jax.lax.conv_general_dilated(
            h, w, window_strides=(2, 2), padding=((1, 1), (1, 1)),
            dimension_numbers=("NCHW", "OIHW", "NCHW"), precision=hi)
        return jax.nn.relu(y + b.reshape(1, cout, 1, 1))

    h = conv(x.astype(jnp.float32), params["w1"], params["b1"])
    h = conv(h, params["w2"], params["b2"])
    B = x.shape[0]
    hf = h.transpose(0, 2, 3, 1).reshape(B, -1)        # (dy, dx, c) flatten
    hfc = jax.nn.relu(jnp.dot(hf, params["wfc"], precision=hi)
                      + params["bfc"])
    out = jnp.dot(hfc, params["wh"], precision=hi) + params["bh"]
    return out[:, :n_actions], out[:, n_actions:n_actions + 1]


# ----------------------------------------------------------------------------
# Main
# ----------------------------------------------------------------------------
if __name__ == "__main__":
    obs_space = (4, 16, 16)            # (C, H, W)
    n_actions = 6
    batch = 2

    params = init_params(obs_space, n_actions)
    x = jax.random.normal(jax.random.PRNGKey(0), (batch,) + obs_space,
                          jnp.float32)

    fwd = jax.jit(functools.partial(vpn_forward, n_actions=n_actions))
    logits, value = fwd(params, x)
    jax.block_until_ready((logits, value))

    assert logits.shape == (batch, n_actions), logits.shape
    assert value.shape == (batch, 1), value.shape
    assert bool(jnp.all(jnp.isfinite(logits)))
    assert bool(jnp.all(jnp.isfinite(value)))

    # Numerical check of the fused kernel against a pure-XLA reference.
    ref_logits, ref_value = jax.jit(
        functools.partial(vpn_reference, n_actions=n_actions))(params, x)
    assert bool(jnp.allclose(logits, ref_logits, atol=1e-3, rtol=1e-3)), (
        float(jnp.max(jnp.abs(logits - ref_logits))))
    assert bool(jnp.allclose(value, ref_value, atol=1e-3, rtol=1e-3)), (
        float(jnp.max(jnp.abs(value - ref_value))))

    print("KERNEL_OK")
</pallas_src>

<mosaic_0001>
module attributes {stable_mosaic.version = 11 : i64} {
  func.func @_vpn_kernel(%arg0: i32, %arg1: memref<8x2x9x5x4xf32, #tpu.memory_space<vmem>>, %arg2: memref<36x8xf32, #tpu.memory_space<vmem>>, %arg3: memref<1x8xf32, #tpu.memory_space<vmem>>, %arg4: memref<72x16xf32, #tpu.memory_space<vmem>>, %arg5: memref<1x16xf32, #tpu.memory_space<vmem>>, %arg6: memref<256x32xf32, #tpu.memory_space<vmem>>, %arg7: memref<1x32xf32, #tpu.memory_space<vmem>>, %arg8: memref<32x128xf32, #tpu.memory_space<vmem>>, %arg9: memref<1x128xf32, #tpu.memory_space<vmem>>, %arg10: memref<2x128xf32, #tpu.memory_space<vmem>>) attributes {dimension_semantics = [#tpu.dimension_semantics<parallel>], iteration_bounds = array<i64: 1>, scalar_prefetch = 0 : i64, scratch_operands = 0 : i64, tpu.core_type = #tpu.core_type<tc>, window_params = [{transform_indices = @transform_0, window_bounds = array<i64: 8, 2, 9, 5, 4>}, {pipeline_mode = #tpu.pipeline_mode<synchronous>, transform_indices = @transform_1, window_bounds = array<i64: 36, 8>}, {pipeline_mode = #tpu.pipeline_mode<synchronous>, transform_indices = @transform_2, window_bounds = array<i64: 1, 8>}, {pipeline_mode = #tpu.pipeline_mode<synchronous>, transform_indices = @transform_3, window_bounds = array<i64: 72, 16>}, {pipeline_mode = #tpu.pipeline_mode<synchronous>, transform_indices = @transform_4, window_bounds = array<i64: 1, 16>}, {pipeline_mode = #tpu.pipeline_mode<synchronous>, transform_indices = @transform_5, window_bounds = array<i64: 256, 32>}, {pipeline_mode = #tpu.pipeline_mode<synchronous>, transform_indices = @transform_6, window_bounds = array<i64: 1, 32>}, {pipeline_mode = #tpu.pipeline_mode<synchronous>, transform_indices = @transform_7, window_bounds = array<i64: 32, 128>}, {pipeline_mode = #tpu.pipeline_mode<synchronous>, transform_indices = @transform_8, window_bounds = array<i64: 1, 128>}, {transform_indices = @transform_9, window_bounds = array<i64: 2, 128>}]} {
    %c0 = arith.constant 0 : index
    %c0_0 = arith.constant 0 : index
    %c0_1 = arith.constant 0 : index
    %c0_2 = arith.constant 0 : index
    %c0_3 = arith.constant 0 : index
    %0 = vector.load %arg1[%c0, %c0_0, %c0_1, %c0_2, %c0_3] : memref<8x2x9x5x4xf32, #tpu.memory_space<vmem>>, vector<1x1x1x5x4xf32>
    %1 = vector.shape_cast %0 : vector<1x1x1x5x4xf32> to vector<5x4xf32>
    %c1 = arith.constant 1 : index
    %c0_4 = arith.constant 0 : index
    %c0_5 = arith.constant 0 : index
    %c0_6 = arith.constant 0 : index
    %c0_7 = arith.constant 0 : index
    %2 = vector.load %arg1[%c1, %c0_4, %c0_5, %c0_6, %c0_7] : memref<8x2x9x5x4xf32, #tpu.memory_space<vmem>>, vector<1x1x1x5x4xf32>
    %3 = vector.shape_cast %2 : vector<1x1x1x5x4xf32> to vector<5x4xf32>
    %c2 = arith.constant 2 : index
    %c0_8 = arith.constant 0 : index
    %c0_9 = arith.constant 0 : index
    %c0_10 = arith.constant 0 : index
    %c0_11 = arith.constant 0 : index
    %4 = vector.load %arg1[%c2, %c0_8, %c0_9, %c0_10, %c0_11] : memref<8x2x9x5x4xf32, #tpu.memory_space<vmem>>, vector<1x1x1x5x4xf32>
    %5 = vector.shape_cast %4 : vector<1x1x1x5x4xf32> to vector<5x4xf32>
    %c3 = arith.constant 3 : index
    %c0_12 = arith.constant 0 : index
    %c0_13 = arith.constant 0 : index
    %c0_14 = arith.constant 0 : index
    %c0_15 = arith.constant 0 : index
    %6 = vector.load %arg1[%c3, %c0_12, %c0_13, %c0_14, %c0_15] : memref<8x2x9x5x4xf32, #tpu.memory_space<vmem>>, vector<1x1x1x5x4xf32>
    %7 = vector.shape_cast %6 : vector<1x1x1x5x4xf32> to vector<5x4xf32>
    %c4 = arith.constant 4 : index
    %c0_16 = arith.constant 0 : index
    %c0_17 = arith.constant 0 : index
    %c0_18 = arith.constant 0 : index
    %c0_19 = arith.constant 0 : index
    %8 = vector.load %arg1[%c4, %c0_16, %c0_17, %c0_18, %c0_19] : memref<8x2x9x5x4xf32, #tpu.memory_space<vmem>>, vector<1x1x1x5x4xf32>
    %9 = vector.shape_cast %8 : vector<1x1x1x5x4xf32> to vector<5x4xf32>
    %c5 = arith.constant 5 : index
    %c0_20 = arith.constant 0 : index
    %c0_21 = arith.constant 0 : index
    %c0_22 = arith.constant 0 : index
    %c0_23 = arith.constant 0 : index
    %10 = vector.load %arg1[%c5, %c0_20, %c0_21, %c0_22, %c0_23] : memref<8x2x9x5x4xf32, #tpu.memory_space<vmem>>, vector<1x1x1x5x4xf32>
    %11 = vector.shape_cast %10 : vector<1x1x1x5x4xf32> to vector<5x4xf32>
    %c6 = arith.constant 6 : index
    %c0_24 = arith.constant 0 : index
    %c0_25 = arith.constant 0 : index
    %c0_26 = arith.constant 0 : index
    %c0_27 = arith.constant 0 : index
    %12 = vector.load %arg1[%c6, %c0_24, %c0_25, %c0_26, %c0_27] : memref<8x2x9x5x4xf32, #tpu.memory_space<vmem>>, vector<1x1x1x5x4xf32>
    %13 = vector.shape_cast %12 : vector<1x1x1x5x4xf32> to vector<5x4xf32>
    %c7 = arith.constant 7 : index
    %c0_28 = arith.constant 0 : index
    %c0_29 = arith.constant 0 : index
    %c0_30 = arith.constant 0 : index
    %c0_31 = arith.constant 0 : index
    %14 = vector.load %arg1[%c7, %c0_28, %c0_29, %c0_30, %c0_31] : memref<8x2x9x5x4xf32, #tpu.memory_space<vmem>>, vector<1x1x1x5x4xf32>
    %15 = vector.shape_cast %14 : vector<1x1x1x5x4xf32> to vector<5x4xf32>
    %c0_32 = arith.constant 0 : index
    %c0_33 = arith.constant 0 : index
    %c1_34 = arith.constant 1 : index
    %c0_35 = arith.constant 0 : index
    %c0_36 = arith.constant 0 : index
    %16 = vector.load %arg1[%c0_32, %c0_33, %c1_34, %c0_35, %c0_36] : memref<8x2x9x5x4xf32, #tpu.memory_space<vmem>>, vector<1x1x1x5x4xf32>
    %17 = vector.shape_cast %16 : vector<1x1x1x5x4xf32> to vector<5x4xf32>
    %c1_37 = arith.constant 1 : index
    %c0_38 = arith.constant 0 : index
    %c1_39 = arith.constant 1 : index
    %c0_40 = arith.constant 0 : index
    %c0_41 = arith.constant 0 : index
    %18 = vector.load %arg1[%c1_37, %c0_38, %c1_39, %c0_40, %c0_41] : memref<8x2x9x5x4xf32, #tpu.memory_space<vmem>>, vector<1x1x1x5x4xf32>
    %19 = vector.shape_cast %18 : vector<1x1x1x5x4xf32> to vector<5x4xf32>
    %c2_42 = arith.constant 2 : index
    %c0_43 = arith.constant 0 : index
    %c1_44 = arith.constant 1 : index
    %c0_45 = arith.constant 0 : index
    %c0_46 = arith.constant 0 : index
    %20 = vector.load %arg1[%c2_42, %c0_43, %c1_44, %c0_45, %c0_46] : memref<8x2x9x5x4xf32, #tpu.memory_space<vmem>>, vector<1x1x1x5x4xf32>
    %21 = vector.shape_cast %20 : vector<1x1x1x5x4xf32> to vector<5x4xf32>
    %c3_47 = arith.constant 3 : index
    %c0_48 = arith.constant 0 : index
    %c1_49 = arith.constant 1 : index
    %c0_50 = arith.constant 0 : index
    %c0_51 = arith.constant 0 : index
    %22 = vector.load %arg1[%c3_47, %c0_48, %c1_49, %c0_50, %c0_51] : memref<8x2x9x5x4xf32, #tpu.memory_space<vmem>>, vector<1x1x1x5x4xf32>
    %23 = vector.shape_cast %22 : vector<1x1x1x5x4xf32> to vector<5x4xf32>
    %24 = vector.extract_strided_slice %1 {offsets = [0, 0], sizes = [4, 4], strides = [1, 1]} : vector<5x4xf32> to vector<4x4xf32>
    %25 = vector.extract_strided_slice %3 {offsets = [0, 0], sizes = [4, 4], strides = [1, 1]} : vector<5x4xf32> to vector<4x4xf32>
    %26 = vector.extract_strided_slice %5 {offsets = [0, 0], sizes = [4, 4], strides = [1, 1]} : vector<5x4xf32> to vector<4x4xf32>
    %27 = vector.extract_strided_slice %9 {offsets = [0, 0], sizes = [4, 4], strides = [1, 1]} : vector<5x4xf32> to vector<4x4xf32>
    %28 = vector.extract_strided_slice %11 {offsets = [0, 0], sizes = [4, 4], strides = [1, 1]} : vector<5x4xf32> to vector<4x4xf32>
    %29 = vector.extract_strided_slice %13 {offsets = [0, 0], sizes = [4, 4], strides = [1, 1]} : vector<5x4xf32> to vector<4x4xf32>
    %30 = vector.extract_strided_slice %17 {offsets = [0, 0], sizes = [4, 4], strides = [1, 1]} : vector<5x4xf32> to vector<4x4xf32>
    %31 = vector.extract_strided_slice %19 {offsets = [0, 0], sizes = [4, 4], strides = [1, 1]} : vector<5x4xf32> to vector<4x4xf32>
    %32 = vector.extract_strided_slice %21 {offsets = [0, 0], sizes = [4, 4], strides = [1, 1]} : vector<5x4xf32> to vector<4x4xf32>
    %33 = tpu.concatenate %24, %25, %26, %27, %28, %29, %30, %31, %32 in 1 : vector<4x4xf32>, vector<4x4xf32>, vector<4x4xf32>, vector<4x4xf32>, vector<4x4xf32>, vector<4x4xf32>, vector<4x4xf32>, vector<4x4xf32>, vector<4x4xf32> -> vector<4x36xf32>
    %34 = vector.extract_strided_slice %5 {offsets = [0, 0], sizes = [4, 4], strides = [1, 1]} : vector<5x4xf32> to vector<4x4xf32>
    %35 = vector.extract_strided_slice %7 {offsets = [0, 0], sizes = [4, 4], strides = [1, 1]} : vector<5x4xf32> to vector<4x4xf32>
    %36 = vector.extract_strided_slice %1 {offsets = [1, 0], sizes = [4, 4], strides = [1, 1]} : vector<5x4xf32> to vector<4x4xf32>
    %37 = vector.extract_strided_slice %13 {offsets = [0, 0], sizes = [4, 4], strides = [1, 1]} : vector<5x4xf32> to vector<4x4xf32>
    %38 = vector.extract_strided_slice %15 {offsets = [0, 0], sizes = [4, 4], strides = [1, 1]} : vector<5x4xf32> to vector<4x4xf32>
    %39 = vector.extract_strided_slice %9 {offsets = [1, 0], sizes = [4, 4], strides = [1, 1]} : vector<5x4xf32> to vector<4x4xf32>
    %40 = vector.extract_strided_slice %21 {offsets = [0, 0], sizes = [4, 4], strides = [1, 1]} : vector<5x4xf32> to vector<4x4xf32>
    %41 = vector.extract_strided_slice %23 {offsets = [0, 0], sizes = [4, 4], strides = [1, 1]} : vector<5x4xf32> to vector<4x4xf32>
    %42 = vector.extract_strided_slice %17 {offsets = [1, 0], sizes = [4, 4], strides = [1, 1]} : vector<5x4xf32> to vector<4x4xf32>
    %43 = tpu.concatenate %34, %35, %36, %37, %38, %39, %40, %41, %42 in 1 : vector<4x4xf32>, vector<4x4xf32>, vector<4x4xf32>, vector<4x4xf32>, vector<4x4xf32>, vector<4x4xf32>, vector<4x4xf32>, vector<4x4xf32>, vector<4x4xf32> -> vector<4x36xf32>
    %c0_52 = arith.constant 0 : index
    %c0_53 = arith.constant 0 : index
    %c1_54 = arith.constant 1 : index
    %c0_55 = arith.constant 0 : index
    %c0_56 = arith.constant 0 : index
    %44 = vector.load %arg1[%c0_52, %c0_53, %c1_54, %c0_55, %c0_56] : memref<8x2x9x5x4xf32, #tpu.memory_space<vmem>>, vector<1x1x1x5x4xf32>
    %45 = vector.shape_cast %44 : vector<1x1x1x5x4xf32> to vector<5x4xf32>
    %c1_57 = arith.constant 1 : index
    %c0_58 = arith.constant 0 : index
    %c1_59 = arith.constant 1 : index
    %c0_60 = arith.constant 0 : index
    %c0_61 = arith.constant 0 : index
    %46 = vector.load %arg1[%c1_57, %c0_58, %c1_59, %c0_60, %c0_61] : memref<8x2x9x5x4xf32, #tpu.memory_space<vmem>>, vector<1x1x1x5x4xf32>
    %47 = vector.shape_cast %46 : vector<1x1x1x5x4xf32> to vector<5x4xf32>
    %c2_62 = arith.constant 2 : index
    %c0_63 = arith.constant 0 : index
    %c1_64 = arith.constant 1 : index
    %c0_65 = arith.constant 0 : index
    %c0_66 = arith.constant 0 : index
    %48 = vector.load %arg1[%c2_62, %c0_63, %c1_64, %c0_65, %c0_66] : memref<8x2x9x5x4xf32, #tpu.memory_space<vmem>>, vector<1x1x1x5x4xf32>
    %49 = vector.shape_cast %48 : vector<1x1x1x5x4xf32> to vector<5x4xf32>
    %c3_67 = arith.constant 3 : index
    %c0_68 = arith.constant 0 : index
    %c1_69 = arith.constant 1 : index
    %c0_70 = arith.constant 0 : index
    %c0_71 = arith.constant 0 : index
    %50 = vector.load %arg1[%c3_67, %c0_68, %c1_69, %c0_70, %c0_71] : memref<8x2x9x5x4xf32, #tpu.memory_space<vmem>>, vector<1x1x1x5x4xf32>
    %51 = vector.shape_cast %50 : vector<1x1x1x5x4xf32> to vector<5x4xf32>
    %c4_72 = arith.constant 4 : index
    %c0_73 = arith.constant 0 : index
    %c1_74 = arith.constant 1 : index
    %c0_75 = arith.constant 0 : index
    %c0_76 = arith.constant 0 : index
    %52 = vector.load %arg1[%c4_72, %c0_73, %c1_74, %c0_75, %c0_76] : memref<8x2x9x5x4xf32, #tpu.memory_space<vmem>>, vector<1x1x1x5x4xf32>
    %53 = vector.shape_cast %52 : vector<1x1x1x5x4xf32> to vector<5x4xf32>
    %c5_77 = arith.constant 5 : index
    %c0_78 = arith.constant 0 : index
    %c1_79 = arith.constant 1 : index
    %c0_80 = arith.constant 0 : index
    %c0_81 = arith.constant 0 : index
    %54 = vector.load %arg1[%c5_77, %c0_78, %c1_79, %c0_80, %c0_81] : memref<8x2x9x5x4xf32, #tpu.memory_space<vmem>>, vector<1x1x1x5x4xf32>
    %55 = vector.shape_cast %54 : vector<1x1x1x5x4xf32> to vector<5x4xf32>
    %c6_82 = arith.constant 6 : index
    %c0_83 = arith.constant 0 : index
    %c1_84 = arith.constant 1 : index
    %c0_85 = arith.constant 0 : index
    %c0_86 = arith.constant 0 : index
    %56 = vector.load %arg1[%c6_82, %c0_83, %c1_84, %c0_85, %c0_86] : memref<8x2x9x5x4xf32, #tpu.memory_space<vmem>>, vector<1x1x1x5x4xf32>
    %57 = vector.shape_cast %56 : vector<1x1x1x5x4xf32> to vector<5x4xf32>
    %c7_87 = arith.constant 7 : index
    %c0_88 = arith.constant 0 : index
    %c1_89 = arith.constant 1 : index
    %c0_90 = arith.constant 0 : index
    %c0_91 = arith.constant 0 : index
    %58 = vector.load %arg1[%c7_87, %c0_88, %c1_89, %c0_90, %c0_91] : memref<8x2x9x5x4xf32, #tpu.memory_space<vmem>>, vector<1x1x1x5x4xf32>
    %59 = vector.shape_cast %58 : vector<1x1x1x5x4xf32> to vector<5x4xf32>
    %c0_92 = arith.constant 0 : index
    %c0_93 = arith.constant 0 : index
    %c2_94 = arith.constant 2 : index
    %c0_95 = arith.constant 0 : index
    %c0_96 = arith.constant 0 : index
    %60 = vector.load %arg1[%c0_92, %c0_93, %c2_94, %c0_95, %c0_96] : memref<8x2x9x5x4xf32, #tpu.memory_space<vmem>>, vector<1x1x1x5x4xf32>
    %61 = vector.shape_cast %60 : vector<1x1x1x5x4xf32> to vector<5x4xf32>
    %c1_97 = arith.constant 1 : index
    %c0_98 = arith.constant 0 : index
    %c2_99 = arith.constant 2 : index
    %c0_100 = arith.constant 0 : index
    %c0_101 = arith.constant 0 : index
    %62 = vector.load %arg1[%c1_97, %c0_98, %c2_99, %c0_100, %c0_101] : memref<8x2x9x5x4xf32, #tpu.memory_space<vmem>>, vector<1x1x1x5x4xf32>
    %63 = vector.shape_cast %62 : vector<1x1x1x5x4xf32> to vector<5x4xf32>
    %c2_102 = arith.constant 2 : index
    %c0_103 = arith.constant 0 : index
    %c2_104 = arith.constant 2 : index
    %c0_105 = arith.constant 0 : index
    %c0_106 = arith.constant 0 : index
    %64 = vector.load %arg1[%c2_102, %c0_103, %c2_104, %c0_105, %c0_106] : memref<8x2x9x5x4xf32, #tpu.memory_space<vmem>>, vector<1x1x1x5x4xf32>
    %65 = vector.shape_cast %64 : vector<1x1x1x5x4xf32> to vector<5x4xf32>
    %c3_107 = arith.constant 3 : index
    %c0_108 = arith.constant 0 : index
    %c2_109 = arith.constant 2 : index
    %c0_110 = arith.constant 0 : index
    %c0_111 = arith.constant 0 : index
    %66 = vector.load %arg1[%c3_107, %c0_108, %c2_109, %c0_110, %c0_111] : memref<8x2x9x5x4xf32, #tpu.memory_space<vmem>>, vector<1x1x1x5x4xf32>
    %67 = vector.shape_cast %66 : vector<1x1x1x5x4xf32> to vector<5x4xf32>
    %68 = vector.extract_strided_slice %45 {offsets = [0, 0], sizes = [4, 4], strides = [1, 1]} : vector<5x4xf32> to vector<4x4xf32>
    %69 = vector.extract_strided_slice %47 {offsets = [0, 0], sizes = [4, 4], strides = [1, 1]} : vector<5x4xf32> to vector<4x4xf32>
    %70 = vector.extract_strided_slice %49 {offsets = [0, 0], sizes = [4, 4], strides = [1, 1]} : vector<5x4xf32> to vector<4x4xf32>
    %71 = vector.extract_strided_slice %53 {offsets = [0, 0], sizes = [4, 4], strides = [1, 1]} : vector<5x4xf32> to vector<4x4xf32>
    %72 = vector.extract_strided_slice %55 {offsets = [0, 0], sizes = [4, 4], strides = [1, 1]} : vector<5x4xf32> to vector<4x4xf32>
    %73 = vector.extract_strided_slice %57 {offsets = [0, 0], sizes = [4, 4], strides = [1, 1]} : vector<5x4xf32> to vector<4x4xf32>
    %74 = vector.extract_strided_slice %61 {offsets = [0, 0], sizes = [4, 4], strides = [1, 1]} : vector<5x4xf32> to vector<4x4xf32>
    %75 = vector.extract_strided_slice %63 {offsets = [0, 0], sizes = [4, 4], strides = [1, 1]} : vector<5x4xf32> to vector<4x4xf32>
    %76 = vector.extract_strided_slice %65 {offsets = [0, 0], sizes = [4, 4], strides = [1, 1]} : vector<5x4xf32> to vector<4x4xf32>
    %77 = tpu.concatenate %68, %69, %70, %71, %72, %73, %74, %75, %76 in 1 : vector<4x4xf32>, vector<4x4xf32>, vector<4x4xf32>, vector<4x4xf32>, vector<4x4xf32>, vector<4x4xf32>, vector<4x4xf32>, vector<4x4xf32>, vector<4x4xf32> -> vector<4x36xf32>
    %78 = vector.extract_strided_slice %49 {offsets = [0, 0], sizes = [4, 4], strides = [1, 1]} : vector<5x4xf32> to vector<4x4xf32>
    %79 = vector.extract_strided_slice %51 {offsets = [0, 0], sizes = [4, 4], strides = [1, 1]} : vector<5x4xf32> to vector<4x4xf32>
    %80 = vector.extract_strided_slice %45 {offsets = [1, 0], sizes = [4, 4], strides = [1, 1]} : vector<5x4xf32> to vector<4x4xf32>
    %81 = vector.extract_strided_slice %57 {offsets = [0, 0], sizes = [4, 4], strides = [1, 1]} : vector<5x4xf32> to vector<4x4xf32>
    %82 = vector.extract_strided_slice %59 {offsets = [0, 0], sizes = [4, 4], strides = [1, 1]} : vector<5x4xf32> to vector<4x4xf32>
    %83 = vector.extract_strided_slice %53 {offsets = [1, 0], sizes = [4, 4], strides = [1, 1]} : vector<5x4xf32> to vector<4x4xf32>
    %84 = vector.extract_strided_slice %65 {offsets = [0, 0], sizes = [4, 4], strides = [1, 1]} : vector<5x4xf32> to vector<4x4xf32>
    %85 = vector.extract_strided_slice %67 {offsets = [0, 0], sizes = [4, 4], strides = [1, 1]} : vector<5x4xf32> to vector<4x4xf32>
    %86 = vector.extract_strided_slice %61 {offsets = [1, 0], sizes = [4, 4], strides = [1, 1]} : vector<5x4xf32> to vector<4x4xf32>
    %87 = tpu.concatenate %78, %79, %80, %81, %82, %83, %84, %85, %86 in 1 : vector<4x4xf32>, vector<4x4xf32>, vector<4x4xf32>, vector<4x4xf32>, vector<4x4xf32>, vector<4x4xf32>, vector<4x4xf32>, vector<4x4xf32>, vector<4x4xf32> -> vector<4x36xf32>
    %c0_112 = arith.constant 0 : index
    %c0_113 = arith.constant 0 : index
    %c2_114 = arith.constant 2 : index
    %c0_115 = arith.constant 0 : index
    %c0_116 = arith.constant 0 : index
    %88 = vector.load %arg1[%c0_112, %c0_113, %c2_114, %c0_115, %c0_116] : memref<8x2x9x5x4xf32, #tpu.memory_space<vmem>>, vector<1x1x1x5x4xf32>
    %89 = vector.shape_cast %88 : vector<1x1x1x5x4xf32> to vector<5x4xf32>
    %c1_117 = arith.constant 1 : index
    %c0_118 = arith.constant 0 : index
    %c2_119 = arith.constant 2 : index
    %c0_120 = arith.constant 0 : index
    %c0_121 = arith.constant 0 : index
    %90 = vector.load %arg1[%c1_117, %c0_118, %c2_119, %c0_120, %c0_121] : memref<8x2x9x5x4xf32, #tpu.memory_space<vmem>>, vector<1x1x1x5x4xf32>
    %91 = vector.shape_cast %90 : vector<1x1x1x5x4xf32> to vector<5x4xf32>
    %c2_122 = arith.constant 2 : index
    %c0_123 = arith.constant 0 : index
    %c2_124 = arith.constant 2 : index
    %c0_125 = arith.constant 0 : index
    %c0_126 = arith.constant 0 : index
    %92 = vector.load %arg1[%c2_122, %c0_123, %c2_124, %c0_125, %c0_126] : memref<8x2x9x5x4xf32, #tpu.memory_space<vmem>>, vector<1x1x1x5x4xf32>
    %93 = vector.shape_cast %92 : vector<1x1x1x5x4xf32> to vector<5x4xf32>
    %c3_127 = arith.constant 3 : index
    %c0_128 = arith.constant 0 : index
    %c2_129 = arith.constant 2 : index
    %c0_130 = arith.constant 0 : index
    %c0_131 = arith.constant 0 : index
    %94 = vector.load %arg1[%c3_127, %c0_128, %c2_129, %c0_130, %c0_131] : memref<8x2x9x5x4xf32, #tpu.memory_space<vmem>>, vector<1x1x1x5x4xf32>
    %95 = vector.shape_cast %94 : vector<1x1x1x5x4xf32> to vector<5x4xf32>
    %c4_132 = arith.constant 4 : index
    %c0_133 = arith.constant 0 : index
    %c2_134 = arith.constant 2 : index
    %c0_135 = arith.constant 0 : index
    %c0_136 = arith.constant 0 : index
    %96 = vector.load %arg1[%c4_132, %c0_133, %c2_134, %c0_135, %c0_136] : memref<8x2x9x5x4xf32, #tpu.memory_space<vmem>>, vector<1x1x1x5x4xf32>
    %97 = vector.shape_cast %96 : vector<1x1x1x5x4xf32> to vector<5x4xf32>
    %c5_137 = arith.constant 5 : index
    %c0_138 = arith.constant 0 : index
    %c2_139 = arith.constant 2 : index
    %c0_140 = arith.constant 0 : index
    %c0_141 = arith.constant 0 : index
    %98 = vector.load %arg1[%c5_137, %c0_138, %c2_139, %c0_140, %c0_141] : memref<8x2x9x5x4xf32, #tpu.memory_space<vmem>>, vector<1x1x1x5x4xf32>
    %99 = vector.shape_cast %98 : vector<1x1x1x5x4xf32> to vector<5x4xf32>
    %c6_142 = arith.constant 6 : index
    %c0_143 = arith.constant 0 : index
    %c2_144 = arith.constant 2 : index
    %c0_145 = arith.constant 0 : index
    %c0_146 = arith.constant 0 : index
    %100 = vector.load %arg1[%c6_142, %c0_143, %c2_144, %c0_145, %c0_146] : memref<8x2x9x5x4xf32, #tpu.memory_space<vmem>>, vector<1x1x1x5x4xf32>
    %101 = vector.shape_cast %100 : vector<1x1x1x5x4xf32> to vector<5x4xf32>
    %c7_147 = arith.constant 7 : index
    %c0_148 = arith.constant 0 : index
    %c2_149 = arith.constant 2 : index
    %c0_150 = arith.constant 0 : index
    %c0_151 = arith.constant 0 : index
    %102 = vector.load %arg1[%c7_147, %c0_148, %c2_149, %c0_150, %c0_151] : memref<8x2x9x5x4xf32, #tpu.memory_space<vmem>>, vector<1x1x1x5x4xf32>
    %103 = vector.shape_cast %102 : vector<1x1x1x5x4xf32> to vector<5x4xf32>
    %c0_152 = arith.constant 0 : index
    %c0_153 = arith.constant 0 : index
    %c3_154 = arith.constant 3 : index
    %c0_155 = arith.constant 0 : index
    %c0_156 = arith.constant 0 : index
    %104 = vector.load %arg1[%c0_152, %c0_153, %c3_154, %c0_155, %c0_156] : memref<8x2x9x5x4xf32, #tpu.memory_space<vmem>>, vector<1x1x1x5x4xf32>
    %105 = vector.shape_cast %104 : vector<1x1x1x5x4xf32> to vector<5x4xf32>
    %c1_157 = arith.constant 1 : index
    %c0_158 = arith.constant 0 : index
    %c3_159 = arith.constant 3 : index
    %c0_160 = arith.constant 0 : index
    %c0_161 = arith.constant 0 : index
    %106 = vector.load %arg1[%c1_157, %c0_158, %c3_159, %c0_160, %c0_161] : memref<8x2x9x5x4xf32, #tpu.memory_space<vmem>>, vector<1x1x1x5x4xf32>
    %107 = vector.shape_cast %106 : vector<1x1x1x5x4xf32> to vector<5x4xf32>
    %c2_162 = arith.constant 2 : index
    %c0_163 = arith.constant 0 : index
    %c3_164 = arith.constant 3 : index
    %c0_165 = arith.constant 0 : index
    %c0_166 = arith.constant 0 : index
    %108 = vector.load %arg1[%c2_162, %c0_163, %c3_164, %c0_165, %c0_166] : memref<8x2x9x5x4xf32, #tpu.memory_space<vmem>>, vector<1x1x1x5x4xf32>
    %109 = vector.shape_cast %108 : vector<1x1x1x5x4xf32> to vector<5x4xf32>
    %c3_167 = arith.constant 3 : index
    %c0_168 = arith.constant 0 : index
    %c3_169 = arith.constant 3 : index
    %c0_170 = arith.constant 0 : index
    %c0_171 = arith.constant 0 : index
    %110 = vector.load %arg1[%c3_167, %c0_168, %c3_169, %c0_170, %c0_171] : memref<8x2x9x5x4xf32, #tpu.memory_space<vmem>>, vector<1x1x1x5x4xf32>
    %111 = vector.shape_cast %110 : vector<1x1x1x5x4xf32> to vector<5x4xf32>
    %112 = vector.extract_strided_slice %89 {offsets = [0, 0], sizes = [4, 4], strides = [1, 1]} : vector<5x4xf32> to vector<4x4xf32>
    %113 = vector.extract_strided_slice %91 {offsets = [0, 0], sizes = [4, 4], strides = [1, 1]} : vector<5x4xf32> to vector<4x4xf32>
    %114 = vector.extract_strided_slice %93 {offsets = [0, 0], sizes = [4, 4], strides = [1, 1]} : vector<5x4xf32> to vector<4x4xf32>
    %115 = vector.extract_strided_slice %97 {offsets = [0, 0], sizes = [4, 4], strides = [1, 1]} : vector<5x4xf32> to vector<4x4xf32>
    %116 = vector.extract_strided_slice %99 {offsets = [0, 0], sizes = [4, 4], strides = [1, 1]} : vector<5x4xf32> to vector<4x4xf32>
    %117 = vector.extract_strided_slice %101 {offsets = [0, 0], sizes = [4, 4], strides = [1, 1]} : vector<5x4xf32> to vector<4x4xf32>
    %118 = vector.extract_strided_slice %105 {offsets = [0, 0], sizes = [4, 4], strides = [1, 1]} : vector<5x4xf32> to vector<4x4xf32>
    %119 = vector.extract_strided_slice %107 {offsets = [0, 0], sizes = [4, 4], strides = [1, 1]} : vector<5x4xf32> to vector<4x4xf32>
    %120 = vector.extract_strided_slice %109 {offsets = [0, 0], sizes = [4, 4], strides = [1, 1]} : vector<5x4xf32> to vector<4x4xf32>
    %121 = tpu.concatenate %112, %113, %114, %115, %116, %117, %118, %119, %120 in 1 : vector<4x4xf32>, vector<4x4xf32>, vector<4x4xf32>, vector<4x4xf32>, vector<4x4xf32>, vector<4x4xf32>, vector<4x4xf32>, vector<4x4xf32>, vector<4x4xf32> -> vector<4x36xf32>
    %122 = vector.extract_strided_slice %93 {offsets = [0, 0], sizes = [4, 4], strides = [1, 1]} : vector<5x4xf32> to vector<4x4xf32>
    %123 = vector.extract_strided_slice %95 {offsets = [0, 0], sizes = [4, 4], strides = [1, 1]} : vector<5x4xf32> to vector<4x4xf32>
    %124 = vector.extract_strided_slice %89 {offsets = [1, 0], sizes = [4, 4], strides = [1, 1]} : vector<5x4xf32> to vector<4x4xf32>
    %125 = vector.extract_strided_slice %101 {offsets = [0, 0], sizes = [4, 4], strides = [1, 1]} : vector<5x4xf32> to vector<4x4xf32>
    %126 = vector.extract_strided_slice %103 {offsets = [0, 0], sizes = [4, 4], strides = [1, 1]} : vector<5x4xf32> to vector<4x4xf32>
    %127 = vector.extract_strided_slice %97 {offsets = [1, 0], sizes = [4, 4], strides = [1, 1]} : vector<5x4xf32> to vector<4x4xf32>
    %128 = vector.extract_strided_slice %109 {offsets = [0, 0], sizes = [4, 4], strides = [1, 1]} : vector<5x4xf32> to vector<4x4xf32>
    %129 = vector.extract_strided_slice %111 {offsets = [0, 0], sizes = [4, 4], strides = [1, 1]} : vector<5x4xf32> to vector<4x4xf32>
    %130 = vector.extract_strided_slice %105 {offsets = [1, 0], sizes = [4, 4], strides = [1, 1]} : vector<5x4xf32> to vector<4x4xf32>
    %131 = tpu.concatenate %122, %123, %124, %125, %126, %127, %128, %129, %130 in 1 : vector<4x4xf32>, vector<4x4xf32>, vector<4x4xf32>, vector<4x4xf32>, vector<4x4xf32>, vector<4x4xf32>, vector<4x4xf32>, vector<4x4xf32>, vector<4x4xf32> -> vector<4x36xf32>
    %c0_172 = arith.constant 0 : index
    %c0_173 = arith.constant 0 : index
    %c3_174 = arith.constant 3 : index
    %c0_175 = arith.constant 0 : index
    %c0_176 = arith.constant 0 : index
    %132 = vector.load %arg1[%c0_172, %c0_173, %c3_174, %c0_175, %c0_176] : memref<8x2x9x5x4xf32, #tpu.memory_space<vmem>>, vector<1x1x1x5x4xf32>
    %133 = vector.shape_cast %132 : vector<1x1x1x5x4xf32> to vector<5x4xf32>
    %c1_177 = arith.constant 1 : index
    %c0_178 = arith.constant 0 : index
    %c3_179 = arith.constant 3 : index
    %c0_180 = arith.constant 0 : index
    %c0_181 = arith.constant 0 : index
    %134 = vector.load %arg1[%c1_177, %c0_178, %c3_179, %c0_180, %c0_181] : memref<8x2x9x5x4xf32, #tpu.memory_space<vmem>>, vector<1x1x1x5x4xf32>
    %135 = vector.shape_cast %134 : vector<1x1x1x5x4xf32> to vector<5x4xf32>
    %c2_182 = arith.constant 2 : index
    %c0_183 = arith.constant 0 : index
    %c3_184 = arith.constant 3 : index
    %c0_185 = arith.constant 0 : index
    %c0_186 = arith.constant 0 : index
    %136 = vector.load %arg1[%c2_182, %c0_183, %c3_184, %c0_185, %c0_186] : memref<8x2x9x5x4xf32, #tpu.memory_space<vmem>>, vector<1x1x1x5x4xf32>
    %137 = vector.shape_cast %136 : vector<1x1x1x5x4xf32> to vector<5x4xf32>
    %c3_187 = arith.constant 3 : index
    %c0_188 = arith.constant 0 : index
    %c3_189 = arith.constant 3 : index
    %c0_190 = arith.constant 0 : index
    %c0_191 = arith.constant 0 : index
    %138 = vector.load %arg1[%c3_187, %c0_188, %c3_189, %c0_190, %c0_191] : memref<8x2x9x5x4xf32, #tpu.memory_space<vmem>>, vector<1x1x1x5x4xf32>
    %139 = vector.shape_cast %138 : vector<1x1x1x5x4xf32> to vector<5x4xf32>
    %c4_192 = arith.constant 4 : index
    %c0_193 = arith.constant 0 : index
    %c3_194 = arith.constant 3 : index
    %c0_195 = arith.constant 0 : index
    %c0_196 = arith.constant 0 : index
    %140 = vector.load %arg1[%c4_192, %c0_193, %c3_194, %c0_195, %c0_196] : memref<8x2x9x5x4xf32, #tpu.memory_space<vmem>>, vector<1x1x1x5x4xf32>
    %141 = vector.shape_cast %140 : vector<1x1x1x5x4xf32> to vector<5x4xf32>
    %c5_197 = arith.constant 5 : index
    %c0_198 = arith.constant 0 : index
    %c3_199 = arith.constant 3 : index
    %c0_200 = arith.constant 0 : index
    %c0_201 = arith.constant 0 : index
    %142 = vector.load %arg1[%c5_197, %c0_198, %c3_199, %c0_200, %c0_201] : memref<8x2x9x5x4xf32, #tpu.memory_space<vmem>>, vector<1x1x1x5x4xf32>
    %143 = vector.shape_cast %142 : vector<1x1x1x5x4xf32> to vector<5x4xf32>
    %c6_202 = arith.constant 6 : index
    %c0_203 = arith.constant 0 : index
    %c3_204 = arith.constant 3 : index
    %c0_205 = arith.constant 0 : index
    %c0_206 = arith.constant 0 : index
    %144 = vector.load %arg1[%c6_202, %c0_203, %c3_204, %c0_205, %c0_206] : memref<8x2x9x5x4xf32, #tpu.memory_space<vmem>>, vector<1x1x1x5x4xf32>
    %145 = vector.shape_cast %144 : vector<1x1x1x5x4xf32> to vector<5x4xf32>
    %c7_207 = arith.constant 7 : index
    %c0_208 = arith.constant 0 : index
    %c3_209 = arith.constant 3 : index
    %c0_210 = arith.constant 0 : index
    %c0_211 = arith.constant 0 : index
    %146 = vector.load %arg1[%c7_207, %c0_208, %c3_209, %c0_210, %c0_211] : memref<8x2x9x5x4xf32, #tpu.memory_space<vmem>>, vector<1x1x1x5x4xf32>
    %147 = vector.shape_cast %146 : vector<1x1x1x5x4xf32> to vector<5x4xf32>
    %c0_212 = arith.constant 0 : index
    %c0_213 = arith.constant 0 : index
    %c4_214 = arith.constant 4 : index
    %c0_215 = arith.constant 0 : index
    %c0_216 = arith.constant 0 : index
    %148 = vector.load %arg1[%c0_212, %c0_213, %c4_214, %c0_215, %c0_216] : memref<8x2x9x5x4xf32, #tpu.memory_space<vmem>>, vector<1x1x1x5x4xf32>
    %149 = vector.shape_cast %148 : vector<1x1x1x5x4xf32> to vector<5x4xf32>
    %c1_217 = arith.constant 1 : index
    %c0_218 = arith.constant 0 : index
    %c4_219 = arith.constant 4 : index
    %c0_220 = arith.constant 0 : index
    %c0_221 = arith.constant 0 : index
    %150 = vector.load %arg1[%c1_217, %c0_218, %c4_219, %c0_220, %c0_221] : memref<8x2x9x5x4xf32, #tpu.memory_space<vmem>>, vector<1x1x1x5x4xf32>
    %151 = vector.shape_cast %150 : vector<1x1x1x5x4xf32> to vector<5x4xf32>
    %c2_222 = arith.constant 2 : index
    %c0_223 = arith.constant 0 : index
    %c4_224 = arith.constant 4 : index
    %c0_225 = arith.constant 0 : index
    %c0_226 = arith.constant 0 : index
    %152 = vector.load %arg1[%c2_222, %c0_223, %c4_224, %c0_225, %c0_226] : memref<8x2x9x5x4xf32, #tpu.memory_space<vmem>>, vector<1x1x1x5x4xf32>
    %153 = vector.shape_cast %152 : vector<1x1x1x5x4xf32> to vector<5x4xf32>
    %c3_227 = arith.constant 3 : index
    %c0_228 = arith.constant 0 : index
    %c4_229 = arith.constant 4 : index
    %c0_230 = arith.constant 0 : index
    %c0_231 = arith.constant 0 : index
    %154 = vector.load %arg1[%c3_227, %c0_228, %c4_229, %c0_230, %c0_231] : memref<8x2x9x5x4xf32, #tpu.memory_space<vmem>>, vector<1x1x1x5x4xf32>
    %155 = vector.shape_cast %154 : vector<1x1x1x5x4xf32> to vector<5x4xf32>
    %156 = vector.extract_strided_slice %133 {offsets = [0, 0], sizes = [4, 4], strides = [1, 1]} : vector<5x4xf32> to vector<4x4xf32>
    %157 = vector.extract_strided_slice %135 {offsets = [0, 0], sizes = [4, 4], strides = [1, 1]} : vector<5x4xf32> to vector<4x4xf32>
    %158 = vector.extract_strided_slice %137 {offsets = [0, 0], sizes = [4, 4], strides = [1, 1]} : vector<5x4xf32> to vector<4x4xf32>
    %159 = vector.extract_strided_slice %141 {offsets = [0, 0], sizes = [4, 4], strides = [1, 1]} : vector<5x4xf32> to vector<4x4xf32>
    %160 = vector.extract_strided_slice %143 {offsets = [0, 0], sizes = [4, 4], strides = [1, 1]} : vector<5x4xf32> to vector<4x4xf32>
    %161 = vector.extract_strided_slice %145 {offsets = [0, 0], sizes = [4, 4], strides = [1, 1]} : vector<5x4xf32> to vector<4x4xf32>
    %162 = vector.extract_strided_slice %149 {offsets = [0, 0], sizes = [4, 4], strides = [1, 1]} : vector<5x4xf32> to vector<4x4xf32>
    %163 = vector.extract_strided_slice %151 {offsets = [0, 0], sizes = [4, 4], strides = [1, 1]} : vector<5x4xf32> to vector<4x4xf32>
    %164 = vector.extract_strided_slice %153 {offsets = [0, 0], sizes = [4, 4], strides = [1, 1]} : vector<5x4xf32> to vector<4x4xf32>
    %165 = tpu.concatenate %156, %157, %158, %159, %160, %161, %162, %163, %164 in 1 : vector<4x4xf32>, vector<4x4xf32>, vector<4x4xf32>, vector<4x4xf32>, vector<4x4xf32>, vector<4x4xf32>, vector<4x4xf32>, vector<4x4xf32>, vector<4x4xf32> -> vector<4x36xf32>
    %166 = vector.extract_strided_slice %137 {offsets = [0, 0], sizes = [4, 4], strides = [1, 1]} : vector<5x4xf32> to vector<4x4xf32>
    %167 = vector.extract_strided_slice %139 {offsets = [0, 0], sizes = [4, 4], strides = [1, 1]} : vector<5x4xf32> to vector<4x4xf32>
    %168 = vector.extract_strided_slice %133 {offsets = [1, 0], sizes = [4, 4], strides = [1, 1]} : vector<5x4xf32> to vector<4x4xf32>
    %169 = vector.extract_strided_slice %145 {offsets = [0, 0], sizes = [4, 4], strides = [1, 1]} : vector<5x4xf32> to vector<4x4xf32>
    %170 = vector.extract_strided_slice %147 {offsets = [0, 0], sizes = [4, 4], strides = [1, 1]} : vector<5x4xf32> to vector<4x4xf32>
    %171 = vector.extract_strided_slice %141 {offsets = [1, 0], sizes = [4, 4], strides = [1, 1]} : vector<5x4xf32> to vector<4x4xf32>
    %172 = vector.extract_strided_slice %153 {offsets = [0, 0], sizes = [4, 4], strides = [1, 1]} : vector<5x4xf32> to vector<4x4xf32>
    %173 = vector.extract_strided_slice %155 {offsets = [0, 0], sizes = [4, 4], strides = [1, 1]} : vector<5x4xf32> to vector<4x4xf32>
    %174 = vector.extract_strided_slice %149 {offsets = [1, 0], sizes = [4, 4], strides = [1, 1]} : vector<5x4xf32> to vector<4x4xf32>
    %175 = tpu.concatenate %166, %167, %168, %169, %170, %171, %172, %173, %174 in 1 : vector<4x4xf32>, vector<4x4xf32>, vector<4x4xf32>, vector<4x4xf32>, vector<4x4xf32>, vector<4x4xf32>, vector<4x4xf32>, vector<4x4xf32>, vector<4x4xf32> -> vector<4x36xf32>
    %c0_232 = arith.constant 0 : index
    %c0_233 = arith.constant 0 : index
    %c4_234 = arith.constant 4 : index
    %c0_235 = arith.constant 0 : index
    %c0_236 = arith.constant 0 : index
    %176 = vector.load %arg1[%c0_232, %c0_233, %c4_234, %c0_235, %c0_236] : memref<8x2x9x5x4xf32, #tpu.memory_space<vmem>>, vector<1x1x1x5x4xf32>
    %177 = vector.shape_cast %176 : vector<1x1x1x5x4xf32> to vector<5x4xf32>
    %c1_237 = arith.constant 1 : index
    %c0_238 = arith.constant 0 : index
    %c4_239 = arith.constant 4 : index
    %c0_240 = arith.constant 0 : index
    %c0_241 = arith.constant 0 : index
    %178 = vector.load %arg1[%c1_237, %c0_238, %c4_239, %c0_240, %c0_241] : memref<8x2x9x5x4xf32, #tpu.memory_space<vmem>>, vector<1x1x1x5x4xf32>
    %179 = vector.shape_cast %178 : vector<1x1x1x5x4xf32> to vector<5x4xf32>
    %c2_242 = arith.constant 2 : index
    %c0_243 = arith.constant 0 : index
    %c4_244 = arith.constant 4 : index
    %c0_245 = arith.constant 0 : index
    %c0_246 = arith.constant 0 : index
    %180 = vector.load %arg1[%c2_242, %c0_243, %c4_244, %c0_245, %c0_246] : memref<8x2x9x5x4xf32, #tpu.memory_space<vmem>>, vector<1x1x1x5x4xf32>
    %181 = vector.shape_cast %180 : vector<1x1x1x5x4xf32> to vector<5x4xf32>
    %c3_247 = arith.constant 3 : index
    %c0_248 = arith.constant 0 : index
    %c4_249 = arith.constant 4 : index
    %c0_250 = arith.constant 0 : index
    %c0_251 = arith.constant 0 : index
    %182 = vector.load %arg1[%c3_247, %c0_248, %c4_249, %c0_250, %c0_251] : memref<8x2x9x5x4xf32, #tpu.memory_space<vmem>>, vector<1x1x1x5x4xf32>
    %183 = vector.shape_cast %182 : vector<1x1x1x5x4xf32> to vector<5x4xf32>
    %c4_252 = arith.constant 4 : index
    %c0_253 = arith.constant 0 : index
    %c4_254 = arith.constant 4 : index
    %c0_255 = arith.constant 0 : index
    %c0_256 = arith.constant 0 : index
    %184 = vector.load %arg1[%c4_252, %c0_253, %c4_254, %c0_255, %c0_256] : memref<8x2x9x5x4xf32, #tpu.memory_space<vmem>>, vector<1x1x1x5x4xf32>
    %185 = vector.shape_cast %184 : vector<1x1x1x5x4xf32> to vector<5x4xf32>
    %c5_257 = arith.constant 5 : index
    %c0_258 = arith.constant 0 : index
    %c4_259 = arith.constant 4 : index
    %c0_260 = arith.constant 0 : index
    %c0_261 = arith.constant 0 : index
    %186 = vector.load %arg1[%c5_257, %c0_258, %c4_259, %c0_260, %c0_261] : memref<8x2x9x5x4xf32, #tpu.memory_space<vmem>>, vector<1x1x1x5x4xf32>
    %187 = vector.shape_cast %186 : vector<1x1x1x5x4xf32> to vector<5x4xf32>
    %c6_262 = arith.constant 6 : index
    %c0_263 = arith.constant 0 : index
    %c4_264 = arith.constant 4 : index
    %c0_265 = arith.constant 0 : index
    %c0_266 = arith.constant 0 : index
    %188 = vector.load %arg1[%c6_262, %c0_263, %c4_264, %c0_265, %c0_266] : memref<8x2x9x5x4xf32, #tpu.memory_space<vmem>>, vector<1x1x1x5x4xf32>
    %189 = vector.shape_cast %188 : vector<1x1x1x5x4xf32> to vector<5x4xf32>
    %c7_267 = arith.constant 7 : index
    %c0_268 = arith.constant 0 : index
    %c4_269 = arith.constant 4 : index
    %c0_270 = arith.constant 0 : index
    %c0_271 = arith.constant 0 : index
    %190 = vector.load %arg1[%c7_267, %c0_268, %c4_269, %c0_270, %c0_271] : memref<8x2x9x5x4xf32, #tpu.memory_space<vmem>>, vector<1x1x1x5x4xf32>
    %191 = vector.shape_cast %190 : vector<1x1x1x5x4xf32> to vector<5x4xf32>
    %c0_272 = arith.constant 0 : index
    %c0_273 = arith.constant 0 : index
    %c5_274 = arith.constant 5 : index
    %c0_275 = arith.constant 0 : index
    %c0_276 = arith.constant 0 : index
    %192 = vector.load %arg1[%c0_272, %c0_273, %c5_274, %c0_275, %c0_276] : memref<8x2x9x5x4xf32, #tpu.memory_space<vmem>>, vector<1x1x1x5x4xf32>
    %193 = vector.shape_cast %192 : vector<1x1x1x5x4xf32> to vector<5x4xf32>
    %c1_277 = arith.constant 1 : index
    %c0_278 = arith.constant 0 : index
    %c5_279 = arith.constant 5 : index
    %c0_280 = arith.constant 0 : index
    %c0_281 = arith.constant 0 : index
    %194 = vector.load %arg1[%c1_277, %c0_278, %c5_279, %c0_280, %c0_281] : memref<8x2x9x5x4xf32, #tpu.memory_space<vmem>>, vector<1x1x1x5x4xf32>
    %195 = vector.shape_cast %194 : vector<1x1x1x5x4xf32> to vector<5x4xf32>
    %c2_282 = arith.constant 2 : index
    %c0_283 = arith.constant 0 : index
    %c5_284 = arith.constant 5 : index
    %c0_285 = arith.constant 0 : index
    %c0_286 = arith.constant 0 : index
    %196 = vector.load %arg1[%c2_282, %c0_283, %c5_284, %c0_285, %c0_286] : memref<8x2x9x5x4xf32, #tpu.memory_space<vmem>>, vector<1x1x1x5x4xf32>
    %197 = vector.shape_cast %196 : vector<1x1x1x5x4xf32> to vector<5x4xf32>
    %c3_287 = arith.constant 3 : index
    %c0_288 = arith.constant 0 : index
    %c5_289 = arith.constant 5 : index
    %c0_290 = arith.constant 0 : index
    %c0_291 = arith.constant 0 : index
    %198 = vector.load %arg1[%c3_287, %c0_288, %c5_289, %c0_290, %c0_291] : memref<8x2x9x5x4xf32, #tpu.memory_space<vmem>>, vector<1x1x1x5x4xf32>
    %199 = vector.shape_cast %198 : vector<1x1x1x5x4xf32> to vector<5x4xf32>
    %200 = vector.extract_strided_slice %177 {offsets = [0, 0], sizes = [4, 4], strides = [1, 1]} : vector<5x4xf32> to vector<4x4xf32>
    %201 = vector.extract_strided_slice %179 {offsets = [0, 0], sizes = [4, 4], strides = [1, 1]} : vector<5x4xf32> to vector<4x4xf32>
    %202 = vector.extract_strided_slice %181 {offsets = [0, 0], sizes = [4, 4], strides = [1, 1]} : vector<5x4xf32> to vector<4x4xf32>
    %203 = vector.extract_strided_slice %185 {offsets = [0, 0], sizes = [4, 4], strides = [1, 1]} : vector<5x4xf32> to vector<4x4xf32>
    %204 = vector.extract_strided_slice %187 {offsets = [0, 0], sizes = [4, 4], strides = [1, 1]} : vector<5x4xf32> to vector<4x4xf32>
    %205 = vector.extract_strided_slice %189 {offsets = [0, 0], sizes = [4, 4], strides = [1, 1]} : vector<5x4xf32> to vector<4x4xf32>
    %206 = vector.extract_strided_slice %193 {offsets = [0, 0], sizes = [4, 4], strides = [1, 1]} : vector<5x4xf32> to vector<4x4xf32>
    %207 = vector.extract_strided_slice %195 {offsets = [0, 0], sizes = [4, 4], strides = [1, 1]} : vector<5x4xf32> to vector<4x4xf32>
    %208 = vector.extract_strided_slice %197 {offsets = [0, 0], sizes = [4, 4], strides = [1, 1]} : vector<5x4xf32> to vector<4x4xf32>
    %209 = tpu.concatenate %200, %201, %202, %203, %204, %205, %206, %207, %208 in 1 : vector<4x4xf32>, vector<4x4xf32>, vector<4x4xf32>, vector<4x4xf32>, vector<4x4xf32>, vector<4x4xf32>, vector<4x4xf32>, vector<4x4xf32>, vector<4x4xf32> -> vector<4x36xf32>
    %210 = vector.extract_strided_slice %181 {offsets = [0, 0], sizes = [4, 4], strides = [1, 1]} : vector<5x4xf32> to vector<4x4xf32>
    %211 = vector.extract_strided_slice %183 {offsets = [0, 0], sizes = [4, 4], strides = [1, 1]} : vector<5x4xf32> to vector<4x4xf32>
    %212 = vector.extract_strided_slice %177 {offsets = [1, 0], sizes = [4, 4], strides = [1, 1]} : vector<5x4xf32> to vector<4x4xf32>
    %213 = vector.extract_strided_slice %189 {offsets = [0, 0], sizes = [4, 4], strides = [1, 1]} : vector<5x4xf32> to vector<4x4xf32>
    %214 = vector.extract_strided_slice %191 {offsets = [0, 0], sizes = [4, 4], strides = [1, 1]} : vector<5x4xf32> to vector<4x4xf32>
    %215 = vector.extract_strided_slice %185 {offsets = [1, 0], sizes = [4, 4], strides = [1, 1]} : vector<5x4xf32> to vector<4x4xf32>
    %216 = vector.extract_strided_slice %197 {offsets = [0, 0], sizes = [4, 4], strides = [1, 1]} : vector<5x4xf32> to vector<4x4xf32>
    %217 = vector.extract_strided_slice %199 {offsets = [0, 0], sizes = [4, 4], strides = [1, 1]} : vector<5x4xf32> to vector<4x4xf32>
    %218 = vector.extract_strided_slice %193 {offsets = [1, 0], sizes = [4, 4], strides = [1, 1]} : vector<5x4xf32> to vector<4x4xf32>
    %219 = tpu.concatenate %210, %211, %212, %213, %214, %215, %216, %217, %218 in 1 : vector<4x4xf32>, vector<4x4xf32>, vector<4x4xf32>, vector<4x4xf32>, vector<4x4xf32>, vector<4x4xf32>, vector<4x4xf32>, vector<4x4xf32>, vector<4x4xf32> -> vector<4x36xf32>
    %c0_292 = arith.constant 0 : index
    %c0_293 = arith.constant 0 : index
    %c5_294 = arith.constant 5 : index
    %c0_295 = arith.constant 0 : index
    %c0_296 = arith.constant 0 : index
    %220 = vector.load %arg1[%c0_292, %c0_293, %c5_294, %c0_295, %c0_296] : memref<8x2x9x5x4xf32, #tpu.memory_space<vmem>>, vector<1x1x1x5x4xf32>
    %221 = vector.shape_cast %220 : vector<1x1x1x5x4xf32> to vector<5x4xf32>
    %c1_297 = arith.constant 1 : index
    %c0_298 = arith.constant 0 : index
    %c5_299 = arith.constant 5 : index
    %c0_300 = arith.constant 0 : index
    %c0_301 = arith.constant 0 : index
    %222 = vector.load %arg1[%c1_297, %c0_298, %c5_299, %c0_300, %c0_301] : memref<8x2x9x5x4xf32, #tpu.memory_space<vmem>>, vector<1x1x1x5x4xf32>
    %223 = vector.shape_cast %222 : vector<1x1x1x5x4xf32> to vector<5x4xf32>
    %c2_302 = arith.constant 2 : index
    %c0_303 = arith.constant 0 : index
    %c5_304 = arith.constant 5 : index
    %c0_305 = arith.constant 0 : index
    %c0_306 = arith.constant 0 : index
    %224 = vector.load %arg1[%c2_302, %c0_303, %c5_304, %c0_305, %c0_306] : memref<8x2x9x5x4xf32, #tpu.memory_space<vmem>>, vector<1x1x1x5x4xf32>
    %225 = vector.shape_cast %224 : vector<1x1x1x5x4xf32> to vector<5x4xf32>
    %c3_307 = arith.constant 3 : index
    %c0_308 = arith.constant 0 : index
    %c5_309 = arith.constant 5 : index
    %c0_310 = arith.constant 0 : index
    %c0_311 = arith.constant 0 : index
    %226 = vector.load %arg1[%c3_307, %c0_308, %c5_309, %c0_310, %c0_311] : memref<8x2x9x5x4xf32, #tpu.memory_space<vmem>>, vector<1x1x1x5x4xf32>
    %227 = vector.shape_cast %226 : vector<1x1x1x5x4xf32> to vector<5x4xf32>
    %c4_312 = arith.constant 4 : index
    %c0_313 = arith.constant 0 : index
    %c5_314 = arith.constant 5 : index
    %c0_315 = arith.constant 0 : index
    %c0_316 = arith.constant 0 : index
    %228 = vector.load %arg1[%c4_312, %c0_313, %c5_314, %c0_315, %c0_316] : memref<8x2x9x5x4xf32, #tpu.memory_space<vmem>>, vector<1x1x1x5x4xf32>
    %229 = vector.shape_cast %228 : vector<1x1x1x5x4xf32> to vector<5x4xf32>
    %c5_317 = arith.constant 5 : index
    %c0_318 = arith.constant 0 : index
    %c5_319 = arith.constant 5 : index
    %c0_320 = arith.constant 0 : index
    %c0_321 = arith.constant 0 : index
    %230 = vector.load %arg1[%c5_317, %c0_318, %c5_319, %c0_320, %c0_321] : memref<8x2x9x5x4xf32, #tpu.memory_space<vmem>>, vector<1x1x1x5x4xf32>
    %231 = vector.shape_cast %230 : vector<1x1x1x5x4xf32> to vector<5x4xf32>
    %c6_322 = arith.constant 6 : index
    %c0_323 = arith.constant 0 : index
    %c5_324 = arith.constant 5 : index
    %c0_325 = arith.constant 0 : index
    %c0_326 = arith.constant 0 : index
    %232 = vector.load %arg1[%c6_322, %c0_323, %c5_324, %c0_325, %c0_326] : memref<8x2x9x5x4xf32, #tpu.memory_space<vmem>>, vector<1x1x1x5x4xf32>
    %233 = vector.shape_cast %232 : vector<1x1x1x5x4xf32> to vector<5x4xf32>
    %c7_327 = arith.constant 7 : index
    %c0_328 = arith.constant 0 : index
    %c5_329 = arith.constant 5 : index
    %c0_330 = arith.constant 0 : index
    %c0_331 = arith.constant 0 : index
    %234 = vector.load %arg1[%c7_327, %c0_328, %c5_329, %c0_330, %c0_331] : memref<8x2x9x5x4xf32, #tpu.memory_space<vmem>>, vector<1x1x1x5x4xf32>
    %235 = vector.shape_cast %234 : vector<1x1x1x5x4xf32> to vector<5x4xf32>
    %c0_332 = arith.constant 0 : index
    %c0_333 = arith.constant 0 : index
    %c6_334 = arith.constant 6 : index
    %c0_335 = arith.constant 0 : index
    %c0_336 = arith.constant 0 : index
    %236 = vector.load %arg1[%c0_332, %c0_333, %c6_334, %c0_335, %c0_336] : memref<8x2x9x5x4xf32, #tpu.memory_space<vmem>>, vector<1x1x1x5x4xf32>
    %237 = vector.shape_cast %236 : vector<1x1x1x5x4xf32> to vector<5x4xf32>
    %c1_337 = arith.constant 1 : index
    %c0_338 = arith.constant 0 : index
    %c6_339 = arith.constant 6 : index
    %c0_340 = arith.constant 0 : index
    %c0_341 = arith.constant 0 : index
    %238 = vector.load %arg1[%c1_337, %c0_338, %c6_339, %c0_340, %c0_341] : memref<8x2x9x5x4xf32, #tpu.memory_space<vmem>>, vector<1x1x1x5x4xf32>
    %239 = vector.shape_cast %238 : vector<1x1x1x5x4xf32> to vector<5x4xf32>
    %c2_342 = arith.constant 2 : index
    %c0_343 = arith.constant 0 : index
    %c6_344 = arith.constant 6 : index
    %c0_345 = arith.constant 0 : index
    %c0_346 = arith.constant 0 : index
    %240 = vector.load %arg1[%c2_342, %c0_343, %c6_344, %c0_345, %c0_346] : memref<8x2x9x5x4xf32, #tpu.memory_space<vmem>>, vector<1x1x1x5x4xf32>
    %241 = vector.shape_cast %240 : vector<1x1x1x5x4xf32> to vector<5x4xf32>
    %c3_347 = arith.constant 3 : index
    %c0_348 = arith.constant 0 : index
    %c6_349 = arith.constant 6 : index
    %c0_350 = arith.constant 0 : index
    %c0_351 = arith.constant 0 : index
    %242 = vector.load %arg1[%c3_347, %c0_348, %c6_349, %c0_350, %c0_351] : memref<8x2x9x5x4xf32, #tpu.memory_space<vmem>>, vector<1x1x1x5x4xf32>
    %243 = vector.shape_cast %242 : vector<1x1x1x5x4xf32> to vector<5x4xf32>
    %244 = vector.extract_strided_slice %221 {offsets = [0, 0], sizes = [4, 4], strides = [1, 1]} : vector<5x4xf32> to vector<4x4xf32>
    %245 = vector.extract_strided_slice %223 {offsets = [0, 0], sizes = [4, 4], strides = [1, 1]} : vector<5x4xf32> to vector<4x4xf32>
    %246 = vector.extract_strided_slice %225 {offsets = [0, 0], sizes = [4, 4], strides = [1, 1]} : vector<5x4xf32> to vector<4x4xf32>
    %247 = vector.extract_strided_slice %229 {offsets = [0, 0], sizes = [4, 4], strides = [1, 1]} : vector<5x4xf32> to vector<4x4xf32>
    %248 = vector.extract_strided_slice %231 {offsets = [0, 0], sizes = [4, 4], strides = [1, 1]} : vector<5x4xf32> to vector<4x4xf32>
    %249 = vector.extract_strided_slice %233 {offsets = [0, 0], sizes = [4, 4], strides = [1, 1]} : vector<5x4xf32> to vector<4x4xf32>
    %250 = vector.extract_strided_slice %237 {offsets = [0, 0], sizes = [4, 4], strides = [1, 1]} : vector<5x4xf32> to vector<4x4xf32>
    %251 = vector.extract_strided_slice %239 {offsets = [0, 0], sizes = [4, 4], strides = [1, 1]} : vector<5x4xf32> to vector<4x4xf32>
    %252 = vector.extract_strided_slice %241 {offsets = [0, 0], sizes = [4, 4], strides = [1, 1]} : vector<5x4xf32> to vector<4x4xf32>
    %253 = tpu.concatenate %244, %245, %246, %247, %248, %249, %250, %251, %252 in 1 : vector<4x4xf32>, vector<4x4xf32>, vector<4x4xf32>, vector<4x4xf32>, vector<4x4xf32>, vector<4x4xf32>, vector<4x4xf32>, vector<4x4xf32>, vector<4x4xf32> -> vector<4x36xf32>
    %254 = vector.extract_strided_slice %225 {offsets = [0, 0], sizes = [4, 4], strides = [1, 1]} : vector<5x4xf32> to vector<4x4xf32>
    %255 = vector.extract_strided_slice %227 {offsets = [0, 0], sizes = [4, 4], strides = [1, 1]} : vector<5x4xf32> to vector<4x4xf32>
    %256 = vector.extract_strided_slice %221 {offsets = [1, 0], sizes = [4, 4], strides = [1, 1]} : vector<5x4xf32> to vector<4x4xf32>
    %257 = vector.extract_strided_slice %233 {offsets = [0, 0], sizes = [4, 4], strides = [1, 1]} : vector<5x4xf32> to vector<4x4xf32>
    %258 = vector.extract_strided_slice %235 {offsets = [0, 0], sizes = [4, 4], strides = [1, 1]} : vector<5x4xf32> to vector<4x4xf32>
    %259 = vector.extract_strided_slice %229 {offsets = [1, 0], sizes = [4, 4], strides = [1, 1]} : vector<5x4xf32> to vector<4x4xf32>
    %260 = vector.extract_strided_slice %241 {offsets = [0, 0], sizes = [4, 4], strides = [1, 1]} : vector<5x4xf32> to vector<4x4xf32>
    %261 = vector.extract_strided_slice %243 {offsets = [0, 0], sizes = [4, 4], strides = [1, 1]} : vector<5x4xf32> to vector<4x4xf32>
    %262 = vector.extract_strided_slice %237 {offsets = [1, 0], sizes = [4, 4], strides = [1, 1]} : vector<5x4xf32> to vector<4x4xf32>
    %263 = tpu.concatenate %254, %255, %256, %257, %258, %259, %260, %261, %262 in 1 : vector<4x4xf32>, vector<4x4xf32>, vector<4x4xf32>, vector<4x4xf32>, vector<4x4xf32>, vector<4x4xf32>, vector<4x4xf32>, vector<4x4xf32>, vector<4x4xf32> -> vector<4x36xf32>
    %c0_352 = arith.constant 0 : index
    %c0_353 = arith.constant 0 : index
    %c6_354 = arith.constant 6 : index
    %c0_355 = arith.constant 0 : index
    %c0_356 = arith.constant 0 : index
    %264 = vector.load %arg1[%c0_352, %c0_353, %c6_354, %c0_355, %c0_356] : memref<8x2x9x5x4xf32, #tpu.memory_space<vmem>>, vector<1x1x1x5x4xf32>
    %265 = vector.shape_cast %264 : vector<1x1x1x5x4xf32> to vector<5x4xf32>
    %c1_357 = arith.constant 1 : index
    %c0_358 = arith.constant 0 : index
    %c6_359 = arith.constant 6 : index
    %c0_360 = arith.constant 0 : index
    %c0_361 = arith.constant 0 : index
    %266 = vector.load %arg1[%c1_357, %c0_358, %c6_359, %c0_360, %c0_361] : memref<8x2x9x5x4xf32, #tpu.memory_space<vmem>>, vector<1x1x1x5x4xf32>
    %267 = vector.shape_cast %266 : vector<1x1x1x5x4xf32> to vector<5x4xf32>
    %c2_362 = arith.constant 2 : index
    %c0_363 = arith.constant 0 : index
    %c6_364 = arith.constant 6 : index
    %c0_365 = arith.constant 0 : index
    %c0_366 = arith.constant 0 : index
    %268 = vector.load %arg1[%c2_362, %c0_363, %c6_364, %c0_365, %c0_366] : memref<8x2x9x5x4xf32, #tpu.memory_space<vmem>>, vector<1x1x1x5x4xf32>
    %269 = vector.shape_cast %268 : vector<1x1x1x5x4xf32> to vector<5x4xf32>
    %c3_367 = arith.constant 3 : index
    %c0_368 = arith.constant 0 : index
    %c6_369 = arith.constant 6 : index
    %c0_370 = arith.constant 0 : index
    %c0_371 = arith.constant 0 : index
    %270 = vector.load %arg1[%c3_367, %c0_368, %c6_369, %c0_370, %c0_371] : memref<8x2x9x5x4xf32, #tpu.memory_space<vmem>>, vector<1x1x1x5x4xf32>
    %271 = vector.shape_cast %270 : vector<1x1x1x5x4xf32> to vector<5x4xf32>
    %c4_372 = arith.constant 4 : index
    %c0_373 = arith.constant 0 : index
    %c6_374 = arith.constant 6 : index
    %c0_375 = arith.constant 0 : index
    %c0_376 = arith.constant 0 : index
    %272 = vector.load %arg1[%c4_372, %c0_373, %c6_374, %c0_375, %c0_376] : memref<8x2x9x5x4xf32, #tpu.memory_space<vmem>>, vector<1x1x1x5x4xf32>
    %273 = vector.shape_cast %272 : vector<1x1x1x5x4xf32> to vector<5x4xf32>
    %c5_377 = arith.constant 5 : index
    %c0_378 = arith.constant 0 : index
    %c6_379 = arith.constant 6 : index
    %c0_380 = arith.constant 0 : index
    %c0_381 = arith.constant 0 : index
    %274 = vector.load %arg1[%c5_377, %c0_378, %c6_379, %c0_380, %c0_381] : memref<8x2x9x5x4xf32, #tpu.memory_space<vmem>>, vector<1x1x1x5x4xf32>
    %275 = vector.shape_cast %274 : vector<1x1x1x5x4xf32> to vector<5x4xf32>
    %c6_382 = arith.constant 6 : index
    %c0_383 = arith.constant 0 : index
    %c6_384 = arith.constant 6 : index
    %c0_385 = arith.constant 0 : index
    %c0_386 = arith.constant 0 : index
    %276 = vector.load %arg1[%c6_382, %c0_383, %c6_384, %c0_385, %c0_386] : memref<8x2x9x5x4xf32, #tpu.memory_space<vmem>>, vector<1x1x1x5x4xf32>
    %277 = vector.shape_cast %276 : vector<1x1x1x5x4xf32> to vector<5x4xf32>
    %c7_387 = arith.constant 7 : index
    %c0_388 = arith.constant 0 : index
    %c6_389 = arith.constant 6 : index
    %c0_390 = arith.constant 0 : index
    %c0_391 = arith.constant 0 : index
    %278 = vector.load %arg1[%c7_387, %c0_388, %c6_389, %c0_390, %c0_391] : memref<8x2x9x5x4xf32, #tpu.memory_space<vmem>>, vector<1x1x1x5x4xf32>
    %279 = vector.shape_cast %278 : vector<1x1x1x5x4xf32> to vector<5x4xf32>
    %c0_392 = arith.constant 0 : index
    %c0_393 = arith.constant 0 : index
    %c7_394 = arith.constant 7 : index
    %c0_395 = arith.constant 0 : index
    %c0_396 = arith.constant 0 : index
    %280 = vector.load %arg1[%c0_392, %c0_393, %c7_394, %c0_395, %c0_396] : memref<8x2x9x5x4xf32, #tpu.memory_space<vmem>>, vector<1x1x1x5x4xf32>
    %281 = vector.shape_cast %280 : vector<1x1x1x5x4xf32> to vector<5x4xf32>
    %c1_397 = arith.constant 1 : index
    %c0_398 = arith.constant 0 : index
    %c7_399 = arith.constant 7 : index
    %c0_400 = arith.constant 0 : index
    %c0_401 = arith.constant 0 : index
    %282 = vector.load %arg1[%c1_397, %c0_398, %c7_399, %c0_400, %c0_401] : memref<8x2x9x5x4xf32, #tpu.memory_space<vmem>>, vector<1x1x1x5x4xf32>
    %283 = vector.shape_cast %282 : vector<1x1x1x5x4xf32> to vector<5x4xf32>
    %c2_402 = arith.constant 2 : index
    %c0_403 = arith.constant 0 : index
    %c7_404 = arith.constant 7 : index
    %c0_405 = arith.constant 0 : index
    %c0_406 = arith.constant 0 : index
    %284 = vector.load %arg1[%c2_402, %c0_403, %c7_404, %c0_405, %c0_406] : memref<8x2x9x5x4xf32, #tpu.memory_space<vmem>>, vector<1x1x1x5x4xf32>
    %285 = vector.shape_cast %284 : vector<1x1x1x5x4xf32> to vector<5x4xf32>
    %c3_407 = arith.constant 3 : index
    %c0_408 = arith.constant 0 : index
    %c7_409 = arith.constant 7 : index
    %c0_410 = arith.constant 0 : index
    %c0_411 = arith.constant 0 : index
    %286 = vector.load %arg1[%c3_407, %c0_408, %c7_409, %c0_410, %c0_411] : memref<8x2x9x5x4xf32, #tpu.memory_space<vmem>>, vector<1x1x1x5x4xf32>
    %287 = vector.shape_cast %286 : vector<1x1x1x5x4xf32> to vector<5x4xf32>
    %288 = vector.extract_strided_slice %265 {offsets = [0, 0], sizes = [4, 4], strides = [1, 1]} : vector<5x4xf32> to vector<4x4xf32>
    %289 = vector.extract_strided_slice %267 {offsets = [0, 0], sizes = [4, 4], strides = [1, 1]} : vector<5x4xf32> to vector<4x4xf32>
    %290 = vector.extract_strided_slice %269 {offsets = [0, 0], sizes = [4, 4], strides = [1, 1]} : vector<5x4xf32> to vector<4x4xf32>
    %291 = vector.extract_strided_slice %273 {offsets = [0, 0], sizes = [4, 4], strides = [1, 1]} : vector<5x4xf32> to vector<4x4xf32>
    %292 = vector.extract_strided_slice %275 {offsets = [0, 0], sizes = [4, 4], strides = [1, 1]} : vector<5x4xf32> to vector<4x4xf32>
    %293 = vector.extract_strided_slice %277 {offsets = [0, 0], sizes = [4, 4], strides = [1, 1]} : vector<5x4xf32> to vector<4x4xf32>
    %294 = vector.extract_strided_slice %281 {offsets = [0, 0], sizes = [4, 4], strides = [1, 1]} : vector<5x4xf32> to vector<4x4xf32>
    %295 = vector.extract_strided_slice %283 {offsets = [0, 0], sizes = [4, 4], strides = [1, 1]} : vector<5x4xf32> to vector<4x4xf32>
    %296 = vector.extract_strided_slice %285 {offsets = [0, 0], sizes = [4, 4], strides = [1, 1]} : vector<5x4xf32> to vector<4x4xf32>
    %297 = tpu.concatenate %288, %289, %290, %291, %292, %293, %294, %295, %296 in 1 : vector<4x4xf32>, vector<4x4xf32>, vector<4x4xf32>, vector<4x4xf32>, vector<4x4xf32>, vector<4x4xf32>, vector<4x4xf32>, vector<4x4xf32>, vector<4x4xf32> -> vector<4x36xf32>
    %298 = vector.extract_strided_slice %269 {offsets = [0, 0], sizes = [4, 4], strides = [1, 1]} : vector<5x4xf32> to vector<4x4xf32>
    %299 = vector.extract_strided_slice %271 {offsets = [0, 0], sizes = [4, 4], strides = [1, 1]} : vector<5x4xf32> to vector<4x4xf32>
    %300 = vector.extract_strided_slice %265 {offsets = [1, 0], sizes = [4, 4], strides = [1, 1]} : vector<5x4xf32> to vector<4x4xf32>
    %301 = vector.extract_strided_slice %277 {offsets = [0, 0], sizes = [4, 4], strides = [1, 1]} : vector<5x4xf32> to vector<4x4xf32>
    %302 = vector.extract_strided_slice %279 {offsets = [0, 0], sizes = [4, 4], strides = [1, 1]} : vector<5x4xf32> to vector<4x4xf32>
    %303 = vector.extract_strided_slice %273 {offsets = [1, 0], sizes = [4, 4], strides = [1, 1]} : vector<5x4xf32> to vector<4x4xf32>
    %304 = vector.extract_strided_slice %285 {offsets = [0, 0], sizes = [4, 4], strides = [1, 1]} : vector<5x4xf32> to vector<4x4xf32>
    %305 = vector.extract_strided_slice %287 {offsets = [0, 0], sizes = [4, 4], strides = [1, 1]} : vector<5x4xf32> to vector<4x4xf32>
    %306 = vector.extract_strided_slice %281 {offsets = [1, 0], sizes = [4, 4], strides = [1, 1]} : vector<5x4xf32> to vector<4x4xf32>
    %307 = tpu.concatenate %298, %299, %300, %301, %302, %303, %304, %305, %306 in 1 : vector<4x4xf32>, vector<4x4xf32>, vector<4x4xf32>, vector<4x4xf32>, vector<4x4xf32>, vector<4x4xf32>, vector<4x4xf32>, vector<4x4xf32>, vector<4x4xf32> -> vector<4x36xf32>
    %c0_412 = arith.constant 0 : index
    %c0_413 = arith.constant 0 : index
    %c7_414 = arith.constant 7 : index
    %c0_415 = arith.constant 0 : index
    %c0_416 = arith.constant 0 : index
    %308 = vector.load %arg1[%c0_412, %c0_413, %c7_414, %c0_415, %c0_416] : memref<8x2x9x5x4xf32, #tpu.memory_space<vmem>>, vector<1x1x1x5x4xf32>
    %309 = vector.shape_cast %308 : vector<1x1x1x5x4xf32> to vector<5x4xf32>
    %c1_417 = arith.constant 1 : index
    %c0_418 = arith.constant 0 : index
    %c7_419 = arith.constant 7 : index
    %c0_420 = arith.constant 0 : index
    %c0_421 = arith.constant 0 : index
    %310 = vector.load %arg1[%c1_417, %c0_418, %c7_419, %c0_420, %c0_421] : memref<8x2x9x5x4xf32, #tpu.memory_space<vmem>>, vector<1x1x1x5x4xf32>
    %311 = vector.shape_cast %310 : vector<1x1x1x5x4xf32> to vector<5x4xf32>
    %c2_422 = arith.constant 2 : index
    %c0_423 = arith.constant 0 : index
    %c7_424 = arith.constant 7 : index
    %c0_425 = arith.constant 0 : index
    %c0_426 = arith.constant 0 : index
    %312 = vector.load %arg1[%c2_422, %c0_423, %c7_424, %c0_425, %c0_426] : memref<8x2x9x5x4xf32, #tpu.memory_space<vmem>>, vector<1x1x1x5x4xf32>
    %313 = vector.shape_cast %312 : vector<1x1x1x5x4xf32> to vector<5x4xf32>
    %c3_427 = arith.constant 3 : index
    %c0_428 = arith.constant 0 : index
    %c7_429 = arith.constant 7 : index
    %c0_430 = arith.constant 0 : index
    %c0_431 = arith.constant 0 : index
    %314 = vector.load %arg1[%c3_427, %c0_428, %c7_429, %c0_430, %c0_431] : memref<8x2x9x5x4xf32, #tpu.memory_space<vmem>>, vector<1x1x1x5x4xf32>
    %315 = vector.shape_cast %314 : vector<1x1x1x5x4xf32> to vector<5x4xf32>
    %c4_432 = arith.constant 4 : index
    %c0_433 = arith.constant 0 : index
    %c7_434 = arith.constant 7 : index
    %c0_435 = arith.constant 0 : index
    %c0_436 = arith.constant 0 : index
    %316 = vector.load %arg1[%c4_432, %c0_433, %c7_434, %c0_435, %c0_436] : memref<8x2x9x5x4xf32, #tpu.memory_space<vmem>>, vector<1x1x1x5x4xf32>
    %317 = vector.shape_cast %316 : vector<1x1x1x5x4xf32> to vector<5x4xf32>
    %c5_437 = arith.constant 5 : index
    %c0_438 = arith.constant 0 : index
    %c7_439 = arith.constant 7 : index
    %c0_440 = arith.constant 0 : index
    %c0_441 = arith.constant 0 : index
    %318 = vector.load %arg1[%c5_437, %c0_438, %c7_439, %c0_440, %c0_441] : memref<8x2x9x5x4xf32, #tpu.memory_space<vmem>>, vector<1x1x1x5x4xf32>
    %319 = vector.shape_cast %318 : vector<1x1x1x5x4xf32> to vector<5x4xf32>
    %c6_442 = arith.constant 6 : index
    %c0_443 = arith.constant 0 : index
    %c7_444 = arith.constant 7 : index
    %c0_445 = arith.constant 0 : index
    %c0_446 = arith.constant 0 : index
    %320 = vector.load %arg1[%c6_442, %c0_443, %c7_444, %c0_445, %c0_446] : memref<8x2x9x5x4xf32, #tpu.memory_space<vmem>>, vector<1x1x1x5x4xf32>
    %321 = vector.shape_cast %320 : vector<1x1x1x5x4xf32> to vector<5x4xf32>
    %c7_447 = arith.constant 7 : index
    %c0_448 = arith.constant 0 : index
    %c7_449 = arith.constant 7 : index
    %c0_450 = arith.constant 0 : index
    %c0_451 = arith.constant 0 : index
    %322 = vector.load %arg1[%c7_447, %c0_448, %c7_449, %c0_450, %c0_451] : memref<8x2x9x5x4xf32, #tpu.memory_space<vmem>>, vector<1x1x1x5x4xf32>
    %323 = vector.shape_cast %322 : vector<1x1x1x5x4xf32> to vector<5x4xf32>
    %c0_452 = arith.constant 0 : index
    %c0_453 = arith.constant 0 : index
    %c8 = arith.constant 8 : index
    %c0_454 = arith.constant 0 : index
    %c0_455 = arith.constant 0 : index
    %324 = vector.load %arg1[%c0_452, %c0_453, %c8, %c0_454, %c0_455] : memref<8x2x9x5x4xf32, #tpu.memory_space<vmem>>, vector<1x1x1x5x4xf32>
    %325 = vector.shape_cast %324 : vector<1x1x1x5x4xf32> to vector<5x4xf32>
    %c1_456 = arith.constant 1 : index
    %c0_457 = arith.constant 0 : index
    %c8_458 = arith.constant 8 : index
    %c0_459 = arith.constant 0 : index
    %c0_460 = arith.constant 0 : index
    %326 = vector.load %arg1[%c1_456, %c0_457, %c8_458, %c0_459, %c0_460] : memref<8x2x9x5x4xf32, #tpu.memory_space<vmem>>, vector<1x1x1x5x4xf32>
    %327 = vector.shape_cast %326 : vector<1x1x1x5x4xf32> to vector<5x4xf32>
    %c2_461 = arith.constant 2 : index
    %c0_462 = arith.constant 0 : index
    %c8_463 = arith.constant 8 : index
    %c0_464 = arith.constant 0 : index
    %c0_465 = arith.constant 0 : index
    %328 = vector.load %arg1[%c2_461, %c0_462, %c8_463, %c0_464, %c0_465] : memref<8x2x9x5x4xf32, #tpu.memory_space<vmem>>, vector<1x1x1x5x4xf32>
    %329 = vector.shape_cast %328 : vector<1x1x1x5x4xf32> to vector<5x4xf32>
    %c3_466 = arith.constant 3 : index
    %c0_467 = arith.constant 0 : index
    %c8_468 = arith.constant 8 : index
    %c0_469 = arith.constant 0 : index
    %c0_470 = arith.constant 0 : index
    %330 = vector.load %arg1[%c3_466, %c0_467, %c8_468, %c0_469, %c0_470] : memref<8x2x9x5x4xf32, #tpu.memory_space<vmem>>, vector<1x1x1x5x4xf32>
    %331 = vector.shape_cast %330 : vector<1x1x1x5x4xf32> to vector<5x4xf32>
    %332 = vector.extract_strided_slice %309 {offsets = [0, 0], sizes = [4, 4], strides = [1, 1]} : vector<5x4xf32> to vector<4x4xf32>
    %333 = vector.extract_strided_slice %311 {offsets = [0, 0], sizes = [4, 4], strides = [1, 1]} : vector<5x4xf32> to vector<4x4xf32>
    %334 = vector.extract_strided_slice %313 {offsets = [0, 0], sizes = [4, 4], strides = [1, 1]} : vector<5x4xf32> to vector<4x4xf32>
    %335 = vector.extract_strided_slice %317 {offsets = [0, 0], sizes = [4, 4], strides = [1, 1]} : vector<5x4xf32> to vector<4x4xf32>
    %336 = vector.extract_strided_slice %319 {offsets = [0, 0], sizes = [4, 4], strides = [1, 1]} : vector<5x4xf32> to vector<4x4xf32>
    %337 = vector.extract_strided_slice %321 {offsets = [0, 0], sizes = [4, 4], strides = [1, 1]} : vector<5x4xf32> to vector<4x4xf32>
    %338 = vector.extract_strided_slice %325 {offsets = [0, 0], sizes = [4, 4], strides = [1, 1]} : vector<5x4xf32> to vector<4x4xf32>
    %339 = vector.extract_strided_slice %327 {offsets = [0, 0], sizes = [4, 4], strides = [1, 1]} : vector<5x4xf32> to vector<4x4xf32>
    %340 = vector.extract_strided_slice %329 {offsets = [0, 0], sizes = [4, 4], strides = [1, 1]} : vector<5x4xf32> to vector<4x4xf32>
    %341 = tpu.concatenate %332, %333, %334, %335, %336, %337, %338, %339, %340 in 1 : vector<4x4xf32>, vector<4x4xf32>, vector<4x4xf32>, vector<4x4xf32>, vector<4x4xf32>, vector<4x4xf32>, vector<4x4xf32>, vector<4x4xf32>, vector<4x4xf32> -> vector<4x36xf32>
    %342 = vector.extract_strided_slice %313 {offsets = [0, 0], sizes = [4, 4], strides = [1, 1]} : vector<5x4xf32> to vector<4x4xf32>
    %343 = vector.extract_strided_slice %315 {offsets = [0, 0], sizes = [4, 4], strides = [1, 1]} : vector<5x4xf32> to vector<4x4xf32>
    %344 = vector.extract_strided_slice %309 {offsets = [1, 0], sizes = [4, 4], strides = [1, 1]} : vector<5x4xf32> to vector<4x4xf32>
    %345 = vector.extract_strided_slice %321 {offsets = [0, 0], sizes = [4, 4], strides = [1, 1]} : vector<5x4xf32> to vector<4x4xf32>
    %346 = vector.extract_strided_slice %323 {offsets = [0, 0], sizes = [4, 4], strides = [1, 1]} : vector<5x4xf32> to vector<4x4xf32>
    %347 = vector.extract_strided_slice %317 {offsets = [1, 0], sizes = [4, 4], strides = [1, 1]} : vector<5x4xf32> to vector<4x4xf32>
    %348 = vector.extract_strided_slice %329 {offsets = [0, 0], sizes = [4, 4], strides = [1, 1]} : vector<5x4xf32> to vector<4x4xf32>
    %349 = vector.extract_strided_slice %331 {offsets = [0, 0], sizes = [4, 4], strides = [1, 1]} : vector<5x4xf32> to vector<4x4xf32>
    %350 = vector.extract_strided_slice %325 {offsets = [1, 0], sizes = [4, 4], strides = [1, 1]} : vector<5x4xf32> to vector<4x4xf32>
    %351 = tpu.concatenate %342, %343, %344, %345, %346, %347, %348, %349, %350 in 1 : vector<4x4xf32>, vector<4x4xf32>, vector<4x4xf32>, vector<4x4xf32>, vector<4x4xf32>, vector<4x4xf32>, vector<4x4xf32>, vector<4x4xf32>, vector<4x4xf32> -> vector<4x36xf32>
    %c0_471 = arith.constant 0 : index
    %c1_472 = arith.constant 1 : index
    %c0_473 = arith.constant 0 : index
    %c0_474 = arith.constant 0 : index
    %c0_475 = arith.constant 0 : index
    %352 = vector.load %arg1[%c0_471, %c1_472, %c0_473, %c0_474, %c0_475] : memref<8x2x9x5x4xf32, #tpu.memory_space<vmem>>, vector<1x1x1x5x4xf32>
    %353 = vector.shape_cast %352 : vector<1x1x1x5x4xf32> to vector<5x4xf32>
    %c1_476 = arith.constant 1 : index
    %c1_477 = arith.constant 1 : index
    %c0_478 = arith.constant 0 : index
    %c0_479 = arith.constant 0 : index
    %c0_480 = arith.constant 0 : index
    %354 = vector.load %arg1[%c1_476, %c1_477, %c0_478, %c0_479, %c0_480] : memref<8x2x9x5x4xf32, #tpu.memory_space<vmem>>, vector<1x1x1x5x4xf32>
    %355 = vector.shape_cast %354 : vector<1x1x1x5x4xf32> to vector<5x4xf32>
    %c2_481 = arith.constant 2 : index
    %c1_482 = arith.constant 1 : index
    %c0_483 = arith.constant 0 : index
    %c0_484 = arith.constant 0 : index
    %c0_485 = arith.constant 0 : index
    %356 = vector.load %arg1[%c2_481, %c1_482, %c0_483, %c0_484, %c0_485] : memref<8x2x9x5x4xf32, #tpu.memory_space<vmem>>, vector<1x1x1x5x4xf32>
    %357 = vector.shape_cast %356 : vector<1x1x1x5x4xf32> to vector<5x4xf32>
    %c3_486 = arith.constant 3 : index
    %c1_487 = arith.constant 1 : index
    %c0_488 = arith.constant 0 : index
    %c0_489 = arith.constant 0 : index
    %c0_490 = arith.constant 0 : index
    %358 = vector.load %arg1[%c3_486, %c1_487, %c0_488, %c0_489, %c0_490] : memref<8x2x9x5x4xf32, #tpu.memory_space<vmem>>, vector<1x1x1x5x4xf32>
    %359 = vector.shape_cast %358 : vector<1x1x1x5x4xf32> to vector<5x4xf32>
    %c4_491 = arith.constant 4 : index
    %c1_492 = arith.constant 1 : index
    %c0_493 = arith.constant 0 : index
    %c0_494 = arith.constant 0 : index
    %c0_495 = arith.constant 0 : index
    %360 = vector.load %arg1[%c4_491, %c1_492, %c0_493, %c0_494, %c0_495] : memref<8x2x9x5x4xf32, #tpu.memory_space<vmem>>, vector<1x1x1x5x4xf32>
    %361 = vector.shape_cast %360 : vector<1x1x1x5x4xf32> to vector<5x4xf32>
    %c5_496 = arith.constant 5 : index
    %c1_497 = arith.constant 1 : index
    %c0_498 = arith.constant 0 : index
    %c0_499 = arith.constant 0 : index
    %c0_500 = arith.constant 0 : index
    %362 = vector.load %arg1[%c5_496, %c1_497, %c0_498, %c0_499, %c0_500] : memref<8x2x9x5x4xf32, #tpu.memory_space<vmem>>, vector<1x1x1x5x4xf32>
    %363 = vector.shape_cast %362 : vector<1x1x1x5x4xf32> to vector<5x4xf32>
    %c6_501 = arith.constant 6 : index
    %c1_502 = arith.constant 1 : index
    %c0_503 = arith.constant 0 : index
    %c0_504 = arith.constant 0 : index
    %c0_505 = arith.constant 0 : index
    %364 = vector.load %arg1[%c6_501, %c1_502, %c0_503, %c0_504, %c0_505] : memref<8x2x9x5x4xf32, #tpu.memory_space<vmem>>, vector<1x1x1x5x4xf32>
    %365 = vector.shape_cast %364 : vector<1x1x1x5x4xf32> to vector<5x4xf32>
    %c7_506 = arith.constant 7 : index
    %c1_507 = arith.constant 1 : index
    %c0_508 = arith.constant 0 : index
    %c0_509 = arith.constant 0 : index
    %c0_510 = arith.constant 0 : index
    %366 = vector.load %arg1[%c7_506, %c1_507, %c0_508, %c0_509, %c0_510] : memref<8x2x9x5x4xf32, #tpu.memory_space<vmem>>, vector<1x1x1x5x4xf32>
    %367 = vector.shape_cast %366 : vector<1x1x1x5x4xf32> to vector<5x4xf32>
    %c0_511 = arith.constant 0 : index
    %c1_512 = arith.constant 1 : index
    %c1_513 = arith.constant 1 : index
    %c0_514 = arith.constant 0 : index
    %c0_515 = arith.constant 0 : index
    %368 = vector.load %arg1[%c0_511, %c1_512, %c1_513, %c0_514, %c0_515] : memref<8x2x9x5x4xf32, #tpu.memory_space<vmem>>, vector<1x1x1x5x4xf32>
    %369 = vector.shape_cast %368 : vector<1x1x1x5x4xf32> to vector<5x4xf32>
    %c1_516 = arith.constant 1 : index
    %c1_517 = arith.constant 1 : index
    %c1_518 = arith.constant 1 : index
    %c0_519 = arith.constant 0 : index
    %c0_520 = arith.constant 0 : index
    %370 = vector.load %arg1[%c1_516, %c1_517, %c1_518, %c0_519, %c0_520] : memref<8x2x9x5x4xf32, #tpu.memory_space<vmem>>, vector<1x1x1x5x4xf32>
    %371 = vector.shape_cast %370 : vector<1x1x1x5x4xf32> to vector<5x4xf32>
    %c2_521 = arith.constant 2 : index
    %c1_522 = arith.constant 1 : index
    %c1_523 = arith.constant 1 : index
    %c0_524 = arith.constant 0 : index
    %c0_525 = arith.constant 0 : index
    %372 = vector.load %arg1[%c2_521, %c1_522, %c1_523, %c0_524, %c0_525] : memref<8x2x9x5x4xf32, #tpu.memory_space<vmem>>, vector<1x1x1x5x4xf32>
    %373 = vector.shape_cast %372 : vector<1x1x1x5x4xf32> to vector<5x4xf32>
    %c3_526 = arith.constant 3 : index
    %c1_527 = arith.constant 1 : index
    %c1_528 = arith.constant 1 : index
    %c0_529 = arith.constant 0 : index
    %c0_530 = arith.constant 0 : index
    %374 = vector.load %arg1[%c3_526, %c1_527, %c1_528, %c0_529, %c0_530] : memref<8x2x9x5x4xf32, #tpu.memory_space<vmem>>, vector<1x1x1x5x4xf32>
    %375 = vector.shape_cast %374 : vector<1x1x1x5x4xf32> to vector<5x4xf32>
    %376 = vector.extract_strided_slice %353 {offsets = [0, 0], sizes = [4, 4], strides = [1, 1]} : vector<5x4xf32> to vector<4x4xf32>
    %377 = vector.extract_strided_slice %355 {offsets = [0, 0], sizes = [4, 4], strides = [1, 1]} : vector<5x4xf32> to vector<4x4xf32>
    %378 = vector.extract_strided_slice %357 {offsets = [0, 0], sizes = [4, 4], strides = [1, 1]} : vector<5x4xf32> to vector<4x4xf32>
    %379 = vector.extract_strided_slice %361 {offsets = [0, 0], sizes = [4, 4], strides = [1, 1]} : vector<5x4xf32> to vector<4x4xf32>
    %380 = vector.extract_strided_slice %363 {offsets = [0, 0], sizes = [4, 4], strides = [1, 1]} : vector<5x4xf32> to vector<4x4xf32>
    %381 = vector.extract_strided_slice %365 {offsets = [0, 0], sizes = [4, 4], strides = [1, 1]} : vector<5x4xf32> to vector<4x4xf32>
    %382 = vector.extract_strided_slice %369 {offsets = [0, 0], sizes = [4, 4], strides = [1, 1]} : vector<5x4xf32> to vector<4x4xf32>
    %383 = vector.extract_strided_slice %371 {offsets = [0, 0], sizes = [4, 4], strides = [1, 1]} : vector<5x4xf32> to vector<4x4xf32>
    %384 = vector.extract_strided_slice %373 {offsets = [0, 0], sizes = [4, 4], strides = [1, 1]} : vector<5x4xf32> to vector<4x4xf32>
    %385 = tpu.concatenate %376, %377, %378, %379, %380, %381, %382, %383, %384 in 1 : vector<4x4xf32>, vector<4x4xf32>, vector<4x4xf32>, vector<4x4xf32>, vector<4x4xf32>, vector<4x4xf32>, vector<4x4xf32>, vector<4x4xf32>, vector<4x4xf32> -> vector<4x36xf32>
    %386 = vector.extract_strided_slice %357 {offsets = [0, 0], sizes = [4, 4], strides = [1, 1]} : vector<5x4xf32> to vector<4x4xf32>
    %387 = vector.extract_strided_slice %359 {offsets = [0, 0], sizes = [4, 4], strides = [1, 1]} : vector<5x4xf32> to vector<4x4xf32>
    %388 = vector.extract_strided_slice %353 {offsets = [1, 0], sizes = [4, 4], strides = [1, 1]} : vector<5x4xf32> to vector<4x4xf32>
    %389 = vector.extract_strided_slice %365 {offsets = [0, 0], sizes = [4, 4], strides = [1, 1]} : vector<5x4xf32> to vector<4x4xf32>
    %390 = vector.extract_strided_slice %367 {offsets = [0, 0], sizes = [4, 4], strides = [1, 1]} : vector<5x4xf32> to vector<4x4xf32>
    %391 = vector.extract_strided_slice %361 {offsets = [1, 0], sizes = [4, 4], strides = [1, 1]} : vector<5x4xf32> to vector<4x4xf32>
    %392 = vector.extract_strided_slice %373 {offsets = [0, 0], sizes = [4, 4], strides = [1, 1]} : vector<5x4xf32> to vector<4x4xf32>
    %393 = vector.extract_strided_slice %375 {offsets = [0, 0], sizes = [4, 4], strides = [1, 1]} : vector<5x4xf32> to vector<4x4xf32>
    %394 = vector.extract_strided_slice %369 {offsets = [1, 0], sizes = [4, 4], strides = [1, 1]} : vector<5x4xf32> to vector<4x4xf32>
    %395 = tpu.concatenate %386, %387, %388, %389, %390, %391, %392, %393, %394 in 1 : vector<4x4xf32>, vector<4x4xf32>, vector<4x4xf32>, vector<4x4xf32>, vector<4x4xf32>, vector<4x4xf32>, vector<4x4xf32>, vector<4x4xf32>, vector<4x4xf32> -> vector<4x36xf32>
    %c0_531 = arith.constant 0 : index
    %c1_532 = arith.constant 1 : index
    %c1_533 = arith.constant 1 : index
    %c0_534 = arith.constant 0 : index
    %c0_535 = arith.constant 0 : index
    %396 = vector.load %arg1[%c0_531, %c1_532, %c1_533, %c0_534, %c0_535] : memref<8x2x9x5x4xf32, #tpu.memory_space<vmem>>, vector<1x1x1x5x4xf32>
    %397 = vector.shape_cast %396 : vector<1x1x1x5x4xf32> to vector<5x4xf32>
    %c1_536 = arith.constant 1 : index
    %c1_537 = arith.constant 1 : index
    %c1_538 = arith.constant 1 : index
    %c0_539 = arith.constant 0 : index
    %c0_540 = arith.constant 0 : index
    %398 = vector.load %arg1[%c1_536, %c1_537, %c1_538, %c0_539, %c0_540] : memref<8x2x9x5x4xf32, #tpu.memory_space<vmem>>, vector<1x1x1x5x4xf32>
    %399 = vector.shape_cast %398 : vector<1x1x1x5x4xf32> to vector<5x4xf32>
    %c2_541 = arith.constant 2 : index
    %c1_542 = arith.constant 1 : index
    %c1_543 = arith.constant 1 : index
    %c0_544 = arith.constant 0 : index
    %c0_545 = arith.constant 0 : index
    %400 = vector.load %arg1[%c2_541, %c1_542, %c1_543, %c0_544, %c0_545] : memref<8x2x9x5x4xf32, #tpu.memory_space<vmem>>, vector<1x1x1x5x4xf32>
    %401 = vector.shape_cast %400 : vector<1x1x1x5x4xf32> to vector<5x4xf32>
    %c3_546 = arith.constant 3 : index
    %c1_547 = arith.constant 1 : index
    %c1_548 = arith.constant 1 : index
    %c0_549 = arith.constant 0 : index
    %c0_550 = arith.constant 0 : index
    %402 = vector.load %arg1[%c3_546, %c1_547, %c1_548, %c0_549, %c0_550] : memref<8x2x9x5x4xf32, #tpu.memory_space<vmem>>, vector<1x1x1x5x4xf32>
    %403 = vector.shape_cast %402 : vector<1x1x1x5x4xf32> to vector<5x4xf32>
    %c4_551 = arith.constant 4 : index
    %c1_552 = arith.constant 1 : index
    %c1_553 = arith.constant 1 : index
    %c0_554 = arith.constant 0 : index
    %c0_555 = arith.constant 0 : index
    %404 = vector.load %arg1[%c4_551, %c1_552, %c1_553, %c0_554, %c0_555] : memref<8x2x9x5x4xf32, #tpu.memory_space<vmem>>, vector<1x1x1x5x4xf32>
    %405 = vector.shape_cast %404 : vector<1x1x1x5x4xf32> to vector<5x4xf32>
    %c5_556 = arith.constant 5 : index
    %c1_557 = arith.constant 1 : index
    %c1_558 = arith.constant 1 : index
    %c0_559 = arith.constant 0 : index
    %c0_560 = arith.constant 0 : index
    %406 = vector.load %arg1[%c5_556, %c1_557, %c1_558, %c0_559, %c0_560] : memref<8x2x9x5x4xf32, #tpu.memory_space<vmem>>, vector<1x1x1x5x4xf32>
    %407 = vector.shape_cast %406 : vector<1x1x1x5x4xf32> to vector<5x4xf32>
    %c6_561 = arith.constant 6 : index
    %c1_562 = arith.constant 1 : index
    %c1_563 = arith.constant 1 : index
    %c0_564 = arith.constant 0 : index
    %c0_565 = arith.constant 0 : index
    %408 = vector.load %arg1[%c6_561, %c1_562, %c1_563, %c0_564, %c0_565] : memref<8x2x9x5x4xf32, #tpu.memory_space<vmem>>, vector<1x1x1x5x4xf32>
    %409 = vector.shape_cast %408 : vector<1x1x1x5x4xf32> to vector<5x4xf32>
    %c7_566 = arith.constant 7 : index
    %c1_567 = arith.constant 1 : index
    %c1_568 = arith.constant 1 : index
    %c0_569 = arith.constant 0 : index
    %c0_570 = arith.constant 0 : index
    %410 = vector.load %arg1[%c7_566, %c1_567, %c1_568, %c0_569, %c0_570] : memref<8x2x9x5x4xf32, #tpu.memory_space<vmem>>, vector<1x1x1x5x4xf32>
    %411 = vector.shape_cast %410 : vector<1x1x1x5x4xf32> to vector<5x4xf32>
    %c0_571 = arith.constant 0 : index
    %c1_572 = arith.constant 1 : index
    %c2_573 = arith.constant 2 : index
    %c0_574 = arith.constant 0 : index
    %c0_575 = arith.constant 0 : index
    %412 = vector.load %arg1[%c0_571, %c1_572, %c2_573, %c0_574, %c0_575] : memref<8x2x9x5x4xf32, #tpu.memory_space<vmem>>, vector<1x1x1x5x4xf32>
    %413 = vector.shape_cast %412 : vector<1x1x1x5x4xf32> to vector<5x4xf32>
    %c1_576 = arith.constant 1 : index
    %c1_577 = arith.constant 1 : index
    %c2_578 = arith.constant 2 : index
    %c0_579 = arith.constant 0 : index
    %c0_580 = arith.constant 0 : index
    %414 = vector.load %arg1[%c1_576, %c1_577, %c2_578, %c0_579, %c0_580] : memref<8x2x9x5x4xf32, #tpu.memory_space<vmem>>, vector<1x1x1x5x4xf32>
    %415 = vector.shape_cast %414 : vector<1x1x1x5x4xf32> to vector<5x4xf32>
    %c2_581 = arith.constant 2 : index
    %c1_582 = arith.constant 1 : index
    %c2_583 = arith.constant 2 : index
    %c0_584 = arith.constant 0 : index
    %c0_585 = arith.constant 0 : index
    %416 = vector.load %arg1[%c2_581, %c1_582, %c2_583, %c0_584, %c0_585] : memref<8x2x9x5x4xf32, #tpu.memory_space<vmem>>, vector<1x1x1x5x4xf32>
    %417 = vector.shape_cast %416 : vector<1x1x1x5x4xf32> to vector<5x4xf32>
    %c3_586 = arith.constant 3 : index
    %c1_587 = arith.constant 1 : index
    %c2_588 = arith.constant 2 : index
    %c0_589 = arith.constant 0 : index
    %c0_590 = arith.constant 0 : index
    %418 = vector.load %arg1[%c3_586, %c1_587, %c2_588, %c0_589, %c0_590] : memref<8x2x9x5x4xf32, #tpu.memory_space<vmem>>, vector<1x1x1x5x4xf32>
    %419 = vector.shape_cast %418 : vector<1x1x1x5x4xf32> to vector<5x4xf32>
    %420 = vector.extract_strided_slice %397 {offsets = [0, 0], sizes = [4, 4], strides = [1, 1]} : vector<5x4xf32> to vector<4x4xf32>
    %421 = vector.extract_strided_slice %399 {offsets = [0, 0], sizes = [4, 4], strides = [1, 1]} : vector<5x4xf32> to vector<4x4xf32>
    %422 = vector.extract_strided_slice %401 {offsets = [0, 0], sizes = [4, 4], strides = [1, 1]} : vector<5x4xf32> to vector<4x4xf32>
    %423 = vector.extract_strided_slice %405 {offsets = [0, 0], sizes = [4, 4], strides = [1, 1]} : vector<5x4xf32> to vector<4x4xf32>
    %424 = vector.extract_strided_slice %407 {offsets = [0, 0], sizes = [4, 4], strides = [1, 1]} : vector<5x4xf32> to vector<4x4xf32>
    %425 = vector.extract_strided_slice %409 {offsets = [0, 0], sizes = [4, 4], strides = [1, 1]} : vector<5x4xf32> to vector<4x4xf32>
    %426 = vector.extract_strided_slice %413 {offsets = [0, 0], sizes = [4, 4], strides = [1, 1]} : vector<5x4xf32> to vector<4x4xf32>
    %427 = vector.extract_strided_slice %415 {offsets = [0, 0], sizes = [4, 4], strides = [1, 1]} : vector<5x4xf32> to vector<4x4xf32>
    %428 = vector.extract_strided_slice %417 {offsets = [0, 0], sizes = [4, 4], strides = [1, 1]} : vector<5x4xf32> to vector<4x4xf32>
    %429 = tpu.concatenate %420, %421, %422, %423, %424, %425, %426, %427, %428 in 1 : vector<4x4xf32>, vector<4x4xf32>, vector<4x4xf32>, vector<4x4xf32>, vector<4x4xf32>, vector<4x4xf32>, vector<4x4xf32>, vector<4x4xf32>, vector<4x4xf32> -> vector<4x36xf32>
    %430 = vector.extract_strided_slice %401 {offsets = [0, 0], sizes = [4, 4], strides = [1, 1]} : vector<5x4xf32> to vector<4x4xf32>
    %431 = vector.extract_strided_slice %403 {offsets = [0, 0], sizes = [4, 4], strides = [1, 1]} : vector<5x4xf32> to vector<4x4xf32>
    %432 = vector.extract_strided_slice %397 {offsets = [1, 0], sizes = [4, 4], strides = [1, 1]} : vector<5x4xf32> to vector<4x4xf32>
    %433 = vector.extract_strided_slice %409 {offsets = [0, 0], sizes = [4, 4], strides = [1, 1]} : vector<5x4xf32> to vector<4x4xf32>
    %434 = vector.extract_strided_slice %411 {offsets = [0, 0], sizes = [4, 4], strides = [1, 1]} : vector<5x4xf32> to vector<4x4xf32>
    %435 = vector.extract_strided_slice %405 {offsets = [1, 0], sizes = [4, 4], strides = [1, 1]} : vector<5x4xf32> to vector<4x4xf32>
    %436 = vector.extract_strided_slice %417 {offsets = [0, 0], sizes = [4, 4], strides = [1, 1]} : vector<5x4xf32> to vector<4x4xf32>
    %437 = vector.extract_strided_slice %419 {offsets = [0, 0], sizes = [4, 4], strides = [1, 1]} : vector<5x4xf32> to vector<4x4xf32>
    %438 = vector.extract_strided_slice %413 {offsets = [1, 0], sizes = [4, 4], strides = [1, 1]} : vector<5x4xf32> to vector<4x4xf32>
    %439 = tpu.concatenate %430, %431, %432, %433, %434, %435, %436, %437, %438 in 1 : vector<4x4xf32>, vector<4x4xf32>, vector<4x4xf32>, vector<4x4xf32>, vector<4x4xf32>, vector<4x4xf32>, vector<4x4xf32>, vector<4x4xf32>, vector<4x4xf32> -> vector<4x36xf32>
    %c0_591 = arith.constant 0 : index
    %c1_592 = arith.constant 1 : index
    %c2_593 = arith.constant 2 : index
    %c0_594 = arith.constant 0 : index
    %c0_595 = arith.constant 0 : index
    %440 = vector.load %arg1[%c0_591, %c1_592, %c2_593, %c0_594, %c0_595] : memref<8x2x9x5x4xf32, #tpu.memory_space<vmem>>, vector<1x1x1x5x4xf32>
    %441 = vector.shape_cast %440 : vector<1x1x1x5x4xf32> to vector<5x4xf32>
    %c1_596 = arith.constant 1 : index
    %c1_597 = arith.constant 1 : index
    %c2_598 = arith.constant 2 : index
    %c0_599 = arith.constant 0 : index
    %c0_600 = arith.constant 0 : index
    %442 = vector.load %arg1[%c1_596, %c1_597, %c2_598, %c0_599, %c0_600] : memref<8x2x9x5x4xf32, #tpu.memory_space<vmem>>, vector<1x1x1x5x4xf32>
    %443 = vector.shape_cast %442 : vector<1x1x1x5x4xf32> to vector<5x4xf32>
    %c2_601 = arith.constant 2 : index
    %c1_602 = arith.constant 1 : index
    %c2_603 = arith.constant 2 : index
    %c0_604 = arith.constant 0 : index
    %c0_605 = arith.constant 0 : index
    %444 = vector.load %arg1[%c2_601, %c1_602, %c2_603, %c0_604, %c0_605] : memref<8x2x9x5x4xf32, #tpu.memory_space<vmem>>, vector<1x1x1x5x4xf32>
    %445 = vector.shape_cast %444 : vector<1x1x1x5x4xf32> to vector<5x4xf32>
    %c3_606 = arith.constant 3 : index
    %c1_607 = arith.constant 1 : index
    %c2_608 = arith.constant 2 : index
    %c0_609 = arith.constant 0 : index
    %c0_610 = arith.constant 0 : index
    %446 = vector.load %arg1[%c3_606, %c1_607, %c2_608, %c0_609, %c0_610] : memref<8x2x9x5x4xf32, #tpu.memory_space<vmem>>, vector<1x1x1x5x4xf32>
    %447 = vector.shape_cast %446 : vector<1x1x1x5x4xf32> to vector<5x4xf32>
    %c4_611 = arith.constant 4 : index
    %c1_612 = arith.constant 1 : index
    %c2_613 = arith.constant 2 : index
    %c0_614 = arith.constant 0 : index
    %c0_615 = arith.constant 0 : index
    %448 = vector.load %arg1[%c4_611, %c1_612, %c2_613, %c0_614, %c0_615] : memref<8x2x9x5x4xf32, #tpu.memory_space<vmem>>, vector<1x1x1x5x4xf32>
    %449 = vector.shape_cast %448 : vector<1x1x1x5x4xf32> to vector<5x4xf32>
    %c5_616 = arith.constant 5 : index
    %c1_617 = arith.constant 1 : index
    %c2_618 = arith.constant 2 : index
    %c0_619 = arith.constant 0 : index
    %c0_620 = arith.constant 0 : index
    %450 = vector.load %arg1[%c5_616, %c1_617, %c2_618, %c0_619, %c0_620] : memref<8x2x9x5x4xf32, #tpu.memory_space<vmem>>, vector<1x1x1x5x4xf32>
    %451 = vector.shape_cast %450 : vector<1x1x1x5x4xf32> to vector<5x4xf32>
    %c6_621 = arith.constant 6 : index
    %c1_622 = arith.constant 1 : index
    %c2_623 = arith.constant 2 : index
    %c0_624 = arith.constant 0 : index
    %c0_625 = arith.constant 0 : index
    %452 = vector.load %arg1[%c6_621, %c1_622, %c2_623, %c0_624, %c0_625] : memref<8x2x9x5x4xf32, #tpu.memory_space<vmem>>, vector<1x1x1x5x4xf32>
    %453 = vector.shape_cast %452 : vector<1x1x1x5x4xf32> to vector<5x4xf32>
    %c7_626 = arith.constant 7 : index
    %c1_627 = arith.constant 1 : index
    %c2_628 = arith.constant 2 : index
    %c0_629 = arith.constant 0 : index
    %c0_630 = arith.constant 0 : index
    %454 = vector.load %arg1[%c7_626, %c1_627, %c2_628, %c0_629, %c0_630] : memref<8x2x9x5x4xf32, #tpu.memory_space<vmem>>, vector<1x1x1x5x4xf32>
    %455 = vector.shape_cast %454 : vector<1x1x1x5x4xf32> to vector<5x4xf32>
    %c0_631 = arith.constant 0 : index
    %c1_632 = arith.constant 1 : index
    %c3_633 = arith.constant 3 : index
    %c0_634 = arith.constant 0 : index
    %c0_635 = arith.constant 0 : index
    %456 = vector.load %arg1[%c0_631, %c1_632, %c3_633, %c0_634, %c0_635] : memref<8x2x9x5x4xf32, #tpu.memory_space<vmem>>, vector<1x1x1x5x4xf32>
    %457 = vector.shape_cast %456 : vector<1x1x1x5x4xf32> to vector<5x4xf32>
    %c1_636 = arith.constant 1 : index
    %c1_637 = arith.constant 1 : index
    %c3_638 = arith.constant 3 : index
    %c0_639 = arith.constant 0 : index
    %c0_640 = arith.constant 0 : index
    %458 = vector.load %arg1[%c1_636, %c1_637, %c3_638, %c0_639, %c0_640] : memref<8x2x9x5x4xf32, #tpu.memory_space<vmem>>, vector<1x1x1x5x4xf32>
    %459 = vector.shape_cast %458 : vector<1x1x1x5x4xf32> to vector<5x4xf32>
    %c2_641 = arith.constant 2 : index
    %c1_642 = arith.constant 1 : index
    %c3_643 = arith.constant 3 : index
    %c0_644 = arith.constant 0 : index
    %c0_645 = arith.constant 0 : index
    %460 = vector.load %arg1[%c2_641, %c1_642, %c3_643, %c0_644, %c0_645] : memref<8x2x9x5x4xf32, #tpu.memory_space<vmem>>, vector<1x1x1x5x4xf32>
    %461 = vector.shape_cast %460 : vector<1x1x1x5x4xf32> to vector<5x4xf32>
    %c3_646 = arith.constant 3 : index
    %c1_647 = arith.constant 1 : index
    %c3_648 = arith.constant 3 : index
    %c0_649 = arith.constant 0 : index
    %c0_650 = arith.constant 0 : index
    %462 = vector.load %arg1[%c3_646, %c1_647, %c3_648, %c0_649, %c0_650] : memref<8x2x9x5x4xf32, #tpu.memory_space<vmem>>, vector<1x1x1x5x4xf32>
    %463 = vector.shape_cast %462 : vector<1x1x1x5x4xf32> to vector<5x4xf32>
    %464 = vector.extract_strided_slice %441 {offsets = [0, 0], sizes = [4, 4], strides = [1, 1]} : vector<5x4xf32> to vector<4x4xf32>
    %465 = vector.extract_strided_slice %443 {offsets = [0, 0], sizes = [4, 4], strides = [1, 1]} : vector<5x4xf32> to vector<4x4xf32>
    %466 = vector.extract_strided_slice %445 {offsets = [0, 0], sizes = [4, 4], strides = [1, 1]} : vector<5x4xf32> to vector<4x4xf32>
    %467 = vector.extract_strided_slice %449 {offsets = [0, 0], sizes = [4, 4], strides = [1, 1]} : vector<5x4xf32> to vector<4x4xf32>
    %468 = vector.extract_strided_slice %451 {offsets = [0, 0], sizes = [4, 4], strides = [1, 1]} : vector<5x4xf32> to vector<4x4xf32>
    %469 = vector.extract_strided_slice %453 {offsets = [0, 0], sizes = [4, 4], strides = [1, 1]} : vector<5x4xf32> to vector<4x4xf32>
    %470 = vector.extract_strided_slice %457 {offsets = [0, 0], sizes = [4, 4], strides = [1, 1]} : vector<5x4xf32> to vector<4x4xf32>
    %471 = vector.extract_strided_slice %459 {offsets = [0, 0], sizes = [4, 4], strides = [1, 1]} : vector<5x4xf32> to vector<4x4xf32>
    %472 = vector.extract_strided_slice %461 {offsets = [0, 0], sizes = [4, 4], strides = [1, 1]} : vector<5x4xf32> to vector<4x4xf32>
    %473 = tpu.concatenate %464, %465, %466, %467, %468, %469, %470, %471, %472 in 1 : vector<4x4xf32>, vector<4x4xf32>, vector<4x4xf32>, vector<4x4xf32>, vector<4x4xf32>, vector<4x4xf32>, vector<4x4xf32>, vector<4x4xf32>, vector<4x4xf32> -> vector<4x36xf32>
    %474 = vector.extract_strided_slice %445 {offsets = [0, 0], sizes = [4, 4], strides = [1, 1]} : vector<5x4xf32> to vector<4x4xf32>
    %475 = vector.extract_strided_slice %447 {offsets = [0, 0], sizes = [4, 4], strides = [1, 1]} : vector<5x4xf32> to vector<4x4xf32>
    %476 = vector.extract_strided_slice %441 {offsets = [1, 0], sizes = [4, 4], strides = [1, 1]} : vector<5x4xf32> to vector<4x4xf32>
    %477 = vector.extract_strided_slice %453 {offsets = [0, 0], sizes = [4, 4], strides = [1, 1]} : vector<5x4xf32> to vector<4x4xf32>
    %478 = vector.extract_strided_slice %455 {offsets = [0, 0], sizes = [4, 4], strides = [1, 1]} : vector<5x4xf32> to vector<4x4xf32>
    %479 = vector.extract_strided_slice %449 {offsets = [1, 0], sizes = [4, 4], strides = [1, 1]} : vector<5x4xf32> to vector<4x4xf32>
    %480 = vector.extract_strided_slice %461 {offsets = [0, 0], sizes = [4, 4], strides = [1, 1]} : vector<5x4xf32> to vector<4x4xf32>
    %481 = vector.extract_strided_slice %463 {offsets = [0, 0], sizes = [4, 4], strides = [1, 1]} : vector<5x4xf32> to vector<4x4xf32>
    %482 = vector.extract_strided_slice %457 {offsets = [1, 0], sizes = [4, 4], strides = [1, 1]} : vector<5x4xf32> to vector<4x4xf32>
    %483 = tpu.concatenate %474, %475, %476, %477, %478, %479, %480, %481, %482 in 1 : vector<4x4xf32>, vector<4x4xf32>, vector<4x4xf32>, vector<4x4xf32>, vector<4x4xf32>, vector<4x4xf32>, vector<4x4xf32>, vector<4x4xf32>, vector<4x4xf32> -> vector<4x36xf32>
    %c0_651 = arith.constant 0 : index
    %c1_652 = arith.constant 1 : index
    %c3_653 = arith.constant 3 : index
    %c0_654 = arith.constant 0 : index
    %c0_655 = arith.constant 0 : index
    %484 = vector.load %arg1[%c0_651, %c1_652, %c3_653, %c0_654, %c0_655] : memref<8x2x9x5x4xf32, #tpu.memory_space<vmem>>, vector<1x1x1x5x4xf32>
    %485 = vector.shape_cast %484 : vector<1x1x1x5x4xf32> to vector<5x4xf32>
    %c1_656 = arith.constant 1 : index
    %c1_657 = arith.constant 1 : index
    %c3_658 = arith.constant 3 : index
    %c0_659 = arith.constant 0 : index
    %c0_660 = arith.constant 0 : index
    %486 = vector.load %arg1[%c1_656, %c1_657, %c3_658, %c0_659, %c0_660] : memref<8x2x9x5x4xf32, #tpu.memory_space<vmem>>, vector<1x1x1x5x4xf32>
    %487 = vector.shape_cast %486 : vector<1x1x1x5x4xf32> to vector<5x4xf32>
    %c2_661 = arith.constant 2 : index
    %c1_662 = arith.constant 1 : index
    %c3_663 = arith.constant 3 : index
    %c0_664 = arith.constant 0 : index
    %c0_665 = arith.constant 0 : index
    %488 = vector.load %arg1[%c2_661, %c1_662, %c3_663, %c0_664, %c0_665] : memref<8x2x9x5x4xf32, #tpu.memory_space<vmem>>, vector<1x1x1x5x4xf32>
    %489 = vector.shape_cast %488 : vector<1x1x1x5x4xf32> to vector<5x4xf32>
    %c3_666 = arith.constant 3 : index
    %c1_667 = arith.constant 1 : index
    %c3_668 = arith.constant 3 : index
    %c0_669 = arith.constant 0 : index
    %c0_670 = arith.constant 0 : index
    %490 = vector.load %arg1[%c3_666, %c1_667, %c3_668, %c0_669, %c0_670] : memref<8x2x9x5x4xf32, #tpu.memory_space<vmem>>, vector<1x1x1x5x4xf32>
    %491 = vector.shape_cast %490 : vector<1x1x1x5x4xf32> to vector<5x4xf32>
    %c4_671 = arith.constant 4 : index
    %c1_672 = arith.constant 1 : index
    %c3_673 = arith.constant 3 : index
    %c0_674 = arith.constant 0 : index
    %c0_675 = arith.constant 0 : index
    %492 = vector.load %arg1[%c4_671, %c1_672, %c3_673, %c0_674, %c0_675] : memref<8x2x9x5x4xf32, #tpu.memory_space<vmem>>, vector<1x1x1x5x4xf32>
    %493 = vector.shape_cast %492 : vector<1x1x1x5x4xf32> to vector<5x4xf32>
    %c5_676 = arith.constant 5 : index
    %c1_677 = arith.constant 1 : index
    %c3_678 = arith.constant 3 : index
    %c0_679 = arith.constant 0 : index
    %c0_680 = arith.constant 0 : index
    %494 = vector.load %arg1[%c5_676, %c1_677, %c3_678, %c0_679, %c0_680] : memref<8x2x9x5x4xf32, #tpu.memory_space<vmem>>, vector<1x1x1x5x4xf32>
    %495 = vector.shape_cast %494 : vector<1x1x1x5x4xf32> to vector<5x4xf32>
    %c6_681 = arith.constant 6 : index
    %c1_682 = arith.constant 1 : index
    %c3_683 = arith.constant 3 : index
    %c0_684 = arith.constant 0 : index
    %c0_685 = arith.constant 0 : index
    %496 = vector.load %arg1[%c6_681, %c1_682, %c3_683, %c0_684, %c0_685] : memref<8x2x9x5x4xf32, #tpu.memory_space<vmem>>, vector<1x1x1x5x4xf32>
    %497 = vector.shape_cast %496 : vector<1x1x1x5x4xf32> to vector<5x4xf32>
    %c7_686 = arith.constant 7 : index
    %c1_687 = arith.constant 1 : index
    %c3_688 = arith.constant 3 : index
    %c0_689 = arith.constant 0 : index
    %c0_690 = arith.constant 0 : index
    %498 = vector.load %arg1[%c7_686, %c1_687, %c3_688, %c0_689, %c0_690] : memref<8x2x9x5x4xf32, #tpu.memory_space<vmem>>, vector<1x1x1x5x4xf32>
    %499 = vector.shape_cast %498 : vector<1x1x1x5x4xf32> to vector<5x4xf32>
    %c0_691 = arith.constant 0 : index
    %c1_692 = arith.constant 1 : index
    %c4_693 = arith.constant 4 : index
    %c0_694 = arith.constant 0 : index
    %c0_695 = arith.constant 0 : index
    %500 = vector.load %arg1[%c0_691, %c1_692, %c4_693, %c0_694, %c0_695] : memref<8x2x9x5x4xf32, #tpu.memory_space<vmem>>, vector<1x1x1x5x4xf32>
    %501 = vector.shape_cast %500 : vector<1x1x1x5x4xf32> to vector<5x4xf32>
    %c1_696 = arith.constant 1 : index
    %c1_697 = arith.constant 1 : index
    %c4_698 = arith.constant 4 : index
    %c0_699 = arith.constant 0 : index
    %c0_700 = arith.constant 0 : index
    %502 = vector.load %arg1[%c1_696, %c1_697, %c4_698, %c0_699, %c0_700] : memref<8x2x9x5x4xf32, #tpu.memory_space<vmem>>, vector<1x1x1x5x4xf32>
    %503 = vector.shape_cast %502 : vector<1x1x1x5x4xf32> to vector<5x4xf32>
    %c2_701 = arith.constant 2 : index
    %c1_702 = arith.constant 1 : index
    %c4_703 = arith.constant 4 : index
    %c0_704 = arith.constant 0 : index
    %c0_705 = arith.constant 0 : index
    %504 = vector.load %arg1[%c2_701, %c1_702, %c4_703, %c0_704, %c0_705] : memref<8x2x9x5x4xf32, #tpu.memory_space<vmem>>, vector<1x1x1x5x4xf32>
    %505 = vector.shape_cast %504 : vector<1x1x1x5x4xf32> to vector<5x4xf32>
    %c3_706 = arith.constant 3 : index
    %c1_707 = arith.constant 1 : index
    %c4_708 = arith.constant 4 : index
    %c0_709 = arith.constant 0 : index
    %c0_710 = arith.constant 0 : index
    %506 = vector.load %arg1[%c3_706, %c1_707, %c4_708, %c0_709, %c0_710] : memref<8x2x9x5x4xf32, #tpu.memory_space<vmem>>, vector<1x1x1x5x4xf32>
    %507 = vector.shape_cast %506 : vector<1x1x1x5x4xf32> to vector<5x4xf32>
    %508 = vector.extract_strided_slice %485 {offsets = [0, 0], sizes = [4, 4], strides = [1, 1]} : vector<5x4xf32> to vector<4x4xf32>
    %509 = vector.extract_strided_slice %487 {offsets = [0, 0], sizes = [4, 4], strides = [1, 1]} : vector<5x4xf32> to vector<4x4xf32>
    %510 = vector.extract_strided_slice %489 {offsets = [0, 0], sizes = [4, 4], strides = [1, 1]} : vector<5x4xf32> to vector<4x4xf32>
    %511 = vector.extract_strided_slice %493 {offsets = [0, 0], sizes = [4, 4], strides = [1, 1]} : vector<5x4xf32> to vector<4x4xf32>
    %512 = vector.extract_strided_slice %495 {offsets = [0, 0], sizes = [4, 4], strides = [1, 1]} : vector<5x4xf32> to vector<4x4xf32>
    %513 = vector.extract_strided_slice %497 {offsets = [0, 0], sizes = [4, 4], strides = [1, 1]} : vector<5x4xf32> to vector<4x4xf32>
    %514 = vector.extract_strided_slice %501 {offsets = [0, 0], sizes = [4, 4], strides = [1, 1]} : vector<5x4xf32> to vector<4x4xf32>
    %515 = vector.extract_strided_slice %503 {offsets = [0, 0], sizes = [4, 4], strides = [1, 1]} : vector<5x4xf32> to vector<4x4xf32>
    %516 = vector.extract_strided_slice %505 {offsets = [0, 0], sizes = [4, 4], strides = [1, 1]} : vector<5x4xf32> to vector<4x4xf32>
    %517 = tpu.concatenate %508, %509, %510, %511, %512, %513, %514, %515, %516 in 1 : vector<4x4xf32>, vector<4x4xf32>, vector<4x4xf32>, vector<4x4xf32>, vector<4x4xf32>, vector<4x4xf32>, vector<4x4xf32>, vector<4x4xf32>, vector<4x4xf32> -> vector<4x36xf32>
    %518 = vector.extract_strided_slice %489 {offsets = [0, 0], sizes = [4, 4], strides = [1, 1]} : vector<5x4xf32> to vector<4x4xf32>
    %519 = vector.extract_strided_slice %491 {offsets = [0, 0], sizes = [4, 4], strides = [1, 1]} : vector<5x4xf32> to vector<4x4xf32>
    %520 = vector.extract_strided_slice %485 {offsets = [1, 0], sizes = [4, 4], strides = [1, 1]} : vector<5x4xf32> to vector<4x4xf32>
    %521 = vector.extract_strided_slice %497 {offsets = [0, 0], sizes = [4, 4], strides = [1, 1]} : vector<5x4xf32> to vector<4x4xf32>
    %522 = vector.extract_strided_slice %499 {offsets = [0, 0], sizes = [4, 4], strides = [1, 1]} : vector<5x4xf32> to vector<4x4xf32>
    %523 = vector.extract_strided_slice %493 {offsets = [1, 0], sizes = [4, 4], strides = [1, 1]} : vector<5x4xf32> to vector<4x4xf32>
    %524 = vector.extract_strided_slice %505 {offsets = [0, 0], sizes = [4, 4], strides = [1, 1]} : vector<5x4xf32> to vector<4x4xf32>
    %525 = vector.extract_strided_slice %507 {offsets = [0, 0], sizes = [4, 4], strides = [1, 1]} : vector<5x4xf32> to vector<4x4xf32>
    %526 = vector.extract_strided_slice %501 {offsets = [1, 0], sizes = [4, 4], strides = [1, 1]} : vector<5x4xf32> to vector<4x4xf32>
    %527 = tpu.concatenate %518, %519, %520, %521, %522, %523, %524, %525, %526 in 1 : vector<4x4xf32>, vector<4x4xf32>, vector<4x4xf32>, vector<4x4xf32>, vector<4x4xf32>, vector<4x4xf32>, vector<4x4xf32>, vector<4x4xf32>, vector<4x4xf32> -> vector<4x36xf32>
    %c0_711 = arith.constant 0 : index
    %c1_712 = arith.constant 1 : index
    %c4_713 = arith.constant 4 : index
    %c0_714 = arith.constant 0 : index
    %c0_715 = arith.constant 0 : index
    %528 = vector.load %arg1[%c0_711, %c1_712, %c4_713, %c0_714, %c0_715] : memref<8x2x9x5x4xf32, #tpu.memory_space<vmem>>, vector<1x1x1x5x4xf32>
    %529 = vector.shape_cast %528 : vector<1x1x1x5x4xf32> to vector<5x4xf32>
    %c1_716 = arith.constant 1 : index
    %c1_717 = arith.constant 1 : index
    %c4_718 = arith.constant 4 : index
    %c0_719 = arith.constant 0 : index
    %c0_720 = arith.constant 0 : index
    %530 = vector.load %arg1[%c1_716, %c1_717, %c4_718, %c0_719, %c0_720] : memref<8x2x9x5x4xf32, #tpu.memory_space<vmem>>, vector<1x1x1x5x4xf32>
    %531 = vector.shape_cast %530 : vector<1x1x1x5x4xf32> to vector<5x4xf32>
    %c2_721 = arith.constant 2 : index
    %c1_722 = arith.constant 1 : index
    %c4_723 = arith.constant 4 : index
    %c0_724 = arith.constant 0 : index
    %c0_725 = arith.constant 0 : index
    %532 = vector.load %arg1[%c2_721, %c1_722, %c4_723, %c0_724, %c0_725] : memref<8x2x9x5x4xf32, #tpu.memory_space<vmem>>, vector<1x1x1x5x4xf32>
    %533 = vector.shape_cast %532 : vector<1x1x1x5x4xf32> to vector<5x4xf32>
    %c3_726 = arith.constant 3 : index
    %c1_727 = arith.constant 1 : index
    %c4_728 = arith.constant 4 : index
    %c0_729 = arith.constant 0 : index
    %c0_730 = arith.constant 0 : index
    %534 = vector.load %arg1[%c3_726, %c1_727, %c4_728, %c0_729, %c0_730] : memref<8x2x9x5x4xf32, #tpu.memory_space<vmem>>, vector<1x1x1x5x4xf32>
    %535 = vector.shape_cast %534 : vector<1x1x1x5x4xf32> to vector<5x4xf32>
    %c4_731 = arith.constant 4 : index
    %c1_732 = arith.constant 1 : index
    %c4_733 = arith.constant 4 : index
    %c0_734 = arith.constant 0 : index
    %c0_735 = arith.constant 0 : index
    %536 = vector.load %arg1[%c4_731, %c1_732, %c4_733, %c0_734, %c0_735] : memref<8x2x9x5x4xf32, #tpu.memory_space<vmem>>, vector<1x1x1x5x4xf32>
    %537 = vector.shape_cast %536 : vector<1x1x1x5x4xf32> to vector<5x4xf32>
    %c5_736 = arith.constant 5 : index
    %c1_737 = arith.constant 1 : index
    %c4_738 = arith.constant 4 : index
    %c0_739 = arith.constant 0 : index
    %c0_740 = arith.constant 0 : index
    %538 = vector.load %arg1[%c5_736, %c1_737, %c4_738, %c0_739, %c0_740] : memref<8x2x9x5x4xf32, #tpu.memory_space<vmem>>, vector<1x1x1x5x4xf32>
    %539 = vector.shape_cast %538 : vector<1x1x1x5x4xf32> to vector<5x4xf32>
    %c6_741 = arith.constant 6 : index
    %c1_742 = arith.constant 1 : index
    %c4_743 = arith.constant 4 : index
    %c0_744 = arith.constant 0 : index
    %c0_745 = arith.constant 0 : index
    %540 = vector.load %arg1[%c6_741, %c1_742, %c4_743, %c0_744, %c0_745] : memref<8x2x9x5x4xf32, #tpu.memory_space<vmem>>, vector<1x1x1x5x4xf32>
    %541 = vector.shape_cast %540 : vector<1x1x1x5x4xf32> to vector<5x4xf32>
    %c7_746 = arith.constant 7 : index
    %c1_747 = arith.constant 1 : index
    %c4_748 = arith.constant 4 : index
    %c0_749 = arith.constant 0 : index
    %c0_750 = arith.constant 0 : index
    %542 = vector.load %arg1[%c7_746, %c1_747, %c4_748, %c0_749, %c0_750] : memref<8x2x9x5x4xf32, #tpu.memory_space<vmem>>, vector<1x1x1x5x4xf32>
    %543 = vector.shape_cast %542 : vector<1x1x1x5x4xf32> to vector<5x4xf32>
    %c0_751 = arith.constant 0 : index
    %c1_752 = arith.constant 1 : index
    %c5_753 = arith.constant 5 : index
    %c0_754 = arith.constant 0 : index
    %c0_755 = arith.constant 0 : index
    %544 = vector.load %arg1[%c0_751, %c1_752, %c5_753, %c0_754, %c0_755] : memref<8x2x9x5x4xf32, #tpu.memory_space<vmem>>, vector<1x1x1x5x4xf32>
    %545 = vector.shape_cast %544 : vector<1x1x1x5x4xf32> to vector<5x4xf32>
    %c1_756 = arith.constant 1 : index
    %c1_757 = arith.constant 1 : index
    %c5_758 = arith.constant 5 : index
    %c0_759 = arith.constant 0 : index
    %c0_760 = arith.constant 0 : index
    %546 = vector.load %arg1[%c1_756, %c1_757, %c5_758, %c0_759, %c0_760] : memref<8x2x9x5x4xf32, #tpu.memory_space<vmem>>, vector<1x1x1x5x4xf32>
    %547 = vector.shape_cast %546 : vector<1x1x1x5x4xf32> to vector<5x4xf32>
    %c2_761 = arith.constant 2 : index
    %c1_762 = arith.constant 1 : index
    %c5_763 = arith.constant 5 : index
    %c0_764 = arith.constant 0 : index
    %c0_765 = arith.constant 0 : index
    %548 = vector.load %arg1[%c2_761, %c1_762, %c5_763, %c0_764, %c0_765] : memref<8x2x9x5x4xf32, #tpu.memory_space<vmem>>, vector<1x1x1x5x4xf32>
    %549 = vector.shape_cast %548 : vector<1x1x1x5x4xf32> to vector<5x4xf32>
    %c3_766 = arith.constant 3 : index
    %c1_767 = arith.constant 1 : index
    %c5_768 = arith.constant 5 : index
    %c0_769 = arith.constant 0 : index
    %c0_770 = arith.constant 0 : index
    %550 = vector.load %arg1[%c3_766, %c1_767, %c5_768, %c0_769, %c0_770] : memref<8x2x9x5x4xf32, #tpu.memory_space<vmem>>, vector<1x1x1x5x4xf32>
    %551 = vector.shape_cast %550 : vector<1x1x1x5x4xf32> to vector<5x4xf32>
    %552 = vector.extract_strided_slice %529 {offsets = [0, 0], sizes = [4, 4], strides = [1, 1]} : vector<5x4xf32> to vector<4x4xf32>
    %553 = vector.extract_strided_slice %531 {offsets = [0, 0], sizes = [4, 4], strides = [1, 1]} : vector<5x4xf32> to vector<4x4xf32>
    %554 = vector.extract_strided_slice %533 {offsets = [0, 0], sizes = [4, 4], strides = [1, 1]} : vector<5x4xf32> to vector<4x4xf32>
    %555 = vector.extract_strided_slice %537 {offsets = [0, 0], sizes = [4, 4], strides = [1, 1]} : vector<5x4xf32> to vector<4x4xf32>
    %556 = vector.extract_strided_slice %539 {offsets = [0, 0], sizes = [4, 4], strides = [1, 1]} : vector<5x4xf32> to vector<4x4xf32>
    %557 = vector.extract_strided_slice %541 {offsets = [0, 0], sizes = [4, 4], strides = [1, 1]} : vector<5x4xf32> to vector<4x4xf32>
    %558 = vector.extract_strided_slice %545 {offsets = [0, 0], sizes = [4, 4], strides = [1, 1]} : vector<5x4xf32> to vector<4x4xf32>
    %559 = vector.extract_strided_slice %547 {offsets = [0, 0], sizes = [4, 4], strides = [1, 1]} : vector<5x4xf32> to vector<4x4xf32>
    %560 = vector.extract_strided_slice %549 {offsets = [0, 0], sizes = [4, 4], strides = [1, 1]} : vector<5x4xf32> to vector<4x4xf32>
    %561 = tpu.concatenate %552, %553, %554, %555, %556, %557, %558, %559, %560 in 1 : vector<4x4xf32>, vector<4x4xf32>, vector<4x4xf32>, vector<4x4xf32>, vector<4x4xf32>, vector<4x4xf32>, vector<4x4xf32>, vector<4x4xf32>, vector<4x4xf32> -> vector<4x36xf32>
    %562 = vector.extract_strided_slice %533 {offsets = [0, 0], sizes = [4, 4], strides = [1, 1]} : vector<5x4xf32> to vector<4x4xf32>
    %563 = vector.extract_strided_slice %535 {offsets = [0, 0], sizes = [4, 4], strides = [1, 1]} : vector<5x4xf32> to vector<4x4xf32>
    %564 = vector.extract_strided_slice %529 {offsets = [1, 0], sizes = [4, 4], strides = [1, 1]} : vector<5x4xf32> to vector<4x4xf32>
    %565 = vector.extract_strided_slice %541 {offsets = [0, 0], sizes = [4, 4], strides = [1, 1]} : vector<5x4xf32> to vector<4x4xf32>
    %566 = vector.extract_strided_slice %543 {offsets = [0, 0], sizes = [4, 4], strides = [1, 1]} : vector<5x4xf32> to vector<4x4xf32>
    %567 = vector.extract_strided_slice %537 {offsets = [1, 0], sizes = [4, 4], strides = [1, 1]} : vector<5x4xf32> to vector<4x4xf32>
    %568 = vector.extract_strided_slice %549 {offsets = [0, 0], sizes = [4, 4], strides = [1, 1]} : vector<5x4xf32> to vector<4x4xf32>
    %569 = vector.extract_strided_slice %551 {offsets = [0, 0], sizes = [4, 4], strides = [1, 1]} : vector<5x4xf32> to vector<4x4xf32>
    %570 = vector.extract_strided_slice %545 {offsets = [1, 0], sizes = [4, 4], strides = [1, 1]} : vector<5x4xf32> to vector<4x4xf32>
    %571 = tpu.concatenate %562, %563, %564, %565, %566, %567, %568, %569, %570 in 1 : vector<4x4xf32>, vector<4x4xf32>, vector<4x4xf32>, vector<4x4xf32>, vector<4x4xf32>, vector<4x4xf32>, vector<4x4xf32>, vector<4x4xf32>, vector<4x4xf32> -> vector<4x36xf32>
    %c0_771 = arith.constant 0 : index
    %c1_772 = arith.constant 1 : index
    %c5_773 = arith.constant 5 : index
    %c0_774 = arith.constant 0 : index
    %c0_775 = arith.constant 0 : index
    %572 = vector.load %arg1[%c0_771, %c1_772, %c5_773, %c0_774, %c0_775] : memref<8x2x9x5x4xf32, #tpu.memory_space<vmem>>, vector<1x1x1x5x4xf32>
    %573 = vector.shape_cast %572 : vector<1x1x1x5x4xf32> to vector<5x4xf32>
    %c1_776 = arith.constant 1 : index
    %c1_777 = arith.constant 1 : index
    %c5_778 = arith.constant 5 : index
    %c0_779 = arith.constant 0 : index
    %c0_780 = arith.constant 0 : index
    %574 = vector.load %arg1[%c1_776, %c1_777, %c5_778, %c0_779, %c0_780] : memref<8x2x9x5x4xf32, #tpu.memory_space<vmem>>, vector<1x1x1x5x4xf32>
    %575 = vector.shape_cast %574 : vector<1x1x1x5x4xf32> to vector<5x4xf32>
    %c2_781 = arith.constant 2 : index
    %c1_782 = arith.constant 1 : index
    %c5_783 = arith.constant 5 : index
    %c0_784 = arith.constant 0 : index
    %c0_785 = arith.constant 0 : index
    %576 = vector.load %arg1[%c2_781, %c1_782, %c5_783, %c0_784, %c0_785] : memref<8x2x9x5x4xf32, #tpu.memory_space<vmem>>, vector<1x1x1x5x4xf32>
    %577 = vector.shape_cast %576 : vector<1x1x1x5x4xf32> to vector<5x4xf32>
    %c3_786 = arith.constant 3 : index
    %c1_787 = arith.constant 1 : index
    %c5_788 = arith.constant 5 : index
    %c0_789 = arith.constant 0 : index
    %c0_790 = arith.constant 0 : index
    %578 = vector.load %arg1[%c3_786, %c1_787, %c5_788, %c0_789, %c0_790] : memref<8x2x9x5x4xf32, #tpu.memory_space<vmem>>, vector<1x1x1x5x4xf32>
    %579 = vector.shape_cast %578 : vector<1x1x1x5x4xf32> to vector<5x4xf32>
    %c4_791 = arith.constant 4 : index
    %c1_792 = arith.constant 1 : index
    %c5_793 = arith.constant 5 : index
    %c0_794 = arith.constant 0 : index
    %c0_795 = arith.constant 0 : index
    %580 = vector.load %arg1[%c4_791, %c1_792, %c5_793, %c0_794, %c0_795] : memref<8x2x9x5x4xf32, #tpu.memory_space<vmem>>, vector<1x1x1x5x4xf32>
    %581 = vector.shape_cast %580 : vector<1x1x1x5x4xf32> to vector<5x4xf32>
    %c5_796 = arith.constant 5 : index
    %c1_797 = arith.constant 1 : index
    %c5_798 = arith.constant 5 : index
    %c0_799 = arith.constant 0 : index
    %c0_800 = arith.constant 0 : index
    %582 = vector.load %arg1[%c5_796, %c1_797, %c5_798, %c0_799, %c0_800] : memref<8x2x9x5x4xf32, #tpu.memory_space<vmem>>, vector<1x1x1x5x4xf32>
    %583 = vector.shape_cast %582 : vector<1x1x1x5x4xf32> to vector<5x4xf32>
    %c6_801 = arith.constant 6 : index
    %c1_802 = arith.constant 1 : index
    %c5_803 = arith.constant 5 : index
    %c0_804 = arith.constant 0 : index
    %c0_805 = arith.constant 0 : index
    %584 = vector.load %arg1[%c6_801, %c1_802, %c5_803, %c0_804, %c0_805] : memref<8x2x9x5x4xf32, #tpu.memory_space<vmem>>, vector<1x1x1x5x4xf32>
    %585 = vector.shape_cast %584 : vector<1x1x1x5x4xf32> to vector<5x4xf32>
    %c7_806 = arith.constant 7 : index
    %c1_807 = arith.constant 1 : index
    %c5_808 = arith.constant 5 : index
    %c0_809 = arith.constant 0 : index
    %c0_810 = arith.constant 0 : index
    %586 = vector.load %arg1[%c7_806, %c1_807, %c5_808, %c0_809, %c0_810] : memref<8x2x9x5x4xf32, #tpu.memory_space<vmem>>, vector<1x1x1x5x4xf32>
    %587 = vector.shape_cast %586 : vector<1x1x1x5x4xf32> to vector<5x4xf32>
    %c0_811 = arith.constant 0 : index
    %c1_812 = arith.constant 1 : index
    %c6_813 = arith.constant 6 : index
    %c0_814 = arith.constant 0 : index
    %c0_815 = arith.constant 0 : index
    %588 = vector.load %arg1[%c0_811, %c1_812, %c6_813, %c0_814, %c0_815] : memref<8x2x9x5x4xf32, #tpu.memory_space<vmem>>, vector<1x1x1x5x4xf32>
    %589 = vector.shape_cast %588 : vector<1x1x1x5x4xf32> to vector<5x4xf32>
    %c1_816 = arith.constant 1 : index
    %c1_817 = arith.constant 1 : index
    %c6_818 = arith.constant 6 : index
    %c0_819 = arith.constant 0 : index
    %c0_820 = arith.constant 0 : index
    %590 = vector.load %arg1[%c1_816, %c1_817, %c6_818, %c0_819, %c0_820] : memref<8x2x9x5x4xf32, #tpu.memory_space<vmem>>, vector<1x1x1x5x4xf32>
    %591 = vector.shape_cast %590 : vector<1x1x1x5x4xf32> to vector<5x4xf32>
    %c2_821 = arith.constant 2 : index
    %c1_822 = arith.constant 1 : index
    %c6_823 = arith.constant 6 : index
    %c0_824 = arith.constant 0 : index
    %c0_825 = arith.constant 0 : index
    %592 = vector.load %arg1[%c2_821, %c1_822, %c6_823, %c0_824, %c0_825] : memref<8x2x9x5x4xf32, #tpu.memory_space<vmem>>, vector<1x1x1x5x4xf32>
    %593 = vector.shape_cast %592 : vector<1x1x1x5x4xf32> to vector<5x4xf32>
    %c3_826 = arith.constant 3 : index
    %c1_827 = arith.constant 1 : index
    %c6_828 = arith.constant 6 : index
    %c0_829 = arith.constant 0 : index
    %c0_830 = arith.constant 0 : index
    %594 = vector.load %arg1[%c3_826, %c1_827, %c6_828, %c0_829, %c0_830] : memref<8x2x9x5x4xf32, #tpu.memory_space<vmem>>, vector<1x1x1x5x4xf32>
    %595 = vector.shape_cast %594 : vector<1x1x1x5x4xf32> to vector<5x4xf32>
    %596 = vector.extract_strided_slice %573 {offsets = [0, 0], sizes = [4, 4], strides = [1, 1]} : vector<5x4xf32> to vector<4x4xf32>
    %597 = vector.extract_strided_slice %575 {offsets = [0, 0], sizes = [4, 4], strides = [1, 1]} : vector<5x4xf32> to vector<4x4xf32>
    %598 = vector.extract_strided_slice %577 {offsets = [0, 0], sizes = [4, 4], strides = [1, 1]} : vector<5x4xf32> to vector<4x4xf32>
    %599 = vector.extract_strided_slice %581 {offsets = [0, 0], sizes = [4, 4], strides = [1, 1]} : vector<5x4xf32> to vector<4x4xf32>
    %600 = vector.extract_strided_slice %583 {offsets = [0, 0], sizes = [4, 4], strides = [1, 1]} : vector<5x4xf32> to vector<4x4xf32>
    %601 = vector.extract_strided_slice %585 {offsets = [0, 0], sizes = [4, 4], strides = [1, 1]} : vector<5x4xf32> to vector<4x4xf32>
    %602 = vector.extract_strided_slice %589 {offsets = [0, 0], sizes = [4, 4], strides = [1, 1]} : vector<5x4xf32> to vector<4x4xf32>
    %603 = vector.extract_strided_slice %591 {offsets = [0, 0], sizes = [4, 4], strides = [1, 1]} : vector<5x4xf32> to vector<4x4xf32>
    %604 = vector.extract_strided_slice %593 {offsets = [0, 0], sizes = [4, 4], strides = [1, 1]} : vector<5x4xf32> to vector<4x4xf32>
    %605 = tpu.concatenate %596, %597, %598, %599, %600, %601, %602, %603, %604 in 1 : vector<4x4xf32>, vector<4x4xf32>, vector<4x4xf32>, vector<4x4xf32>, vector<4x4xf32>, vector<4x4xf32>, vector<4x4xf32>, vector<4x4xf32>, vector<4x4xf32> -> vector<4x36xf32>
    %606 = vector.extract_strided_slice %577 {offsets = [0, 0], sizes = [4, 4], strides = [1, 1]} : vector<5x4xf32> to vector<4x4xf32>
    %607 = vector.extract_strided_slice %579 {offsets = [0, 0], sizes = [4, 4], strides = [1, 1]} : vector<5x4xf32> to vector<4x4xf32>
    %608 = vector.extract_strided_slice %573 {offsets = [1, 0], sizes = [4, 4], strides = [1, 1]} : vector<5x4xf32> to vector<4x4xf32>
    %609 = vector.extract_strided_slice %585 {offsets = [0, 0], sizes = [4, 4], strides = [1, 1]} : vector<5x4xf32> to vector<4x4xf32>
    %610 = vector.extract_strided_slice %587 {offsets = [0, 0], sizes = [4, 4], strides = [1, 1]} : vector<5x4xf32> to vector<4x4xf32>
    %611 = vector.extract_strided_slice %581 {offsets = [1, 0], sizes = [4, 4], strides = [1, 1]} : vector<5x4xf32> to vector<4x4xf32>
    %612 = vector.extract_strided_slice %593 {offsets = [0, 0], sizes = [4, 4], strides = [1, 1]} : vector<5x4xf32> to vector<4x4xf32>
    %613 = vector.extract_strided_slice %595 {offsets = [0, 0], sizes = [4, 4], strides = [1, 1]} : vector<5x4xf32> to vector<4x4xf32>
    %614 = vector.extract_strided_slice %589 {offsets = [1, 0], sizes = [4, 4], strides = [1, 1]} : vector<5x4xf32> to vector<4x4xf32>
    %615 = tpu.concatenate %606, %607, %608, %609, %610, %611, %612, %613, %614 in 1 : vector<4x4xf32>, vector<4x4xf32>, vector<4x4xf32>, vector<4x4xf32>, vector<4x4xf32>, vector<4x4xf32>, vector<4x4xf32>, vector<4x4xf32>, vector<4x4xf32> -> vector<4x36xf32>
    %c0_831 = arith.constant 0 : index
    %c1_832 = arith.constant 1 : index
    %c6_833 = arith.constant 6 : index
    %c0_834 = arith.constant 0 : index
    %c0_835 = arith.constant 0 : index
    %616 = vector.load %arg1[%c0_831, %c1_832, %c6_833, %c0_834, %c0_835] : memref<8x2x9x5x4xf32, #tpu.memory_space<vmem>>, vector<1x1x1x5x4xf32>
    %617 = vector.shape_cast %616 : vector<1x1x1x5x4xf32> to vector<5x4xf32>
    %c1_836 = arith.constant 1 : index
    %c1_837 = arith.constant 1 : index
    %c6_838 = arith.constant 6 : index
    %c0_839 = arith.constant 0 : index
    %c0_840 = arith.constant 0 : index
    %618 = vector.load %arg1[%c1_836, %c1_837, %c6_838, %c0_839, %c0_840] : memref<8x2x9x5x4xf32, #tpu.memory_space<vmem>>, vector<1x1x1x5x4xf32>
    %619 = vector.shape_cast %618 : vector<1x1x1x5x4xf32> to vector<5x4xf32>
    %c2_841 = arith.constant 2 : index
    %c1_842 = arith.constant 1 : index
    %c6_843 = arith.constant 6 : index
    %c0_844 = arith.constant 0 : index
    %c0_845 = arith.constant 0 : index
    %620 = vector.load %arg1[%c2_841, %c1_842, %c6_843, %c0_844, %c0_845] : memref<8x2x9x5x4xf32, #tpu.memory_space<vmem>>, vector<1x1x1x5x4xf32>
    %621 = vector.shape_cast %620 : vector<1x1x1x5x4xf32> to vector<5x4xf32>
    %c3_846 = arith.constant 3 : index
    %c1_847 = arith.constant 1 : index
    %c6_848 = arith.constant 6 : index
    %c0_849 = arith.constant 0 : index
    %c0_850 = arith.constant 0 : index
    %622 = vector.load %arg1[%c3_846, %c1_847, %c6_848, %c0_849, %c0_850] : memref<8x2x9x5x4xf32, #tpu.memory_space<vmem>>, vector<1x1x1x5x4xf32>
    %623 = vector.shape_cast %622 : vector<1x1x1x5x4xf32> to vector<5x4xf32>
    %c4_851 = arith.constant 4 : index
    %c1_852 = arith.constant 1 : index
    %c6_853 = arith.constant 6 : index
    %c0_854 = arith.constant 0 : index
    %c0_855 = arith.constant 0 : index
    %624 = vector.load %arg1[%c4_851, %c1_852, %c6_853, %c0_854, %c0_855] : memref<8x2x9x5x4xf32, #tpu.memory_space<vmem>>, vector<1x1x1x5x4xf32>
    %625 = vector.shape_cast %624 : vector<1x1x1x5x4xf32> to vector<5x4xf32>
    %c5_856 = arith.constant 5 : index
    %c1_857 = arith.constant 1 : index
    %c6_858 = arith.constant 6 : index
    %c0_859 = arith.constant 0 : index
    %c0_860 = arith.constant 0 : index
    %626 = vector.load %arg1[%c5_856, %c1_857, %c6_858, %c0_859, %c0_860] : memref<8x2x9x5x4xf32, #tpu.memory_space<vmem>>, vector<1x1x1x5x4xf32>
    %627 = vector.shape_cast %626 : vector<1x1x1x5x4xf32> to vector<5x4xf32>
    %c6_861 = arith.constant 6 : index
    %c1_862 = arith.constant 1 : index
    %c6_863 = arith.constant 6 : index
    %c0_864 = arith.constant 0 : index
    %c0_865 = arith.constant 0 : index
    %628 = vector.load %arg1[%c6_861, %c1_862, %c6_863, %c0_864, %c0_865] : memref<8x2x9x5x4xf32, #tpu.memory_space<vmem>>, vector<1x1x1x5x4xf32>
    %629 = vector.shape_cast %628 : vector<1x1x1x5x4xf32> to vector<5x4xf32>
    %c7_866 = arith.constant 7 : index
    %c1_867 = arith.constant 1 : index
    %c6_868 = arith.constant 6 : index
    %c0_869 = arith.constant 0 : index
    %c0_870 = arith.constant 0 : index
    %630 = vector.load %arg1[%c7_866, %c1_867, %c6_868, %c0_869, %c0_870] : memref<8x2x9x5x4xf32, #tpu.memory_space<vmem>>, vector<1x1x1x5x4xf32>
    %631 = vector.shape_cast %630 : vector<1x1x1x5x4xf32> to vector<5x4xf32>
    %c0_871 = arith.constant 0 : index
    %c1_872 = arith.constant 1 : index
    %c7_873 = arith.constant 7 : index
    %c0_874 = arith.constant 0 : index
    %c0_875 = arith.constant 0 : index
    %632 = vector.load %arg1[%c0_871, %c1_872, %c7_873, %c0_874, %c0_875] : memref<8x2x9x5x4xf32, #tpu.memory_space<vmem>>, vector<1x1x1x5x4xf32>
    %633 = vector.shape_cast %632 : vector<1x1x1x5x4xf32> to vector<5x4xf32>
    %c1_876 = arith.constant 1 : index
    %c1_877 = arith.constant 1 : index
    %c7_878 = arith.constant 7 : index
    %c0_879 = arith.constant 0 : index
    %c0_880 = arith.constant 0 : index
    %634 = vector.load %arg1[%c1_876, %c1_877, %c7_878, %c0_879, %c0_880] : memref<8x2x9x5x4xf32, #tpu.memory_space<vmem>>, vector<1x1x1x5x4xf32>
    %635 = vector.shape_cast %634 : vector<1x1x1x5x4xf32> to vector<5x4xf32>
    %c2_881 = arith.constant 2 : index
    %c1_882 = arith.constant 1 : index
    %c7_883 = arith.constant 7 : index
    %c0_884 = arith.constant 0 : index
    %c0_885 = arith.constant 0 : index
    %636 = vector.load %arg1[%c2_881, %c1_882, %c7_883, %c0_884, %c0_885] : memref<8x2x9x5x4xf32, #tpu.memory_space<vmem>>, vector<1x1x1x5x4xf32>
    %637 = vector.shape_cast %636 : vector<1x1x1x5x4xf32> to vector<5x4xf32>
    %c3_886 = arith.constant 3 : index
    %c1_887 = arith.constant 1 : index
    %c7_888 = arith.constant 7 : index
    %c0_889 = arith.constant 0 : index
    %c0_890 = arith.constant 0 : index
    %638 = vector.load %arg1[%c3_886, %c1_887, %c7_888, %c0_889, %c0_890] : memref<8x2x9x5x4xf32, #tpu.memory_space<vmem>>, vector<1x1x1x5x4xf32>
    %639 = vector.shape_cast %638 : vector<1x1x1x5x4xf32> to vector<5x4xf32>
    %640 = vector.extract_strided_slice %617 {offsets = [0, 0], sizes = [4, 4], strides = [1, 1]} : vector<5x4xf32> to vector<4x4xf32>
    %641 = vector.extract_strided_slice %619 {offsets = [0, 0], sizes = [4, 4], strides = [1, 1]} : vector<5x4xf32> to vector<4x4xf32>
    %642 = vector.extract_strided_slice %621 {offsets = [0, 0], sizes = [4, 4], strides = [1, 1]} : vector<5x4xf32> to vector<4x4xf32>
    %643 = vector.extract_strided_slice %625 {offsets = [0, 0], sizes = [4, 4], strides = [1, 1]} : vector<5x4xf32> to vector<4x4xf32>
    %644 = vector.extract_strided_slice %627 {offsets = [0, 0], sizes = [4, 4], strides = [1, 1]} : vector<5x4xf32> to vector<4x4xf32>
    %645 = vector.extract_strided_slice %629 {offsets = [0, 0], sizes = [4, 4], strides = [1, 1]} : vector<5x4xf32> to vector<4x4xf32>
    %646 = vector.extract_strided_slice %633 {offsets = [0, 0], sizes = [4, 4], strides = [1, 1]} : vector<5x4xf32> to vector<4x4xf32>
    %647 = vector.extract_strided_slice %635 {offsets = [0, 0], sizes = [4, 4], strides = [1, 1]} : vector<5x4xf32> to vector<4x4xf32>
    %648 = vector.extract_strided_slice %637 {offsets = [0, 0], sizes = [4, 4], strides = [1, 1]} : vector<5x4xf32> to vector<4x4xf32>
    %649 = tpu.concatenate %640, %641, %642, %643, %644, %645, %646, %647, %648 in 1 : vector<4x4xf32>, vector<4x4xf32>, vector<4x4xf32>, vector<4x4xf32>, vector<4x4xf32>, vector<4x4xf32>, vector<4x4xf32>, vector<4x4xf32>, vector<4x4xf32> -> vector<4x36xf32>
    %650 = vector.extract_strided_slice %621 {offsets = [0, 0], sizes = [4, 4], strides = [1, 1]} : vector<5x4xf32> to vector<4x4xf32>
    %651 = vector.extract_strided_slice %623 {offsets = [0, 0], sizes = [4, 4], strides = [1, 1]} : vector<5x4xf32> to vector<4x4xf32>
    %652 = vector.extract_strided_slice %617 {offsets = [1, 0], sizes = [4, 4], strides = [1, 1]} : vector<5x4xf32> to vector<4x4xf32>
    %653 = vector.extract_strided_slice %629 {offsets = [0, 0], sizes = [4, 4], strides = [1, 1]} : vector<5x4xf32> to vector<4x4xf32>
    %654 = vector.extract_strided_slice %631 {offsets = [0, 0], sizes = [4, 4], strides = [1, 1]} : vector<5x4xf32> to vector<4x4xf32>
    %655 = vector.extract_strided_slice %625 {offsets = [1, 0], sizes = [4, 4], strides = [1, 1]} : vector<5x4xf32> to vector<4x4xf32>
    %656 = vector.extract_strided_slice %637 {offsets = [0, 0], sizes = [4, 4], strides = [1, 1]} : vector<5x4xf32> to vector<4x4xf32>
    %657 = vector.extract_strided_slice %639 {offsets = [0, 0], sizes = [4, 4], strides = [1, 1]} : vector<5x4xf32> to vector<4x4xf32>
    %658 = vector.extract_strided_slice %633 {offsets = [1, 0], sizes = [4, 4], strides = [1, 1]} : vector<5x4xf32> to vector<4x4xf32>
    %659 = tpu.concatenate %650, %651, %652, %653, %654, %655, %656, %657, %658 in 1 : vector<4x4xf32>, vector<4x4xf32>, vector<4x4xf32>, vector<4x4xf32>, vector<4x4xf32>, vector<4x4xf32>, vector<4x4xf32>, vector<4x4xf32>, vector<4x4xf32> -> vector<4x36xf32>
    %c0_891 = arith.constant 0 : index
    %c1_892 = arith.constant 1 : index
    %c7_893 = arith.constant 7 : index
    %c0_894 = arith.constant 0 : index
    %c0_895 = arith.constant 0 : index
    %660 = vector.load %arg1[%c0_891, %c1_892, %c7_893, %c0_894, %c0_895] : memref<8x2x9x5x4xf32, #tpu.memory_space<vmem>>, vector<1x1x1x5x4xf32>
    %661 = vector.shape_cast %660 : vector<1x1x1x5x4xf32> to vector<5x4xf32>
    %c1_896 = arith.constant 1 : index
    %c1_897 = arith.constant 1 : index
    %c7_898 = arith.constant 7 : index
    %c0_899 = arith.constant 0 : index
    %c0_900 = arith.constant 0 : index
    %662 = vector.load %arg1[%c1_896, %c1_897, %c7_898, %c0_899, %c0_900] : memref<8x2x9x5x4xf32, #tpu.memory_space<vmem>>, vector<1x1x1x5x4xf32>
    %663 = vector.shape_cast %662 : vector<1x1x1x5x4xf32> to vector<5x4xf32>
    %c2_901 = arith.constant 2 : index
    %c1_902 = arith.constant 1 : index
    %c7_903 = arith.constant 7 : index
    %c0_904 = arith.constant 0 : index
    %c0_905 = arith.constant 0 : index
    %664 = vector.load %arg1[%c2_901, %c1_902, %c7_903, %c0_904, %c0_905] : memref<8x2x9x5x4xf32, #tpu.memory_space<vmem>>, vector<1x1x1x5x4xf32>
    %665 = vector.shape_cast %664 : vector<1x1x1x5x4xf32> to vector<5x4xf32>
    %c3_906 = arith.constant 3 : index
    %c1_907 = arith.constant 1 : index
    %c7_908 = arith.constant 7 : index
    %c0_909 = arith.constant 0 : index
    %c0_910 = arith.constant 0 : index
    %666 = vector.load %arg1[%c3_906, %c1_907, %c7_908, %c0_909, %c0_910] : memref<8x2x9x5x4xf32, #tpu.memory_space<vmem>>, vector<1x1x1x5x4xf32>
    %667 = vector.shape_cast %666 : vector<1x1x1x5x4xf32> to vector<5x4xf32>
    %c4_911 = arith.constant 4 : index
    %c1_912 = arith.constant 1 : index
    %c7_913 = arith.constant 7 : index
    %c0_914 = arith.constant 0 : index
    %c0_915 = arith.constant 0 : index
    %668 = vector.load %arg1[%c4_911, %c1_912, %c7_913, %c0_914, %c0_915] : memref<8x2x9x5x4xf32, #tpu.memory_space<vmem>>, vector<1x1x1x5x4xf32>
    %669 = vector.shape_cast %668 : vector<1x1x1x5x4xf32> to vector<5x4xf32>
    %c5_916 = arith.constant 5 : index
    %c1_917 = arith.constant 1 : index
    %c7_918 = arith.constant 7 : index
    %c0_919 = arith.constant 0 : index
    %c0_920 = arith.constant 0 : index
    %670 = vector.load %arg1[%c5_916, %c1_917, %c7_918, %c0_919, %c0_920] : memref<8x2x9x5x4xf32, #tpu.memory_space<vmem>>, vector<1x1x1x5x4xf32>
    %671 = vector.shape_cast %670 : vector<1x1x1x5x4xf32> to vector<5x4xf32>
    %c6_921 = arith.constant 6 : index
    %c1_922 = arith.constant 1 : index
    %c7_923 = arith.constant 7 : index
    %c0_924 = arith.constant 0 : index
    %c0_925 = arith.constant 0 : index
    %672 = vector.load %arg1[%c6_921, %c1_922, %c7_923, %c0_924, %c0_925] : memref<8x2x9x5x4xf32, #tpu.memory_space<vmem>>, vector<1x1x1x5x4xf32>
    %673 = vector.shape_cast %672 : vector<1x1x1x5x4xf32> to vector<5x4xf32>
    %c7_926 = arith.constant 7 : index
    %c1_927 = arith.constant 1 : index
    %c7_928 = arith.constant 7 : index
    %c0_929 = arith.constant 0 : index
    %c0_930 = arith.constant 0 : index
    %674 = vector.load %arg1[%c7_926, %c1_927, %c7_928, %c0_929, %c0_930] : memref<8x2x9x5x4xf32, #tpu.memory_space<vmem>>, vector<1x1x1x5x4xf32>
    %675 = vector.shape_cast %674 : vector<1x1x1x5x4xf32> to vector<5x4xf32>
    %c0_931 = arith.constant 0 : index
    %c1_932 = arith.constant 1 : index
    %c8_933 = arith.constant 8 : index
    %c0_934 = arith.constant 0 : index
    %c0_935 = arith.constant 0 : index
    %676 = vector.load %arg1[%c0_931, %c1_932, %c8_933, %c0_934, %c0_935] : memref<8x2x9x5x4xf32, #tpu.memory_space<vmem>>, vector<1x1x1x5x4xf32>
    %677 = vector.shape_cast %676 : vector<1x1x1x5x4xf32> to vector<5x4xf32>
    %c1_936 = arith.constant 1 : index
    %c1_937 = arith.constant 1 : index
    %c8_938 = arith.constant 8 : index
    %c0_939 = arith.constant 0 : index
    %c0_940 = arith.constant 0 : index
    %678 = vector.load %arg1[%c1_936, %c1_937, %c8_938, %c0_939, %c0_940] : memref<8x2x9x5x4xf32, #tpu.memory_space<vmem>>, vector<1x1x1x5x4xf32>
    %679 = vector.shape_cast %678 : vector<1x1x1x5x4xf32> to vector<5x4xf32>
    %c2_941 = arith.constant 2 : index
    %c1_942 = arith.constant 1 : index
    %c8_943 = arith.constant 8 : index
    %c0_944 = arith.constant 0 : index
    %c0_945 = arith.constant 0 : index
    %680 = vector.load %arg1[%c2_941, %c1_942, %c8_943, %c0_944, %c0_945] : memref<8x2x9x5x4xf32, #tpu.memory_space<vmem>>, vector<1x1x1x5x4xf32>
    %681 = vector.shape_cast %680 : vector<1x1x1x5x4xf32> to vector<5x4xf32>
    %c3_946 = arith.constant 3 : index
    %c1_947 = arith.constant 1 : index
    %c8_948 = arith.constant 8 : index
    %c0_949 = arith.constant 0 : index
    %c0_950 = arith.constant 0 : index
    %682 = vector.load %arg1[%c3_946, %c1_947, %c8_948, %c0_949, %c0_950] : memref<8x2x9x5x4xf32, #tpu.memory_space<vmem>>, vector<1x1x1x5x4xf32>
    %683 = vector.shape_cast %682 : vector<1x1x1x5x4xf32> to vector<5x4xf32>
    %684 = vector.extract_strided_slice %661 {offsets = [0, 0], sizes = [4, 4], strides = [1, 1]} : vector<5x4xf32> to vector<4x4xf32>
    %685 = vector.extract_strided_slice %663 {offsets = [0, 0], sizes = [4, 4], strides = [1, 1]} : vector<5x4xf32> to vector<4x4xf32>
    %686 = vector.extract_strided_slice %665 {offsets = [0, 0], sizes = [4, 4], strides = [1, 1]} : vector<5x4xf32> to vector<4x4xf32>
    %687 = vector.extract_strided_slice %669 {offsets = [0, 0], sizes = [4, 4], strides = [1, 1]} : vector<5x4xf32> to vector<4x4xf32>
    %688 = vector.extract_strided_slice %671 {offsets = [0, 0], sizes = [4, 4], strides = [1, 1]} : vector<5x4xf32> to vector<4x4xf32>
    %689 = vector.extract_strided_slice %673 {offsets = [0, 0], sizes = [4, 4], strides = [1, 1]} : vector<5x4xf32> to vector<4x4xf32>
    %690 = vector.extract_strided_slice %677 {offsets = [0, 0], sizes = [4, 4], strides = [1, 1]} : vector<5x4xf32> to vector<4x4xf32>
    %691 = vector.extract_strided_slice %679 {offsets = [0, 0], sizes = [4, 4], strides = [1, 1]} : vector<5x4xf32> to vector<4x4xf32>
    %692 = vector.extract_strided_slice %681 {offsets = [0, 0], sizes = [4, 4], strides = [1, 1]} : vector<5x4xf32> to vector<4x4xf32>
    %693 = tpu.concatenate %684, %685, %686, %687, %688, %689, %690, %691, %692 in 1 : vector<4x4xf32>, vector<4x4xf32>, vector<4x4xf32>, vector<4x4xf32>, vector<4x4xf32>, vector<4x4xf32>, vector<4x4xf32>, vector<4x4xf32>, vector<4x4xf32> -> vector<4x36xf32>
    %694 = vector.extract_strided_slice %665 {offsets = [0, 0], sizes = [4, 4], strides = [1, 1]} : vector<5x4xf32> to vector<4x4xf32>
    %695 = vector.extract_strided_slice %667 {offsets = [0, 0], sizes = [4, 4], strides = [1, 1]} : vector<5x4xf32> to vector<4x4xf32>
    %696 = vector.extract_strided_slice %661 {offsets = [1, 0], sizes = [4, 4], strides = [1, 1]} : vector<5x4xf32> to vector<4x4xf32>
    %697 = vector.extract_strided_slice %673 {offsets = [0, 0], sizes = [4, 4], strides = [1, 1]} : vector<5x4xf32> to vector<4x4xf32>
    %698 = vector.extract_strided_slice %675 {offsets = [0, 0], sizes = [4, 4], strides = [1, 1]} : vector<5x4xf32> to vector<4x4xf32>
    %699 = vector.extract_strided_slice %669 {offsets = [1, 0], sizes = [4, 4], strides = [1, 1]} : vector<5x4xf32> to vector<4x4xf32>
    %700 = vector.extract_strided_slice %681 {offsets = [0, 0], sizes = [4, 4], strides = [1, 1]} : vector<5x4xf32> to vector<4x4xf32>
    %701 = vector.extract_strided_slice %683 {offsets = [0, 0], sizes = [4, 4], strides = [1, 1]} : vector<5x4xf32> to vector<4x4xf32>
    %702 = vector.extract_strided_slice %677 {offsets = [1, 0], sizes = [4, 4], strides = [1, 1]} : vector<5x4xf32> to vector<4x4xf32>
    %703 = tpu.concatenate %694, %695, %696, %697, %698, %699, %700, %701, %702 in 1 : vector<4x4xf32>, vector<4x4xf32>, vector<4x4xf32>, vector<4x4xf32>, vector<4x4xf32>, vector<4x4xf32>, vector<4x4xf32>, vector<4x4xf32>, vector<4x4xf32> -> vector<4x36xf32>
    %704 = tpu.concatenate %33, %43, %77, %87, %121, %131, %165, %175, %209, %219, %253, %263, %297, %307, %341, %351 in 0 : vector<4x36xf32>, vector<4x36xf32>, vector<4x36xf32>, vector<4x36xf32>, vector<4x36xf32>, vector<4x36xf32>, vector<4x36xf32>, vector<4x36xf32>, vector<4x36xf32>, vector<4x36xf32>, vector<4x36xf32>, vector<4x36xf32>, vector<4x36xf32>, vector<4x36xf32>, vector<4x36xf32>, vector<4x36xf32> -> vector<64x36xf32>
    %705 = tpu.concatenate %385, %395, %429, %439, %473, %483, %517, %527, %561, %571, %605, %615, %649, %659, %693, %703 in 0 : vector<4x36xf32>, vector<4x36xf32>, vector<4x36xf32>, vector<4x36xf32>, vector<4x36xf32>, vector<4x36xf32>, vector<4x36xf32>, vector<4x36xf32>, vector<4x36xf32>, vector<4x36xf32>, vector<4x36xf32>, vector<4x36xf32>, vector<4x36xf32>, vector<4x36xf32>, vector<4x36xf32>, vector<4x36xf32> -> vector<64x36xf32>
    %706 = tpu.concatenate %704, %705 in 0 : vector<64x36xf32>, vector<64x36xf32> -> vector<128x36xf32>
    %c0_951 = arith.constant 0 : index
    %c0_952 = arith.constant 0 : index
    %707 = vector.load %arg2[%c0_951, %c0_952] : memref<36x8xf32, #tpu.memory_space<vmem>>, vector<36x8xf32>
    %cst = arith.constant dense<0.000000e+00> : vector<128x8xf32>
    %708 = tpu.matmul %706, %707, %cst {dimension_numbers = #tpu.dot_dimension_numbers<[1], [0], [0], [1], [0, 0, 1, 1], [], []>} : vector<128x36xf32>, vector<36x8xf32>, vector<128x8xf32> -> vector<128x8xf32>
    %c0_953 = arith.constant 0 : index
    %c0_954 = arith.constant 0 : index
    %709 = vector.load %arg3[%c0_953, %c0_954] : memref<1x8xf32, #tpu.memory_space<vmem>>, vector<1x8xf32>
    %710 = vector.broadcast %709 : vector<1x8xf32> to vector<128x8xf32>
    %711 = arith.addf %708, %710 : vector<128x8xf32>
    %cst_955 = arith.constant 0.000000e+00 : f32
    %712 = vector.broadcast %cst_955 : f32 to vector<128x8xf32>
    %713 = arith.maximumf %711, %712 : vector<128x8xf32>
    %cst_956 = arith.constant 0.000000e+00 : f32
    %714 = vector.broadcast %cst_956 : f32 to vector<1x8xf32>
    %cst_957 = arith.constant 0.000000e+00 : f32
    %715 = vector.broadcast %cst_957 : f32 to vector<4x8xf32>
    %cst_958 = arith.constant 0.000000e+00 : f32
    %716 = vector.broadcast %cst_958 : f32 to vector<4x8xf32>
    %cst_959 = arith.constant 0.000000e+00 : f32
    %717 = vector.broadcast %cst_959 : f32 to vector<4x8xf32>
    %718 = vector.extract_strided_slice %713 {offsets = [4, 0], sizes = [3, 8], strides = [1, 1]} : vector<128x8xf32> to vector<3x8xf32>
    %719 = tpu.concatenate %714, %718 in 0 : vector<1x8xf32>, vector<3x8xf32> -> vector<4x8xf32>
    %720 = vector.extract_strided_slice %713 {offsets = [0, 0], sizes = [4, 8], strides = [1, 1]} : vector<128x8xf32> to vector<4x8xf32>
    %721 = vector.extract_strided_slice %713 {offsets = [4, 0], sizes = [4, 8], strides = [1, 1]} : vector<128x8xf32> to vector<4x8xf32>
    %722 = vector.extract_strided_slice %713 {offsets = [12, 0], sizes = [3, 8], strides = [1, 1]} : vector<128x8xf32> to vector<3x8xf32>
    %723 = tpu.concatenate %714, %722 in 0 : vector<1x8xf32>, vector<3x8xf32> -> vector<4x8xf32>
    %724 = vector.extract_strided_slice %713 {offsets = [8, 0], sizes = [4, 8], strides = [1, 1]} : vector<128x8xf32> to vector<4x8xf32>
    %725 = vector.extract_strided_slice %713 {offsets = [12, 0], sizes = [4, 8], strides = [1, 1]} : vector<128x8xf32> to vector<4x8xf32>
    %726 = tpu.concatenate %715, %716, %717, %719, %720, %721, %723, %724, %725 in 1 : vector<4x8xf32>, vector<4x8xf32>, vector<4x8xf32>, vector<4x8xf32>, vector<4x8xf32>, vector<4x8xf32>, vector<4x8xf32>, vector<4x8xf32>, vector<4x8xf32> -> vector<4x72xf32>
    %727 = vector.extract_strided_slice %713 {offsets = [12, 0], sizes = [3, 8], strides = [1, 1]} : vector<128x8xf32> to vector<3x8xf32>
    %728 = tpu.concatenate %714, %727 in 0 : vector<1x8xf32>, vector<3x8xf32> -> vector<4x8xf32>
    %729 = vector.extract_strided_slice %713 {offsets = [8, 0], sizes = [4, 8], strides = [1, 1]} : vector<128x8xf32> to vector<4x8xf32>
    %730 = vector.extract_strided_slice %713 {offsets = [12, 0], sizes = [4, 8], strides = [1, 1]} : vector<128x8xf32> to vector<4x8xf32>
    %731 = vector.extract_strided_slice %713 {offsets = [20, 0], sizes = [3, 8], strides = [1, 1]} : vector<128x8xf32> to vector<3x8xf32>
    %732 = tpu.concatenate %714, %731 in 0 : vector<1x8xf32>, vector<3x8xf32> -> vector<4x8xf32>
    %733 = vector.extract_strided_slice %713 {offsets = [16, 0], sizes = [4, 8], strides = [1, 1]} : vector<128x8xf32> to vector<4x8xf32>
    %734 = vector.extract_strided_slice %713 {offsets = [20, 0], sizes = [4, 8], strides = [1, 1]} : vector<128x8xf32> to vector<4x8xf32>
    %735 = vector.extract_strided_slice %713 {offsets = [28, 0], sizes = [3, 8], strides = [1, 1]} : vector<128x8xf32> to vector<3x8xf32>
    %736 = tpu.concatenate %714, %735 in 0 : vector<1x8xf32>, vector<3x8xf32> -> vector<4x8xf32>
    %737 = vector.extract_strided_slice %713 {offsets = [24, 0], sizes = [4, 8], strides = [1, 1]} : vector<128x8xf32> to vector<4x8xf32>
    %738 = vector.extract_strided_slice %713 {offsets = [28, 0], sizes = [4, 8], strides = [1, 1]} : vector<128x8xf32> to vector<4x8xf32>
    %739 = tpu.concatenate %728, %729, %730, %732, %733, %734, %736, %737, %738 in 1 : vector<4x8xf32>, vector<4x8xf32>, vector<4x8xf32>, vector<4x8xf32>, vector<4x8xf32>, vector<4x8xf32>, vector<4x8xf32>, vector<4x8xf32>, vector<4x8xf32> -> vector<4x72xf32>
    %740 = vector.extract_strided_slice %713 {offsets = [28, 0], sizes = [3, 8], strides = [1, 1]} : vector<128x8xf32> to vector<3x8xf32>
    %741 = tpu.concatenate %714, %740 in 0 : vector<1x8xf32>, vector<3x8xf32> -> vector<4x8xf32>
    %742 = vector.extract_strided_slice %713 {offsets = [24, 0], sizes = [4, 8], strides = [1, 1]} : vector<128x8xf32> to vector<4x8xf32>
    %743 = vector.extract_strided_slice %713 {offsets = [28, 0], sizes = [4, 8], strides = [1, 1]} : vector<128x8xf32> to vector<4x8xf32>
    %744 = vector.extract_strided_slice %713 {offsets = [36, 0], sizes = [3, 8], strides = [1, 1]} : vector<128x8xf32> to vector<3x8xf32>
    %745 = tpu.concatenate %714, %744 in 0 : vector<1x8xf32>, vector<3x8xf32> -> vector<4x8xf32>
    %746 = vector.extract_strided_slice %713 {offsets = [32, 0], sizes = [4, 8], strides = [1, 1]} : vector<128x8xf32> to vector<4x8xf32>
    %747 = vector.extract_strided_slice %713 {offsets = [36, 0], sizes = [4, 8], strides = [1, 1]} : vector<128x8xf32> to vector<4x8xf32>
    %748 = vector.extract_strided_slice %713 {offsets = [44, 0], sizes = [3, 8], strides = [1, 1]} : vector<128x8xf32> to vector<3x8xf32>
    %749 = tpu.concatenate %714, %748 in 0 : vector<1x8xf32>, vector<3x8xf32> -> vector<4x8xf32>
    %750 = vector.extract_strided_slice %713 {offsets = [40, 0], sizes = [4, 8], strides = [1, 1]} : vector<128x8xf32> to vector<4x8xf32>
    %751 = vector.extract_strided_slice %713 {offsets = [44, 0], sizes = [4, 8], strides = [1, 1]} : vector<128x8xf32> to vector<4x8xf32>
    %752 = tpu.concatenate %741, %742, %743, %745, %746, %747, %749, %750, %751 in 1 : vector<4x8xf32>, vector<4x8xf32>, vector<4x8xf32>, vector<4x8xf32>, vector<4x8xf32>, vector<4x8xf32>, vector<4x8xf32>, vector<4x8xf32>, vector<4x8xf32> -> vector<4x72xf32>
    %753 = vector.extract_strided_slice %713 {offsets = [44, 0], sizes = [3, 8], strides = [1, 1]} : vector<128x8xf32> to vector<3x8xf32>
    %754 = tpu.concatenate %714, %753 in 0 : vector<1x8xf32>, vector<3x8xf32> -> vector<4x8xf32>
    %755 = vector.extract_strided_slice %713 {offsets = [40, 0], sizes = [4, 8], strides = [1, 1]} : vector<128x8xf32> to vector<4x8xf32>
    %756 = vector.extract_strided_slice %713 {offsets = [44, 0], sizes = [4, 8], strides = [1, 1]} : vector<128x8xf32> to vector<4x8xf32>
    %757 = vector.extract_strided_slice %713 {offsets = [52, 0], sizes = [3, 8], strides = [1, 1]} : vector<128x8xf32> to vector<3x8xf32>
    %758 = tpu.concatenate %714, %757 in 0 : vector<1x8xf32>, vector<3x8xf32> -> vector<4x8xf32>
    %759 = vector.extract_strided_slice %713 {offsets = [48, 0], sizes = [4, 8], strides = [1, 1]} : vector<128x8xf32> to vector<4x8xf32>
    %760 = vector.extract_strided_slice %713 {offsets = [52, 0], sizes = [4, 8], strides = [1, 1]} : vector<128x8xf32> to vector<4x8xf32>
    %761 = vector.extract_strided_slice %713 {offsets = [60, 0], sizes = [3, 8], strides = [1, 1]} : vector<128x8xf32> to vector<3x8xf32>
    %762 = tpu.concatenate %714, %761 in 0 : vector<1x8xf32>, vector<3x8xf32> -> vector<4x8xf32>
    %763 = vector.extract_strided_slice %713 {offsets = [56, 0], sizes = [4, 8], strides = [1, 1]} : vector<128x8xf32> to vector<4x8xf32>
    %764 = vector.extract_strided_slice %713 {offsets = [60, 0], sizes = [4, 8], strides = [1, 1]} : vector<128x8xf32> to vector<4x8xf32>
    %765 = tpu.concatenate %754, %755, %756, %758, %759, %760, %762, %763, %764 in 1 : vector<4x8xf32>, vector<4x8xf32>, vector<4x8xf32>, vector<4x8xf32>, vector<4x8xf32>, vector<4x8xf32>, vector<4x8xf32>, vector<4x8xf32>, vector<4x8xf32> -> vector<4x72xf32>
    %cst_960 = arith.constant 0.000000e+00 : f32
    %766 = vector.broadcast %cst_960 : f32 to vector<4x8xf32>
    %cst_961 = arith.constant 0.000000e+00 : f32
    %767 = vector.broadcast %cst_961 : f32 to vector<4x8xf32>
    %cst_962 = arith.constant 0.000000e+00 : f32
    %768 = vector.broadcast %cst_962 : f32 to vector<4x8xf32>
    %769 = vector.extract_strided_slice %713 {offsets = [68, 0], sizes = [3, 8], strides = [1, 1]} : vector<128x8xf32> to vector<3x8xf32>
    %770 = tpu.concatenate %714, %769 in 0 : vector<1x8xf32>, vector<3x8xf32> -> vector<4x8xf32>
    %771 = vector.extract_strided_slice %713 {offsets = [64, 0], sizes = [4, 8], strides = [1, 1]} : vector<128x8xf32> to vector<4x8xf32>
    %772 = vector.extract_strided_slice %713 {offsets = [68, 0], sizes = [4, 8], strides = [1, 1]} : vector<128x8xf32> to vector<4x8xf32>
    %773 = vector.extract_strided_slice %713 {offsets = [76, 0], sizes = [3, 8], strides = [1, 1]} : vector<128x8xf32> to vector<3x8xf32>
    %774 = tpu.concatenate %714, %773 in 0 : vector<1x8xf32>, vector<3x8xf32> -> vector<4x8xf32>
    %775 = vector.extract_strided_slice %713 {offsets = [72, 0], sizes = [4, 8], strides = [1, 1]} : vector<128x8xf32> to vector<4x8xf32>
    %776 = vector.extract_strided_slice %713 {offsets = [76, 0], sizes = [4, 8], strides = [1, 1]} : vector<128x8xf32> to vector<4x8xf32>
    %777 = tpu.concatenate %766, %767, %768, %770, %771, %772, %774, %775, %776 in 1 : vector<4x8xf32>, vector<4x8xf32>, vector<4x8xf32>, vector<4x8xf32>, vector<4x8xf32>, vector<4x8xf32>, vector<4x8xf32>, vector<4x8xf32>, vector<4x8xf32> -> vector<4x72xf32>
    %778 = vector.extract_strided_slice %713 {offsets = [76, 0], sizes = [3, 8], strides = [1, 1]} : vector<128x8xf32> to vector<3x8xf32>
    %779 = tpu.concatenate %714, %778 in 0 : vector<1x8xf32>, vector<3x8xf32> -> vector<4x8xf32>
    %780 = vector.extract_strided_slice %713 {offsets = [72, 0], sizes = [4, 8], strides = [1, 1]} : vector<128x8xf32> to vector<4x8xf32>
    %781 = vector.extract_strided_slice %713 {offsets = [76, 0], sizes = [4, 8], strides = [1, 1]} : vector<128x8xf32> to vector<4x8xf32>
    %782 = vector.extract_strided_slice %713 {offsets = [84, 0], sizes = [3, 8], strides = [1, 1]} : vector<128x8xf32> to vector<3x8xf32>
    %783 = tpu.concatenate %714, %782 in 0 : vector<1x8xf32>, vector<3x8xf32> -> vector<4x8xf32>
    %784 = vector.extract_strided_slice %713 {offsets = [80, 0], sizes = [4, 8], strides = [1, 1]} : vector<128x8xf32> to vector<4x8xf32>
    %785 = vector.extract_strided_slice %713 {offsets = [84, 0], sizes = [4, 8], strides = [1, 1]} : vector<128x8xf32> to vector<4x8xf32>
    %786 = vector.extract_strided_slice %713 {offsets = [92, 0], sizes = [3, 8], strides = [1, 1]} : vector<128x8xf32> to vector<3x8xf32>
    %787 = tpu.concatenate %714, %786 in 0 : vector<1x8xf32>, vector<3x8xf32> -> vector<4x8xf32>
    %788 = vector.extract_strided_slice %713 {offsets = [88, 0], sizes = [4, 8], strides = [1, 1]} : vector<128x8xf32> to vector<4x8xf32>
    %789 = vector.extract_strided_slice %713 {offsets = [92, 0], sizes = [4, 8], strides = [1, 1]} : vector<128x8xf32> to vector<4x8xf32>
    %790 = tpu.concatenate %779, %780, %781, %783, %784, %785, %787, %788, %789 in 1 : vector<4x8xf32>, vector<4x8xf32>, vector<4x8xf32>, vector<4x8xf32>, vector<4x8xf32>, vector<4x8xf32>, vector<4x8xf32>, vector<4x8xf32>, vector<4x8xf32> -> vector<4x72xf32>
    %791 = vector.extract_strided_slice %713 {offsets = [92, 0], sizes = [3, 8], strides = [1, 1]} : vector<128x8xf32> to vector<3x8xf32>
    %792 = tpu.concatenate %714, %791 in 0 : vector<1x8xf32>, vector<3x8xf32> -> vector<4x8xf32>
    %793 = vector.extract_strided_slice %713 {offsets = [88, 0], sizes = [4, 8], strides = [1, 1]} : vector<128x8xf32> to vector<4x8xf32>
    %794 = vector.extract_strided_slice %713 {offsets = [92, 0], sizes = [4, 8], strides = [1, 1]} : vector<128x8xf32> to vector<4x8xf32>
    %795 = vector.extract_strided_slice %713 {offsets = [100, 0], sizes = [3, 8], strides = [1, 1]} : vector<128x8xf32> to vector<3x8xf32>
    %796 = tpu.concatenate %714, %795 in 0 : vector<1x8xf32>, vector<3x8xf32> -> vector<4x8xf32>
    %797 = vector.extract_strided_slice %713 {offsets = [96, 0], sizes = [4, 8], strides = [1, 1]} : vector<128x8xf32> to vector<4x8xf32>
    %798 = vector.extract_strided_slice %713 {offsets = [100, 0], sizes = [4, 8], strides = [1, 1]} : vector<128x8xf32> to vector<4x8xf32>
    %799 = vector.extract_strided_slice %713 {offsets = [108, 0], sizes = [3, 8], strides = [1, 1]} : vector<128x8xf32> to vector<3x8xf32>
    %800 = tpu.concatenate %714, %799 in 0 : vector<1x8xf32>, vector<3x8xf32> -> vector<4x8xf32>
    %801 = vector.extract_strided_slice %713 {offsets = [104, 0], sizes = [4, 8], strides = [1, 1]} : vector<128x8xf32> to vector<4x8xf32>
    %802 = vector.extract_strided_slice %713 {offsets = [108, 0], sizes = [4, 8], strides = [1, 1]} : vector<128x8xf32> to vector<4x8xf32>
    %803 = tpu.concatenate %792, %793, %794, %796, %797, %798, %800, %801, %802 in 1 : vector<4x8xf32>, vector<4x8xf32>, vector<4x8xf32>, vector<4x8xf32>, vector<4x8xf32>, vector<4x8xf32>, vector<4x8xf32>, vector<4x8xf32>, vector<4x8xf32> -> vector<4x72xf32>
    %804 = vector.extract_strided_slice %713 {offsets = [108, 0], sizes = [3, 8], strides = [1, 1]} : vector<128x8xf32> to vector<3x8xf32>
    %805 = tpu.concatenate %714, %804 in 0 : vector<1x8xf32>, vector<3x8xf32> -> vector<4x8xf32>
    %806 = vector.extract_strided_slice %713 {offsets = [104, 0], sizes = [4, 8], strides = [1, 1]} : vector<128x8xf32> to vector<4x8xf32>
    %807 = vector.extract_strided_slice %713 {offsets = [108, 0], sizes = [4, 8], strides = [1, 1]} : vector<128x8xf32> to vector<4x8xf32>
    %808 = vector.extract_strided_slice %713 {offsets = [116, 0], sizes = [3, 8], strides = [1, 1]} : vector<128x8xf32> to vector<3x8xf32>
    %809 = tpu.concatenate %714, %808 in 0 : vector<1x8xf32>, vector<3x8xf32> -> vector<4x8xf32>
    %810 = vector.extract_strided_slice %713 {offsets = [112, 0], sizes = [4, 8], strides = [1, 1]} : vector<128x8xf32> to vector<4x8xf32>
    %811 = vector.extract_strided_slice %713 {offsets = [116, 0], sizes = [4, 8], strides = [1, 1]} : vector<128x8xf32> to vector<4x8xf32>
    %812 = vector.extract_strided_slice %713 {offsets = [124, 0], sizes = [3, 8], strides = [1, 1]} : vector<128x8xf32> to vector<3x8xf32>
    %813 = tpu.concatenate %714, %812 in 0 : vector<1x8xf32>, vector<3x8xf32> -> vector<4x8xf32>
    %814 = vector.extract_strided_slice %713 {offsets = [120, 0], sizes = [4, 8], strides = [1, 1]} : vector<128x8xf32> to vector<4x8xf32>
    %815 = vector.extract_strided_slice %713 {offsets = [124, 0], sizes = [4, 8], strides = [1, 1]} : vector<128x8xf32> to vector<4x8xf32>
    %816 = tpu.concatenate %805, %806, %807, %809, %810, %811, %813, %814, %815 in 1 : vector<4x8xf32>, vector<4x8xf32>, vector<4x8xf32>, vector<4x8xf32>, vector<4x8xf32>, vector<4x8xf32>, vector<4x8xf32>, vector<4x8xf32>, vector<4x8xf32> -> vector<4x72xf32>
    %817 = tpu.concatenate %726, %739, %752, %765, %777, %790, %803, %816 in 0 : vector<4x72xf32>, vector<4x72xf32>, vector<4x72xf32>, vector<4x72xf32>, vector<4x72xf32>, vector<4x72xf32>, vector<4x72xf32>, vector<4x72xf32> -> vector<32x72xf32>
    %c0_963 = arith.constant 0 : index
    %c0_964 = arith.constant 0 : index
    %818 = vector.load %arg4[%c0_963, %c0_964] : memref<72x16xf32, #tpu.memory_space<vmem>>, vector<72x16xf32>
    %cst_965 = arith.constant dense<0.000000e+00> : vector<32x16xf32>
    %819 = tpu.matmul %817, %818, %cst_965 {dimension_numbers = #tpu.dot_dimension_numbers<[1], [0], [0], [1], [0, 0, 1, 1], [], []>} : vector<32x72xf32>, vector<72x16xf32>, vector<32x16xf32> -> vector<32x16xf32>
    %c0_966 = arith.constant 0 : index
    %c0_967 = arith.constant 0 : index
    %820 = vector.load %arg5[%c0_966, %c0_967] : memref<1x16xf32, #tpu.memory_space<vmem>>, vector<1x16xf32>
    %821 = vector.broadcast %820 : vector<1x16xf32> to vector<32x16xf32>
    %822 = arith.addf %819, %821 : vector<32x16xf32>
    %cst_968 = arith.constant 0.000000e+00 : f32
    %823 = vector.broadcast %cst_968 : f32 to vector<32x16xf32>
    %824 = arith.maximumf %822, %823 : vector<32x16xf32>
    %825 = vector.extract_strided_slice %824 {offsets = [0, 0], sizes = [1, 16], strides = [1, 1]} : vector<32x16xf32> to vector<1x16xf32>
    %826 = vector.extract_strided_slice %824 {offsets = [1, 0], sizes = [1, 16], strides = [1, 1]} : vector<32x16xf32> to vector<1x16xf32>
    %827 = vector.extract_strided_slice %824 {offsets = [2, 0], sizes = [1, 16], strides = [1, 1]} : vector<32x16xf32> to vector<1x16xf32>
    %828 = vector.extract_strided_slice %824 {offsets = [3, 0], sizes = [1, 16], strides = [1, 1]} : vector<32x16xf32> to vector<1x16xf32>
    %829 = vector.extract_strided_slice %824 {offsets = [4, 0], sizes = [1, 16], strides = [1, 1]} : vector<32x16xf32> to vector<1x16xf32>
    %830 = vector.extract_strided_slice %824 {offsets = [5, 0], sizes = [1, 16], strides = [1, 1]} : vector<32x16xf32> to vector<1x16xf32>
    %831 = vector.extract_strided_slice %824 {offsets = [6, 0], sizes = [1, 16], strides = [1, 1]} : vector<32x16xf32> to vector<1x16xf32>
    %832 = vector.extract_strided_slice %824 {offsets = [7, 0], sizes = [1, 16], strides = [1, 1]} : vector<32x16xf32> to vector<1x16xf32>
    %833 = vector.extract_strided_slice %824 {offsets = [8, 0], sizes = [1, 16], strides = [1, 1]} : vector<32x16xf32> to vector<1x16xf32>
    %834 = vector.extract_strided_slice %824 {offsets = [9, 0], sizes = [1, 16], strides = [1, 1]} : vector<32x16xf32> to vector<1x16xf32>
    %835 = vector.extract_strided_slice %824 {offsets = [10, 0], sizes = [1, 16], strides = [1, 1]} : vector<32x16xf32> to vector<1x16xf32>
    %836 = vector.extract_strided_slice %824 {offsets = [11, 0], sizes = [1, 16], strides = [1, 1]} : vector<32x16xf32> to vector<1x16xf32>
    %837 = vector.extract_strided_slice %824 {offsets = [12, 0], sizes = [1, 16], strides = [1, 1]} : vector<32x16xf32> to vector<1x16xf32>
    %838 = vector.extract_strided_slice %824 {offsets = [13, 0], sizes = [1, 16], strides = [1, 1]} : vector<32x16xf32> to vector<1x16xf32>
    %839 = vector.extract_strided_slice %824 {offsets = [14, 0], sizes = [1, 16], strides = [1, 1]} : vector<32x16xf32> to vector<1x16xf32>
    %840 = vector.extract_strided_slice %824 {offsets = [15, 0], sizes = [1, 16], strides = [1, 1]} : vector<32x16xf32> to vector<1x16xf32>
    %841 = tpu.concatenate %825, %826, %827, %828, %829, %830, %831, %832, %833, %834, %835, %836, %837, %838, %839, %840 in 1 : vector<1x16xf32>, vector<1x16xf32>, vector<1x16xf32>, vector<1x16xf32>, vector<1x16xf32>, vector<1x16xf32>, vector<1x16xf32>, vector<1x16xf32>, vector<1x16xf32>, vector<1x16xf32>, vector<1x16xf32>, vector<1x16xf32>, vector<1x16xf32>, vector<1x16xf32>, vector<1x16xf32>, vector<1x16xf32> -> vector<1x256xf32>
    %842 = vector.extract_strided_slice %824 {offsets = [16, 0], sizes = [1, 16], strides = [1, 1]} : vector<32x16xf32> to vector<1x16xf32>
    %843 = vector.extract_strided_slice %824 {offsets = [17, 0], sizes = [1, 16], strides = [1, 1]} : vector<32x16xf32> to vector<1x16xf32>
    %844 = vector.extract_strided_slice %824 {offsets = [18, 0], sizes = [1, 16], strides = [1, 1]} : vector<32x16xf32> to vector<1x16xf32>
    %845 = vector.extract_strided_slice %824 {offsets = [19, 0], sizes = [1, 16], strides = [1, 1]} : vector<32x16xf32> to vector<1x16xf32>
    %846 = vector.extract_strided_slice %824 {offsets = [20, 0], sizes = [1, 16], strides = [1, 1]} : vector<32x16xf32> to vector<1x16xf32>
    %847 = vector.extract_strided_slice %824 {offsets = [21, 0], sizes = [1, 16], strides = [1, 1]} : vector<32x16xf32> to vector<1x16xf32>
    %848 = vector.extract_strided_slice %824 {offsets = [22, 0], sizes = [1, 16], strides = [1, 1]} : vector<32x16xf32> to vector<1x16xf32>
    %849 = vector.extract_strided_slice %824 {offsets = [23, 0], sizes = [1, 16], strides = [1, 1]} : vector<32x16xf32> to vector<1x16xf32>
    %850 = vector.extract_strided_slice %824 {offsets = [24, 0], sizes = [1, 16], strides = [1, 1]} : vector<32x16xf32> to vector<1x16xf32>
    %851 = vector.extract_strided_slice %824 {offsets = [25, 0], sizes = [1, 16], strides = [1, 1]} : vector<32x16xf32> to vector<1x16xf32>
    %852 = vector.extract_strided_slice %824 {offsets = [26, 0], sizes = [1, 16], strides = [1, 1]} : vector<32x16xf32> to vector<1x16xf32>
    %853 = vector.extract_strided_slice %824 {offsets = [27, 0], sizes = [1, 16], strides = [1, 1]} : vector<32x16xf32> to vector<1x16xf32>
    %854 = vector.extract_strided_slice %824 {offsets = [28, 0], sizes = [1, 16], strides = [1, 1]} : vector<32x16xf32> to vector<1x16xf32>
    %855 = vector.extract_strided_slice %824 {offsets = [29, 0], sizes = [1, 16], strides = [1, 1]} : vector<32x16xf32> to vector<1x16xf32>
    %856 = vector.extract_strided_slice %824 {offsets = [30, 0], sizes = [1, 16], strides = [1, 1]} : vector<32x16xf32> to vector<1x16xf32>
    %857 = vector.extract_strided_slice %824 {offsets = [31, 0], sizes = [1, 16], strides = [1, 1]} : vector<32x16xf32> to vector<1x16xf32>
    %858 = tpu.concatenate %842, %843, %844, %845, %846, %847, %848, %849, %850, %851, %852, %853, %854, %855, %856, %857 in 1 : vector<1x16xf32>, vector<1x16xf32>, vector<1x16xf32>, vector<1x16xf32>, vector<1x16xf32>, vector<1x16xf32>, vector<1x16xf32>, vector<1x16xf32>, vector<1x16xf32>, vector<1x16xf32>, vector<1x16xf32>, vector<1x16xf32>, vector<1x16xf32>, vector<1x16xf32>, vector<1x16xf32>, vector<1x16xf32> -> vector<1x256xf32>
    %859 = tpu.concatenate %841, %858 in 0 : vector<1x256xf32>, vector<1x256xf32> -> vector<2x256xf32>
    %c0_969 = arith.constant 0 : index
    %c0_970 = arith.constant 0 : index
    %860 = vector.load %arg6[%c0_969, %c0_970] : memref<256x32xf32, #tpu.memory_space<vmem>>, vector<256x32xf32>
    %cst_971 = arith.constant dense<0.000000e+00> : vector<2x32xf32>
    %861 = tpu.matmul %859, %860, %cst_971 {dimension_numbers = #tpu.dot_dimension_numbers<[1], [0], [0], [1], [0, 0, 1, 1], [], []>} : vector<2x256xf32>, vector<256x32xf32>, vector<2x32xf32> -> vector<2x32xf32>
    %c0_972 = arith.constant 0 : index
    %c0_973 = arith.constant 0 : index
    %862 = vector.load %arg7[%c0_972, %c0_973] : memref<1x32xf32, #tpu.memory_space<vmem>>, vector<1x32xf32>
    %863 = vector.broadcast %862 : vector<1x32xf32> to vector<2x32xf32>
    %864 = arith.addf %861, %863 : vector<2x32xf32>
    %cst_974 = arith.constant 0.000000e+00 : f32
    %865 = vector.broadcast %cst_974 : f32 to vector<2x32xf32>
    %866 = arith.maximumf %864, %865 : vector<2x32xf32>
    %c0_975 = arith.constant 0 : index
    %c0_976 = arith.constant 0 : index
    %867 = vector.load %arg8[%c0_975, %c0_976] : memref<32x128xf32, #tpu.memory_space<vmem>>, vector<32x128xf32>
    %cst_977 = arith.constant dense<0.000000e+00> : vector<2x128xf32>
    %868 = tpu.matmul %866, %867, %cst_977 {dimension_numbers = #tpu.dot_dimension_numbers<[1], [0], [0], [1], [0, 0, 1, 1], [], []>} : vector<2x32xf32>, vector<32x128xf32>, vector<2x128xf32> -> vector<2x128xf32>
    %c0_978 = arith.constant 0 : index
    %c0_979 = arith.constant 0 : index
    %869 = vector.load %arg9[%c0_978, %c0_979] : memref<1x128xf32, #tpu.memory_space<vmem>>, vector<1x128xf32>
    %870 = vector.broadcast %869 : vector<1x128xf32> to vector<2x128xf32>
    %871 = arith.addf %868, %870 : vector<2x128xf32>
    %c0_980 = arith.constant 0 : index
    %c0_981 = arith.constant 0 : index
    %872 = vector.load %arg10[%c0_980, %c0_981] : memref<2x128xf32, #tpu.memory_space<vmem>>, vector<2x128xf32>
    tpu.vector_store %arg10[%c0_980, %c0_981], %871 {strides = array<i32>} : memref<2x128xf32, #tpu.memory_space<vmem>>, vector<2x128xf32>,
    return
  }
  func.func @transform_0(%arg0: i32) -> (i32, i32, i32, i32, i32) {
    %c0_i32 = arith.constant 0 : i32
    %c0_i32_0 = arith.constant 0 : i32
    %c0_i32_1 = arith.constant 0 : i32
    %c0_i32_2 = arith.constant 0 : i32
    %c0_i32_3 = arith.constant 0 : i32
    return %c0_i32, %arg0, %c0_i32_0, %c0_i32_1, %c0_i32_2 : i32, i32, i32, i32, i32
  }
  func.func @transform_1(%arg0: i32) -> (i32, i32) {
    %c0_i32 = arith.constant 0 : i32
    %c0_i32_0 = arith.constant 0 : i32
    %c0_i32_1 = arith.constant 0 : i32
    return %c0_i32, %c0_i32_0 : i32, i32
  }
  func.func @transform_2(%arg0: i32) -> (i32, i32) {
    %c0_i32 = arith.constant 0 : i32
    %c0_i32_0 = arith.constant 0 : i32
    %c0_i32_1 = arith.constant 0 : i32
    return %c0_i32, %c0_i32_0 : i32, i32
  }
  func.func @transform_3(%arg0: i32) -> (i32, i32) {
    %c0_i32 = arith.constant 0 : i32
    %c0_i32_0 = arith.constant 0 : i32
    %c0_i32_1 = arith.constant 0 : i32
    return %c0_i32, %c0_i32_0 : i32, i32
  }
  func.func @transform_4(%arg0: i32) -> (i32, i32) {
    %c0_i32 = arith.constant 0 : i32
    %c0_i32_0 = arith.constant 0 : i32
    %c0_i32_1 = arith.constant 0 : i32
    return %c0_i32, %c0_i32_0 : i32, i32
  }
  func.func @transform_5(%arg0: i32) -> (i32, i32) {
    %c0_i32 = arith.constant 0 : i32
    %c0_i32_0 = arith.constant 0 : i32
    %c0_i32_1 = arith.constant 0 : i32
    return %c0_i32, %c0_i32_0 : i32, i32
  }
  func.func @transform_6(%arg0: i32) -> (i32, i32) {
    %c0_i32 = arith.constant 0 : i32
    %c0_i32_0 = arith.constant 0 : i32
    %c0_i32_1 = arith.constant 0 : i32
    return %c0_i32, %c0_i32_0 : i32, i32
  }
  func.func @transform_7(%arg0: i32) -> (i32, i32) {
    %c0_i32 = arith.constant 0 : i32
    %c0_i32_0 = arith.constant 0 : i32
    %c0_i32_1 = arith.constant 0 : i32
    return %c0_i32, %c0_i32_0 : i32, i32
  }
  func.func @transform_8(%arg0: i32) -> (i32, i32) {
    %c0_i32 = arith.constant 0 : i32
    %c0_i32_0 = arith.constant 0 : i32
    %c0_i32_1 = arith.constant 0 : i32
    return %c0_i32, %c0_i32_0 : i32, i32
  }
  func.func @transform_9(%arg0: i32) -> (i32, i32) {
    %c0_i32 = arith.constant 0 : i32
    %c0_i32_0 = arith.constant 0 : i32
    return %arg0, %c0_i32 : i32, i32
  }
}

</mosaic_0001>

<bundles_post_ra>
// kernel: vpn_forward.1
= control target key start
LH: loop header
LB: loop body
LE: loop exit
PB: predicated region body
PF: predicated region fallthrough
CT: control target
= control target key end

     0   :  { %s2654_s15 = smov 20   ;;  %s2655_s16 = smov 12   ;;  %vm1529_vm0 = vcmask 1043456   ;;  %vm87_vm1 = vcmask 31744   ;;  %vm89_vm2 = vcmask 64512   ;;  %vm91_vm3 = vcmask 97280   ;;  %s4627_s0 = inlined_call_operand.vmem [shape: f32[8,2,9,5,4], index: 0, kind: input, shape index: {}]   ;;  %s4628_s1 = inlined_call_operand.vmem [shape: f32[36,8], index: 1, kind: input, shape index: {}]   ;;  %s4629_s2 = inlined_call_operand.vmem [shape: f32[1,8], index: 2, kind: input, shape index: {}]   ;;  %s4630_s3 = inlined_call_operand.vmem [shape: f32[72,16], index: 3, kind: input, shape index: {}]   ;;  %s4631_s4 = inlined_call_operand.vmem [shape: f32[1,16], index: 4, kind: input, shape index: {}]   ;;  %s4632_s6 = inlined_call_operand.vmem [shape: f32[1,32], index: 6, kind: input, shape index: {}]   ;;  %s4633_s5 = inlined_call_operand.vmem [shape: f32[256,32], index: 5, kind: input, shape index: {}]   ;;  %s4634_s8 = inlined_call_operand.vmem [shape: f32[1,128], index: 8, kind: input, shape index: {}]   ;;  %s4635_s7 = inlined_call_operand.vmem [shape: f32[32,128], index: 7, kind: input, shape index: {}]   ;;  %s4636_s9 = inlined_call_operand.vmem [shape: f32[2,128], index: 9, kind: output, shape index: {}]  }
   0x1   :  { %v2401_v0 = vld [vmem:[%s4627_s0 + $0x360] sm:$0x1f]  ;;  %v2396_v2 = vld [vmem:[%s4627_s0 + $0x90] sm:$0x1f]  ;;  %s2656_s17 = smov 4   ;;  %s2657_s24 = smov 24  }
   0x2   :  { %v2399_v1 = vld [vmem:[%s4627_s0 + $0x240] sm:$0x1f]  ;;  %72 = vrot.lane.b32.xlu2 %v2401_v0, %s2654_s15  ;;  %56 = vrot.lane.b32.xlu0 %v2396_v2, %s2656_s17  ;;  %v2734_v3 = vld [vmem:[%s4627_s0 + $0x8] sm:$0x1f]  ;;  %s2658_s25 = smov 16   ;;  %s2659_s26 = smov 8  }
   0x3   :  { %64 = vrot.lane.b32.xlu1 %v2399_v1, %s2655_s16  ;;  %v2400_v4 = vld [vmem:[%s4627_s0 + $0x2d0] sm:$0x1f]  ;;  %v2742_v5 = vld [vmem:[%s4627_s0 + $0x120] sm:$0x1f]  ;;  %v2752_v6 = vld [vmem:[%s4627_s0 + $0x128] sm:$0x1f] }
   0x4   :  { %v2398_v7 = vld [vmem:[%s4627_s0 + $0x1b0] sm:$0x1f]  ;;  %v2404_v8 = vld [vmem:[%s4627_s0 + $0x98] sm:$0x1f]  ;;  %s2660_s12 = smov 32   ;;  %s2661_s13 = smov 28  }
   0x5   :  { %v2767_v9 = vld [vmem:[%s4627_s0] sm:$0x1f]  ;;  %v2402_v10 = vld [vmem:[%s4627_s0 + $0x3f0] sm:$0x1f]  ;;  %v119_v12 = vrot.slane %v2399_v1, 1  ;;  %v130_v14 = vrot.slane %v2734_v3, 1 }
   0x6   :  { %v108_v11 = vrot.slane %v2767_v9, 1  ;;  %v2406_v13 = vld [vmem:[%s4627_s0 + $0x1b8] sm:$0x1f]  ;;  %v2409_v16 = vld [vmem:[%s4627_s0 + $0x368] sm:$0x1f]  ;;  %v1572_v43 = vld [vmem:[%s4628_s1 + $0x10] sm:$0xff] }
   0x7   :  { %v2408_v15 = vld [vmem:[%s4627_s0 + $0x2d8] sm:$0x1f]  ;;  %v2407_v17 = vld [vmem:[%s4627_s0 + $0x248] sm:$0x1f]  ;;  %v2412_v18 = vld [vmem:[%s4627_s0 + $0xa0] sm:$0x1f] }
   0x8   :  { %v2806_v19 = vld [vmem:[%s4627_s0 + $0x130] sm:$0x1f]  ;;  %v209_v21 = vrot.slane %v2407_v17, 1  ;;  %v2410_v22 = vld [vmem:[%s4627_s0 + $0x3f8] sm:$0x1f]  ;;  %v1571_v47 = vld [vmem:[%s4628_s1 + $0x8] sm:$0xff] }
   0x9   :  { %v2811_v20 = vld [vmem:[%s4627_s0 + $0x10] sm:$0x1f]  ;;  %v2414_v24 = vld [vmem:[%s4627_s0 + $0x1c0] sm:$0x1f]  ;;  %v2850_v28 = vld [vmem:[%s4627_s0 + $0x18] sm:$0x1f] }
   0xa   :  { %76 = vrot.lane.b32.xlu2 %v2734_v3, %s2657_s24  ;;  %60 = vrot.lane.b32.xlu0 %v2742_v5, %s2659_s26  ;;  %v220_v23 = vrot.slane %v2811_v20, 1  ;;  %v2415_v25 = vld [vmem:[%s4627_s0 + $0x250] sm:$0x1f]  ;;  %v2416_v26 = vld [vmem:[%s4627_s0 + $0x2e0] sm:$0x1f]  ;;  %v310_v39 = vrot.slane %v2850_v28, 1 }
   0xb   :  { %68 = vrot.lane.b32.xlu1 %v2400_v4, %s2658_s25  ;;  %v2420_v29 = vld [vmem:[%s4627_s0 + $0xa8] sm:$0x1f]  ;;  %v2417_v30 = vld [vmem:[%s4627_s0 + $0x370] sm:$0x1f]  ;;  %v2867_v32 = vld [vmem:[%s4627_s0 + $0x138] sm:$0x1f] }
   0xc   :  { %v299_v34 = vrot.slane %v2415_v25, 1  ;;  %v2418_v35 = vld [vmem:[%s4627_s0 + $0x400] sm:$0x1f]  ;;  %v2422_v40 = vld [vmem:[%s4627_s0 + $0x1c8] sm:$0x1f]  ;;  %v1573_v42 = vld [vmem:[%s4628_s1 + $0x18] sm:$0xff] }
   0xd   :  { %v1574_v41 = vld [vmem:[%s4628_s1 + $0x20] sm:$0xf]  ;;  %v2911_v48 = vld [vmem:[%s4627_s0 + $0x258] sm:$0x1f]  ;;  %v2424_v55 = vld [vmem:[%s4627_s0 + $0x2e8] sm:$0x1f] }
   0xe   :  { %2531 = vmatpush.msk.msra.mxu0 %vm1529_vm0, %v1574_v41  ;;  %2553 = vmatpush.msk.msra.mxu2 %vm1529_vm0, %v1574_v41  ;;  %v1570_v49 = vld [vmem:[%s4628_s1] sm:$0xff]  ;;  %v2425_v53 = vld [vmem:[%s4627_s0 + $0x378] sm:$0x1f]  ;;  %vm93_vm4 = vcmask 130048   ;;  %vm95_vm5 = vcmask 162816   ;;  %vm97_vm6 = vcmask 195584  }
   0xf   :  { %2554 = vmatpush.msk.msra.mxu3 %vm1529_vm0, %v1574_v41  ;;  %v2929_v54 = vld [vmem:[%s4627_s0 + $0x20] sm:$0x1f]  ;;  %vm99_vm7 = vcmask 228352   ;;  %vm101_vm8 = vcmask 261120   ;;  %vm1579_vm9 = vcmask 293888   ;;  %vm1715_vm10 = vcmask 1040384  }
  0x10   :  { %1643 = vmatpush.msra.mxu0 %v1573_v42  ;;  %2555 = vmatpush.msra.mxu2 %v1573_v42  ;;  %v2947_v61 = vld [vmem:[%s4627_s0 + $0x140] sm:$0x1f]  ;;  %s2664_s19 = smov 56   ;;  %s2665_s20 = smov 64   ;;  %vm1745_vm11 = vcmask 326656   ;;  %vm1747_vm12 = vcmask 392192  }
  0x11   :  { %2556 = vmatpush.msra.mxu3 %v1573_v42  ;;  %vm1749_vm13 = vcmask 457728   ;;  %vm1751_vm14 = vcmask 523264   ;;  %vm2082_vm15 = vcmask 588800  }
  0x12   :  { %104 = vrot.lane.b32.xlu2 %v2398_v7, %s2656_s17  ;;  %80 = vrot.lane.b32.xlu0 %v2404_v8, %s2661_s13 }
  0x13   :  { %84 = vrot.lane.b32.xlu1 %v2752_v6, %s2660_s12  ;;  %1644 = vmatpush.msra.mxu0 %v1572_v43 }
  0x14   :  { %2557 = vmatpush.msra.mxu2 %v1572_v43  ;;  %2558 = vmatpush.msra.mxu3 %v1572_v43 }
  0x15   :  { %1645 = vmatpush.msra.mxu0 %v1571_v47 }
  0x16   :  { %2559 = vmatpush.msra.mxu2 %v1571_v47  ;;  %2560 = vmatpush.msra.mxu3 %v1571_v47  ;;  %v3030_v47 = vld [vmem:[%s4627_s0 + $0x28] sm:$0x1f] }
  0x17   :  { %1646 = vmatpush.msra.mxu0 %v1570_v49 }
  0x18   :  { %2561 = vmatpush.msra.mxu2 %v1570_v49  ;;  %2562 = vmatpush.msra.mxu3 %v1570_v49 }
  0x1a   :  { %116 = vrot.lane.b32.xlu2 %v2402_v10, %s2658_s25  ;;  %109 = vrot.lane.b32.xlu0 %v108_v11, %s2659_s26  ;;  %v2426_v11 = vld [vmem:[%s4627_s0 + $0x408] sm:$0x1f] }
  0x1b   :  { %112 = vrot.lane.b32.xlu1 %v2401_v0, %s2655_s16  ;;  %v2428_v0 = vld [vmem:[%s4627_s0 + $0xb0] sm:$0x1f] }
  0x22   :  { %127 = vrot.lane.b32.xlu2 %v2406_v13, %s2661_s13  ;;  %120 = vrot.lane.b32.xlu0 %v119_v12, %s2654_s15 }
  0x23   :  { %123 = vrot.lane.b32.xlu1 %v2752_v6, %s2657_s24 }
  0x2a   :  { %161 = vrot.lane.b32.xlu2 %v2752_v6, %s2659_s26  ;;  %131 = vrot.lane.b32.xlu0 %v130_v14, %s2660_s12 }
  0x2b   :  { %158 = vrot.lane.b32.xlu1 %v2404_v8, %s2656_s17 }
  0x32   :  { %173 = vrot.lane.b32.xlu2 %v2409_v16, %s2654_s15  ;;  %165 = vrot.lane.b32.xlu0 %v2407_v17, %s2655_s16 }
  0x33   :  { %169 = vrot.lane.b32.xlu1 %v2408_v15, %s2658_s25 }
  0x3a   :  { %185 = vrot.lane.b32.xlu2 %v2806_v19, %s2660_s12  ;;  %177 = vrot.lane.b32.xlu0 %v2811_v20, %s2657_s24 }
  0x3b   :  { %181 = vrot.lane.b32.xlu1 %v2412_v18, %s2661_s13 }
  0x42   :  { %202 = vrot.lane.b32.xlu2 %v2409_v16, %s2655_s16  ;;  %196 = vrot.lane.b32.xlu0 %v2406_v13, %s2656_s17 }
  0x43   :  { %199 = vrot.lane.b32.xlu1 %v130_v14, %s2659_s26 }
  0x4a   :  { %213 = vrot.lane.b32.xlu2 %v2806_v19, %s2657_s24  ;;  %206 = vrot.lane.b32.xlu0 %v2410_v22, %s2658_s25 }
  0x4b   :  { %210 = vrot.lane.b32.xlu1 %v209_v21, %s2654_s15 }
  0x52   :  { %248 = vrot.lane.b32.xlu2 %v2412_v18, %s2656_s17  ;;  %217 = vrot.lane.b32.xlu0 %v2414_v24, %s2661_s13 }
  0x53   :  { %221 = vrot.lane.b32.xlu1 %v220_v23, %s2660_s12 }
  0x5a   :  { %259 = vrot.lane.b32.xlu2 %v2416_v26, %s2658_s25  ;;  %251 = vrot.lane.b32.xlu0 %v2806_v19, %s2659_s26  ;;  %v2430_v26 = vld [vmem:[%s4627_s0 + $0x1d0] sm:$0x1f] }
  0x5b   :  { %255 = vrot.lane.b32.xlu1 %v2415_v25, %s2655_s16 }
  0x5c   :  { %v2845_v27 = vpop.permute.xlu2 %72 }
  0x62   :  { %271 = vrot.lane.b32.xlu2 %v2420_v29, %s2661_s13  ;;  %263 = vrot.lane.b32.xlu0 %v2417_v30, %s2654_s15 }
  0x63   :  { %267 = vrot.lane.b32.xlu1 %v2850_v28, %s2657_s24 }
  0x64   :  { %v2862_v31 = vpop.permute.xlu2 %76 }
  0x6a   :  { %289 = vrot.lane.b32.xlu2 %v220_v23, %s2659_s26  ;;  %275 = vrot.lane.b32.xlu0 %v2867_v32, %s2660_s12  ;;  %v389_v23 = vrot.slane %v2911_v48, 1 }
  0x6b   :  { %286 = vrot.lane.b32.xlu1 %v2414_v24, %s2656_s17 }
  0x6c   :  { %v105_v33 = vpop.permute.xlu2 %104 }
  0x6d   :  { %v134_v58 = vsel %vm87_vm1, %v2742_v5, %v105_v33  ;;  %v400_v33 = vrot.slane %v2929_v54, 1 }
  0x72   :  { %300 = vrot.lane.b32.xlu2 %v299_v34, %s2654_s15  ;;  %292 = vrot.lane.b32.xlu0 %v2417_v30, %s2655_s16 }
  0x73   :  { %296 = vrot.lane.b32.xlu1 %v2418_v35, %s2658_s25 }
  0x74   :  { %v2879_v37 = vpop.permute.xlu2 %116  ;;  %v57_v38 = vpop.permute.xlu0 %56 }
  0x75   :  { %v65_v36 = vpop.permute.xlu1 %64  ;;  %v88_v60 = vsel %vm87_vm1, %v2767_v9, %v57_v38  ;;  %v2433_v38 = vld [vmem:[%s4627_s0 + $0x380] sm:$0x1f] }
  0x7a   :  { %311 = vrot.lane.b32.xlu2 %v310_v39, %s2660_s12  ;;  %303 = vrot.lane.b32.xlu0 %v2867_v32, %s2657_s24 }
  0x7b   :  { %307 = vrot.lane.b32.xlu1 %v2422_v40, %s2661_s13 }
  0x7c   :  { %v2903_v45 = vpop.permute.xlu2 %127  ;;  %v61_v46 = vpop.permute.xlu0 %60 }
  0x7d   :  { %v69_v44 = vpop.permute.xlu1 %68  ;;  %v90_v62 = vsel %vm89_vm2, %v88_v60, %v61_v46  ;;  %v3025_v46 = vld [vmem:[%s4627_s0 + $0x148] sm:$0x1f] }
  0x7e   :  { %v92_v1 = vsel %vm91_vm3, %v90_v62, %v65_v36 }
  0x7f   :  { %v94_v8 = vsel %vm93_vm4, %v92_v1, %v69_v44  ;;  %v2436_v44 = vld [vmem:[%s4627_s0 + $0xb8] sm:$0x1f] }
  0x80   :  { %v96_v12 = vsel %vm95_vm5, %v94_v8, %v2845_v27  ;;  %v2434_v8 = vld [vmem:[%s4627_s0 + $0x410] sm:$0x1f] }
  0x81   :  { %v98_v14 = vsel %vm97_vm6, %v96_v12, %v2862_v31 }
  0x82   :  { %345 = vrot.lane.b32.xlu2 %v2911_v48, %s2655_s16  ;;  %338 = vrot.lane.b32.xlu0 %v2420_v29, %s2656_s17 }
  0x83   :  { %341 = vrot.lane.b32.xlu1 %v2867_v32, %s2659_s26 }
  0x84   :  { %v2921_v51 = vpop.permute.xlu2 %161  ;;  %v81_v52 = vpop.permute.xlu0 %80 }
  0x85   :  { %v85_v50 = vpop.permute.xlu1 %84  ;;  %v100_v17 = vsel %vm99_vm7, %v98_v14, %v81_v52  ;;  %v490_v14 = vrot.slane %v3030_v47, 1 }
  0x86   :  { %v102_v25 = vsel %vm101_vm8, %v100_v17, %v85_v50 }
  0x8a   :  { %357 = vrot.lane.b32.xlu2 %v2929_v54, %s2657_s24  ;;  %349 = vrot.lane.b32.xlu0 %v2424_v55, %s2658_s25 }
  0x8b   :  { %353 = vrot.lane.b32.xlu1 %v2425_v53, %s2654_s15 }
  0x8c   :  { %v2938_v57 = vpop.permute.xlu2 %173  ;;  %v110_v59 = vpop.permute.xlu0 %109 }
  0x8d   :  { %v113_v56 = vpop.permute.xlu1 %112  ;;  %v135_v63 = vsel %vm89_vm2, %v134_v58, %v110_v59 }
  0x8e   :  { %v136_v2 = vsel %vm91_vm3, %v135_v63, %v113_v56 }
  0x8f   :  { %v137_v9 = vsel %vm93_vm4, %v136_v2, %v2879_v37  ;;  %v2432_v37 = vld [vmem:[%s4627_s0 + $0x2f0] sm:$0x1f] }
  0x92   :  { %376 = vrot.lane.b32.xlu2 %v2422_v40, %s2656_s17  ;;  %361 = vrot.lane.b32.xlu0 %v2428_v0, %s2661_s13 }
  0x93   :  { %365 = vrot.lane.b32.xlu1 %v2947_v61, %s2660_s12 }
  0x94   :  { %v2960_v5 = vpop.permute.xlu2 %185  ;;  %v121_v7 = vpop.permute.xlu0 %120 }
  0x95   :  { %v124_v4 = vpop.permute.xlu1 %123  ;;  %v138_v10 = vsel %vm95_vm5, %v137_v9, %v121_v7 }
  0x96   :  { %v139_v13 = vsel %vm97_vm6, %v138_v10, %v124_v4 }
  0x97   :  { %v140_v18 = vsel %vm99_vm7, %v139_v13, %v2903_v45 }
  0x9a   :  { %386 = vrot.lane.b32.xlu2 %v2426_v11, %s2658_s25  ;;  %379 = vrot.lane.b32.xlu0 %v310_v39, %s2659_s26  ;;  %v2431_v39 = vld [vmem:[%s4627_s0 + $0x260] sm:$0x1f] }
  0x9b   :  { %382 = vrot.lane.b32.xlu1 %v2425_v53, %s2655_s16  ;;  %v479_v2 = vrot.slane %v2431_v39, 1 }
  0x9c   :  { %v203_v16 = vpop.permute.xlu2 %202  ;;  %v132_v21 = vpop.permute.xlu0 %131 }
  0x9d   :  { %v159_v15 = vpop.permute.xlu1 %158  ;;  %v141_v22 = vsel %vm101_vm8, %v140_v18, %v132_v21  ;;  %v2439_v18 = vld [vmem:[%s4627_s0 + $0x268] sm:$0x1f]  ;;  %v2440_v21 = vld [vmem:[%s4627_s0 + $0x2f8] sm:$0x1f] }
  0x9e   :  { %v1506_v24 = vrot.slane %v141_v22, 4  ;;  %v188_v43 = vsel %vm87_vm1, %v2734_v3, %v159_v15 }
  0x9f   :  { %v189_v3 = vsel %vm89_vm2, %v188_v43, %v2921_v51 }
  0xa0   :  { %v1530_v27 = vsel %vm1529_vm0, %v102_v25, %v1506_v24  ;;  %v3090_v25 = vld [vmem:[%s4627_s0 + $0x30] sm:$0x1f] }
  0xa1   :  { %2532 = vmatmul.msk.f32.vlgmr.msra.gmra.mxu0 %vm1579_vm9, %v1530_v27  ;;  %v2441_v27 = vld [vmem:[%s4627_s0 + $0x388] sm:$0x1f] }
  0xa2   :  { %397 = vrot.lane.b32.xlu2 %v2430_v26, %s2661_s13  ;;  %390 = vrot.lane.b32.xlu0 %v389_v23, %s2654_s15 }
  0xa3   :  { %393 = vrot.lane.b32.xlu1 %v2947_v61, %s2657_s24 }
  0xa4   :  { %v214_v30 = vpop.permute.xlu2 %213  ;;  %v166_v31 = vpop.permute.xlu0 %165 }
  0xa5   :  { %v170_v29 = vpop.permute.xlu1 %169 }
  0xaa   :  { %431 = vrot.lane.b32.xlu2 %v2947_v61, %s2659_s26  ;;  %401 = vrot.lane.b32.xlu0 %v400_v33, %s2660_s12 }
  0xab   :  { %428 = vrot.lane.b32.xlu1 %v2428_v0, %s2656_s17 }
  0xac   :  { %v2999_v35 = vpop.permute.xlu2 %248  ;;  %v178_v36 = vpop.permute.xlu0 %177 }
  0xad   :  { %v182_v34 = vpop.permute.xlu1 %181 }
  0xb2   :  { %443 = vrot.lane.b32.xlu2 %v2433_v38, %s2654_s15  ;;  %435 = vrot.lane.b32.xlu0 %v2431_v39, %s2655_s16 }
  0xb3   :  { %439 = vrot.lane.b32.xlu1 %v2432_v37, %s2658_s25 }
  0xb4   :  { %v3013_v41 = vpop.permute.xlu2 %259  ;;  %v197_v42 = vpop.permute.xlu0 %196 }
  0xb5   :  { %v200_v40 = vpop.permute.xlu1 %199  ;;  %v224_v45 = vsel %vm87_vm1, %v2752_v6, %v197_v42  ;;  %v190_v6 = vsel %vm91_vm3, %v189_v3, %v166_v31 }
  0xb6   :  { %v225_v48 = vsel %vm89_vm2, %v224_v45, %v200_v40  ;;  %v191_v51 = vsel %vm93_vm4, %v190_v6, %v170_v29  ;;  %v278_v29 = vsel %vm87_vm1, %v2811_v20, %v2999_v35 }
  0xb7   :  { %v226_v53 = vsel %vm91_vm3, %v225_v48, %v203_v16  ;;  %v192_v56 = vsel %vm95_vm5, %v191_v51, %v2938_v57 }
  0xb8   :  { %v193_v59 = vsel %vm97_vm6, %v192_v56, %v178_v36 }
  0xb9   :  { %v194_v1 = vsel %vm99_vm7, %v193_v59, %v182_v34 }
  0xba   :  { %455 = vrot.lane.b32.xlu2 %v3025_v46, %s2660_s12  ;;  %447 = vrot.lane.b32.xlu0 %v3030_v47, %s2657_s24  ;;  %v195_v9 = vsel %vm101_vm8, %v194_v1, %v2960_v5  ;;  %v2438_v5 = vld [vmem:[%s4627_s0 + $0x1d8] sm:$0x1f] }
  0xbb   :  { %451 = vrot.lane.b32.xlu1 %v2436_v44, %s2661_s13 }
  0xbc   :  { %v3041_v50 = vpop.permute.xlu2 %271  ;;  %v207_v52 = vpop.permute.xlu0 %206 }
  0xbd   :  { %v211_v49 = vpop.permute.xlu1 %210  ;;  %v227_v55 = vsel %vm93_vm4, %v226_v53, %v207_v52 }
  0xbe   :  { %v228_v58 = vsel %vm95_vm5, %v227_v55, %v211_v49  ;;  %v2442_v49 = vld [vmem:[%s4627_s0 + $0x418] sm:$0x1f] }
  0xbf   :  { %v229_v63 = vsel %vm97_vm6, %v228_v58, %v214_v30 }
  0xc2   :  { %472 = vrot.lane.b32.xlu2 %v2433_v38, %s2655_s16  ;;  %466 = vrot.lane.b32.xlu0 %v2430_v26, %s2656_s17  ;;  %v2444_v26 = vld [vmem:[%s4627_s0 + $0xc0] sm:$0x1f] }
  0xc3   :  { %469 = vrot.lane.b32.xlu1 %v400_v33, %s2659_s26 }
  0xc4   :  { %v290_v62 = vpop.permute.xlu2 %289  ;;  %v218_v0 = vpop.permute.xlu0 %217 }
  0xc5   :  { %v222_v60 = vpop.permute.xlu1 %221  ;;  %v230_v57 = vsel %vm99_vm7, %v229_v63, %v218_v0 }
  0xc6   :  { %v231_v4 = vsel %vm101_vm8, %v230_v57, %v222_v60 }
  0xc7   :  { %v1509_v7 = vrot.slane %v231_v4, 4 }
  0xc9   :  { %v1531_v10 = vsel %vm1529_vm0, %v195_v9, %v1509_v7  ;;  %v3170_v9 = vld [vmem:[%s4627_s0 + $0x38] sm:$0x1f] }
  0xca   :  { %483 = vrot.lane.b32.xlu2 %v3025_v46, %s2657_s24  ;;  %476 = vrot.lane.b32.xlu0 %v2434_v8, %s2658_s25  ;;  %v3165_v8 = vld [vmem:[%s4627_s0 + $0x390] sm:$0x1f] }
  0xcb   :  { %480 = vrot.lane.b32.xlu1 %v479_v2, %s2654_s15  ;;  %2533 = vmatmul.msk.f32.gmra.mxu0 %vm1579_vm9, %v1531_v10  ;;  %v3154_v2 = vld [vmem:[%s4627_s0 + $0x270] sm:$0x1f]  ;;  %v2448_v10 = vld [vmem:[%s4627_s0 + $0x300] sm:$0x1f] }
  0xcc   :  { %v301_v12 = vpop.permute.xlu2 %300  ;;  %v252_v13 = vpop.permute.xlu0 %251 }
  0xcd   :  { %v256_v11 = vpop.permute.xlu1 %255  ;;  %v279_v31 = vsel %vm89_vm2, %v278_v29, %v252_v13 }
  0xce   :  { %v280_v20 = vsel %vm91_vm3, %v279_v31, %v256_v11  ;;  %v670_v31 = vrot.slane %v3170_v9, 1 }
  0xcf   :  { %v281_v38 = vsel %vm93_vm4, %v280_v20, %v3013_v41  ;;  %v569_v41 = vrot.slane %v2439_v18, 1 }
  0xd2   :  { %518 = vrot.lane.b32.xlu2 %v2436_v44, %s2656_s17  ;;  %487 = vrot.lane.b32.xlu0 %v2438_v5, %s2661_s13 }
  0xd3   :  { %491 = vrot.lane.b32.xlu1 %v490_v14, %s2660_s12 }
  0xd4   :  { %v312_v16 = vpop.permute.xlu2 %311  ;;  %v264_v17 = vpop.permute.xlu0 %263 }
  0xd5   :  { %v268_v15 = vpop.permute.xlu1 %267  ;;  %v282_v40 = vsel %vm95_vm5, %v281_v38, %v264_v17  ;;  %v3195_v17 = vld [vmem:[%s4627_s0 + $0x1e8] sm:$0x1f] }
  0xd6   :  { %v283_v3 = vsel %vm97_vm6, %v282_v40, %v268_v15  ;;  %v3189_v15 = vld [vmem:[%s4627_s0 + $0x158] sm:$0x1f] }
  0xd7   :  { %v284_v53 = vsel %vm99_vm7, %v283_v3, %v3041_v50  ;;  %v3142_v50 = vld [vmem:[%s4627_s0 + $0x1e0] sm:$0x1f]  ;;  %v2455_v3 = vld [vmem:[%s4627_s0 + $0x278] sm:$0x1f] }
  0xda   :  { %529 = vrot.lane.b32.xlu2 %v2440_v21, %s2658_s25  ;;  %521 = vrot.lane.b32.xlu0 %v3025_v46, %s2659_s26 }
  0xdb   :  { %525 = vrot.lane.b32.xlu1 %v2439_v18, %s2655_s16 }
  0xdc   :  { %v3085_v23 = vpop.permute.xlu2 %345  ;;  %v276_v24 = vpop.permute.xlu0 %275 }
  0xdd   :  { %v287_v22 = vpop.permute.xlu1 %286  ;;  %v285_v55 = vsel %vm101_vm8, %v284_v53, %v276_v24 }
  0xde   :  { %v314_v30 = vsel %vm87_vm1, %v2806_v19, %v287_v22  ;;  %v2445_v19 = vld [vmem:[%s4627_s0 + $0x150] sm:$0x1f] }
  0xdf   :  { %v315_v36 = vsel %vm89_vm2, %v314_v30, %v290_v62  ;;  %v580_v62 = vrot.slane %v3090_v25, 1 }
  0xe2   :  { %541 = vrot.lane.b32.xlu2 %v2444_v26, %s2661_s13  ;;  %533 = vrot.lane.b32.xlu0 %v2441_v27, %s2654_s15 }
  0xe3   :  { %537 = vrot.lane.b32.xlu1 %v3090_v25, %s2657_s24 }
  0xe4   :  { %v3108_v34 = vpop.permute.xlu2 %357  ;;  %v293_v37 = vpop.permute.xlu0 %292 }
  0xe5   :  { %v297_v33 = vpop.permute.xlu1 %296  ;;  %v316_v35 = vsel %vm91_vm3, %v315_v36, %v293_v37 }
  0xe6   :  { %v317_v39 = vsel %vm93_vm4, %v316_v35, %v297_v33  ;;  %v2457_v33 = vld [vmem:[%s4627_s0 + $0x398] sm:$0x1f] }
  0xe7   :  { %v318_v44 = vsel %vm95_vm5, %v317_v39, %v301_v12 }
  0xea   :  { %559 = vrot.lane.b32.xlu2 %v490_v14, %s2659_s26  ;;  %545 = vrot.lane.b32.xlu0 %v2445_v19, %s2660_s12 }
  0xeb   :  { %556 = vrot.lane.b32.xlu1 %v2438_v5, %s2656_s17 }
  0xec   :  { %v377_v43 = vpop.permute.xlu2 %376  ;;  %v304_v45 = vpop.permute.xlu0 %303 }
  0xed   :  { %v308_v42 = vpop.permute.xlu1 %307  ;;  %v319_v48 = vsel %vm97_vm6, %v318_v44, %v304_v45  ;;  %v404_v12 = vsel %vm87_vm1, %v2867_v32, %v377_v43  ;;  %v2452_v32 = vld [vmem:[%s4627_s0 + $0xc8] sm:$0x1f] }
  0xee   :  { %v320_v6 = vsel %vm99_vm7, %v319_v48, %v308_v42  ;;  %v2458_v43 = vld [vmem:[%s4627_s0 + $0x428] sm:$0x1f] }
  0xef   :  { %v321_v52 = vsel %vm101_vm8, %v320_v6, %v312_v16 }
  0xf0   :  { %v1512_v51 = vrot.slane %v321_v52, 4  ;;  %v749_v52 = vrot.slane %v2455_v3, 1 }
  0xf2   :  { %570 = vrot.lane.b32.xlu2 %v569_v41, %s2654_s15  ;;  %562 = vrot.lane.b32.xlu0 %v2441_v27, %s2655_s16  ;;  %v1532_v56 = vsel %vm1529_vm0, %v285_v55, %v1512_v51  ;;  %v3252_v41 = vld [vmem:[%s4627_s0 + $0x60] sm:$0x1f] }
  0xf3   :  { %566 = vrot.lane.b32.xlu1 %v2442_v49, %s2658_s25  ;;  %2534 = vmatmul.msk.f32.gmra.mxu0 %vm1579_vm9, %v1532_v56  ;;  %v4637_v53 = vrot.slane %v3252_v41, 1 }
  0xf4   :  { %v387_v59 = vpop.permute.xlu2 %386  ;;  %v339_v60 = vpop.permute.xlu0 %338 }
  0xf5   :  { %v342_v58 = vpop.permute.xlu1 %341  ;;  %v368_v5 = vsel %vm87_vm1, %v2850_v28, %v339_v60  ;;  %v2456_v60 = vld [vmem:[%s4627_s0 + $0x308] sm:$0x1f] }
  0xf6   :  { %v369_v18 = vsel %vm89_vm2, %v368_v5, %v342_v58  ;;  %v3265_v58 = vld [vmem:[%s4627_s0 + $0x160] sm:$0x1f] }
  0xf7   :  { %v370_v22 = vsel %vm91_vm3, %v369_v18, %v3085_v23 }
  0xfa   :  { %581 = vrot.lane.b32.xlu2 %v580_v62, %s2660_s12  ;;  %573 = vrot.lane.b32.xlu0 %v2445_v19, %s2657_s24 }
  0xfb   :  { %577 = vrot.lane.b32.xlu1 %v3142_v50, %s2661_s13 }
  0xfc   :  { %v398_v0 = vpop.permute.xlu2 %397  ;;  %v350_v1 = vpop.permute.xlu0 %349 }
  0xfd   :  { %v354_v63 = vpop.permute.xlu1 %353  ;;  %v371_v27 = vsel %vm93_vm4, %v370_v22, %v350_v1  ;;  %v3316_v22 = vld [vmem:[%s4627_s0 + $0x180] sm:$0x1f] }
  0xfe   :  { %v372_v36 = vsel %vm95_vm5, %v371_v27, %v354_v63 }
  0xff   :  { %v373_v23 = vsel %vm97_vm6, %v372_v36, %v3108_v34  ;;  %v3237_v34 = vld [vmem:[%s4627_s0 + $0x210] sm:$0x1f] }
 0x102   :  { %615 = vrot.lane.b32.xlu2 %v3154_v2, %s2655_s16  ;;  %608 = vrot.lane.b32.xlu0 %v2444_v26, %s2656_s17 }
 0x103   :  { %611 = vrot.lane.b32.xlu1 %v2445_v19, %s2659_s26 }
 0x104   :  { %v3160_v4 = vpop.permute.xlu2 %431  ;;  %v362_v7 = vpop.permute.xlu0 %361 }
 0x105   :  { %v366_v57 = vpop.permute.xlu1 %365  ;;  %v374_v35 = vsel %vm99_vm7, %v373_v23, %v362_v7 }
 0x106   :  { %v375_v44 = vsel %vm101_vm8, %v374_v35, %v366_v57 }
 0x10a   :  { %627 = vrot.lane.b32.xlu2 %v3170_v9, %s2657_s24  ;;  %619 = vrot.lane.b32.xlu0 %v2448_v10, %s2658_s25  ;;  %v2462_v10 = vld [vmem:[%s4627_s0 + $0x1f0] sm:$0x1f] }
 0x10b   :  { %623 = vrot.lane.b32.xlu1 %v3165_v8, %s2654_s15 }
 0x10c   :  { %v3182_v13 = vpop.permute.xlu2 %443  ;;  %v380_v14 = vpop.permute.xlu0 %379 }
 0x10d   :  { %v383_v11 = vpop.permute.xlu1 %382  ;;  %v405_v16 = vsel %vm89_vm2, %v404_v12, %v380_v14 }
 0x10e   :  { %v406_v28 = vsel %vm91_vm3, %v405_v16, %v383_v11  ;;  %v3292_v11 = vld [vmem:[%s4627_s0 + $0x3c0] sm:$0x1f] }
 0x10f   :  { %v407_v29 = vsel %vm93_vm4, %v406_v28, %v387_v59  ;;  %v3270_v59 = vld [vmem:[%s4627_s0 + $0xf0] sm:$0x1f] }
 0x110   :  { %v2494_v28 = vld [vmem:[%s4627_s0 + $0x450] sm:$0x1f] }
 0x112   :  { %736 = vrot.lane.b32.xlu2 %v3195_v17, %s2656_s17  ;;  %631 = vrot.lane.b32.xlu0 %v2452_v32, %s2661_s13 }
 0x113   :  { %635 = vrot.lane.b32.xlu1 %v3189_v15, %s2660_s12 }
 0x114   :  { %v3209_v24 = vpop.permute.xlu2 %455  ;;  %v391_v26 = vpop.permute.xlu0 %390 }
 0x115   :  { %v394_v21 = vpop.permute.xlu1 %393  ;;  %v408_v30 = vsel %vm95_vm5, %v407_v29, %v391_v26 }
 0x116   :  { %v409_v37 = vsel %vm97_vm6, %v408_v30, %v394_v21  ;;  %v2459_v21 = vld [vmem:[%s4627_s0 + $0x40] sm:$0x1f] }
 0x117   :  { %v410_v38 = vsel %vm99_vm7, %v409_v37, %v398_v0  ;;  %v760_v35 = vrot.slane %v2459_v21, 1 }
 0x11a   :  { %742 = vrot.lane.b32.xlu2 %v2457_v33, %s2655_s16  ;;  %739 = vrot.lane.b32.xlu0 %v670_v31, %s2659_s26 }
 0x11b   :  { %698 = vrot.lane.b32.xlu1 %v2452_v32, %s2656_s17 }
 0x11c   :  { %v473_v19 = vpop.permute.xlu2 %472  ;;  %v402_v39 = vpop.permute.xlu0 %401 }
 0x11d   :  { %v429_v20 = vpop.permute.xlu1 %428  ;;  %v411_v40 = vsel %vm101_vm8, %v410_v38, %v402_v39 }
 0x11e   :  { %v1515_v42 = vrot.slane %v411_v40, 4  ;;  %v458_v57 = vsel %vm87_vm1, %v2929_v54, %v429_v20 }
 0x11f   :  { %v459_v12 = vsel %vm89_vm2, %v458_v57, %v3160_v4 }
 0x120   :  { %v1533_v45 = vsel %vm1529_vm0, %v375_v44, %v1515_v42 }
 0x121   :  { %2535 = vmatmul.msk.f32.gmra.mxu0 %vm1579_vm9, %v1533_v45 }
 0x122   :  { %1109 = vrot.lane.b32.xlu2 %v3237_v34, %s2656_s17  ;;  %701 = vrot.lane.b32.xlu0 %v3189_v15, %s2659_s26 }
 0x123   :  { %746 = vrot.lane.b32.xlu1 %v2458_v43, %s2658_s25 }
 0x124   :  { %v484_v6 = vpop.permute.xlu2 %483  ;;  %v436_v49 = vpop.permute.xlu0 %435 }
 0x125   :  { %v440_v48 = vpop.permute.xlu1 %439  ;;  %v460_v54 = vsel %vm91_vm3, %v459_v12, %v436_v49  ;;  %v3355_v49 = vld [vmem:[%s4627_s0 + $0x48] sm:$0x1f] }
 0x126   :  { %v461_v18 = vsel %vm93_vm4, %v460_v54, %v440_v48  ;;  %v2460_v48 = vld [vmem:[%s4627_s0 + $0xd0] sm:$0x1f] }
 0x127   :  { %v462_v26 = vsel %vm95_vm5, %v461_v18, %v3182_v13 }
 0x12a   :  { %1112 = vrot.lane.b32.xlu2 %v4637_v53, %s2659_s26  ;;  %705 = vrot.lane.b32.xlu0 %v2455_v3, %s2655_s16  ;;  %v2466_v3 = vld [vmem:[%s4627_s0 + $0x1f8] sm:$0x1f] }
 0x12b   :  { %750 = vrot.lane.b32.xlu1 %v749_v52, %s2654_s15 }
 0x12c   :  { %v3260_v55 = vpop.permute.xlu2 %518  ;;  %v448_v56 = vpop.permute.xlu0 %447 }
 0x12d   :  { %v452_v51 = vpop.permute.xlu1 %451  ;;  %v463_v29 = vsel %vm97_vm6, %v462_v26, %v448_v56  ;;  %v841_v56 = vrot.slane %v3355_v49, 1 }
 0x12e   :  { %v464_v23 = vsel %vm99_vm7, %v463_v29, %v452_v51 }
 0x12f   :  { %v465_v40 = vsel %vm101_vm8, %v464_v23, %v3209_v24  ;;  %v2492_v24 = vld [vmem:[%s4627_s0 + $0x330] sm:$0x1f]  ;;  %v2496_v23 = vld [vmem:[%s4627_s0 + $0xf8] sm:$0x1f] }
 0x132   :  { %1071 = vrot.lane.b32.xlu2 %v3270_v59, %s2656_s17  ;;  %709 = vrot.lane.b32.xlu0 %v2456_v60, %s2658_s25  ;;  %v3361_v60 = vld [vmem:[%s4627_s0 + $0x188] sm:$0x1f] }
 0x133   :  { %753 = vrot.lane.b32.xlu1 %v3265_v58, %s2657_s24 }
 0x134   :  { %v3280_v0 = vpop.permute.xlu2 %529  ;;  %v467_v1 = vpop.permute.xlu0 %466 }
 0x135   :  { %v470_v63 = vpop.permute.xlu1 %469  ;;  %v494_v7 = vsel %vm87_vm1, %v2947_v61, %v467_v1 }
 0x136   :  { %v495_v14 = vsel %vm89_vm2, %v494_v7, %v470_v63  ;;  %v2498_v7 = vld [vmem:[%s4627_s0 + $0x218] sm:$0x1f] }
 0x137   :  { %v496_v32 = vsel %vm91_vm3, %v495_v14, %v473_v19 }
 0x13a   :  { %757 = vrot.lane.b32.xlu2 %v2462_v10, %s2661_s13  ;;  %1115 = vrot.lane.b32.xlu0 %v3292_v11, %s2655_s16  ;;  %v2464_v10 = vld [vmem:[%s4627_s0 + $0xd8] sm:$0x1f] }
 0x13b   :  { %713 = vrot.lane.b32.xlu1 %v2457_v33, %s2654_s15  ;;  %v2491_v33 = vld [vmem:[%s4627_s0 + $0x2a0] sm:$0x1f] }
 0x13c   :  { %v3302_v5 = vpop.permute.xlu2 %541  ;;  %v477_v16 = vpop.permute.xlu0 %476  ;;  %v1122_v38 = vrot.slane %v2491_v33, 1 }
 0x13d   :  { %v481_v61 = vpop.permute.xlu1 %480  ;;  %v497_v4 = vsel %vm93_vm4, %v496_v32, %v477_v16  ;;  %v3390_v16 = vld [vmem:[%s4627_s0 + $0x68] sm:$0x1f] }
 0x13e   :  { %v498_v27 = vsel %vm95_vm5, %v497_v4, %v481_v61  ;;  %v1133_v18 = vrot.slane %v3390_v16, 1 }
 0x13f   :  { %v499_v37 = vsel %vm97_vm6, %v498_v27, %v484_v6 }
 0x142   :  { %717 = vrot.lane.b32.xlu2 %v2459_v21, %s2657_s24  ;;  %1074 = vrot.lane.b32.xlu0 %v3316_v22, %s2659_s26 }
 0x143   :  { %1119 = vrot.lane.b32.xlu1 %v2494_v28, %s2658_s25 }
 0x144   :  { %v560_v36 = vpop.permute.xlu2 %559  ;;  %v488_v13 = vpop.permute.xlu0 %487 }
 0x145   :  { %v492_v30 = vpop.permute.xlu1 %491  ;;  %v500_v20 = vsel %vm99_vm7, %v499_v37, %v488_v13  ;;  %v2470_v37 = vld [vmem:[%s4627_s0 + $0x438] sm:$0x1f] }
 0x146   :  { %v501_v19 = vsel %vm101_vm8, %v500_v20, %v492_v30  ;;  %v3424_v20 = vld [vmem:[%s4627_s0 + $0x168] sm:$0x1f] }
 0x147   :  { %v1518_v39 = vrot.slane %v501_v19, 4 }
 0x149   :  { %v1534_v42 = vsel %vm1529_vm0, %v465_v40, %v1518_v39 }
 0x14a   :  { %1123 = vrot.lane.b32.xlu2 %v1122_v38, %s2654_s15  ;;  %761 = vrot.lane.b32.xlu0 %v760_v35, %s2660_s12 }
 0x14b   :  { %1078 = vrot.lane.b32.xlu1 %v2491_v33, %s2655_s16  ;;  %2536 = vmatmul.msk.f32.gmra.mxu0 %vm1579_vm9, %v1534_v42 }
 0x14c   :  { %v571_v44 = vpop.permute.xlu2 %570  ;;  %v522_v45 = vpop.permute.xlu0 %521 }
 0x14d   :  { %v526_v43 = vpop.permute.xlu1 %525 }
 0x152   :  { %1082 = vrot.lane.b32.xlu2 %v2492_v24, %s2658_s25  ;;  %721 = vrot.lane.b32.xlu0 %v2460_v48, %s2661_s13  ;;  %v2468_v48 = vld [vmem:[%s4627_s0 + $0x318] sm:$0x1f] }
 0x153   :  { %837 = vrot.lane.b32.xlu1 %v2466_v3, %s2656_s17 }
 0x154   :  { %v582_v52 = vpop.permute.xlu2 %581  ;;  %v534_v51 = vpop.permute.xlu0 %533 }
 0x155   :  { %v538_v6 = vpop.permute.xlu1 %537 }
 0x15a   :  { %842 = vrot.lane.b32.xlu2 %v841_v56, %s2659_s26  ;;  %1126 = vrot.lane.b32.xlu0 %v3361_v60, %s2657_s24  ;;  %v2501_v56 = vld [vmem:[%s4627_s0 + $0x3c8] sm:$0x1f] }
 0x15b   :  { %725 = vrot.lane.b32.xlu1 %v3265_v58, %s2660_s12  ;;  %v548_v58 = vsel %vm87_vm1, %v3030_v47, %v3260_v55 }
 0x15c   :  { %v3368_v1 = vpop.permute.xlu2 %615  ;;  %v546_v57 = vpop.permute.xlu0 %545  ;;  %v549_v14 = vsel %vm89_vm2, %v548_v58, %v522_v45  ;;  %v2474_v58 = vld [vmem:[%s4627_s0 + $0x200] sm:$0x1f] }
 0x15d   :  { %v557_v63 = vpop.permute.xlu1 %556  ;;  %v550_v55 = vsel %vm91_vm3, %v549_v14, %v526_v43  ;;  %v3490_v14 = vld [vmem:[%s4627_s0 + $0x50] sm:$0x1f] }
 0x15e   :  { %v584_v12 = vsel %vm87_vm1, %v3025_v46, %v557_v63  ;;  %v551_v4 = vsel %vm93_vm4, %v550_v55, %v3280_v0  ;;  %v3472_v63 = vld [vmem:[%s4627_s0 + $0x170] sm:$0x1f]  ;;  %v2502_v55 = vld [vmem:[%s4627_s0 + $0x458] sm:$0x1f] }
 0x15f   :  { %v585_v61 = vsel %vm89_vm2, %v584_v12, %v560_v36  ;;  %v552_v21 = vsel %vm95_vm5, %v551_v4, %v534_v51 }
 0x160   :  { %v553_v33 = vsel %vm97_vm6, %v552_v21, %v538_v6  ;;  %v2472_v21 = vld [vmem:[%s4627_s0 + $0xe0] sm:$0x1f] }
 0x161   :  { %v554_v35 = vsel %vm99_vm7, %v553_v33, %v3302_v5  ;;  %v2467_v5 = vld [vmem:[%s4627_s0 + $0x288] sm:$0x1f]  ;;  %v2500_v33 = vld [vmem:[%s4627_s0 + $0x338] sm:$0x1f] }
 0x162   :  { %797 = vrot.lane.b32.xlu2 %v2464_v10, %s2656_s17  ;;  %1086 = vrot.lane.b32.xlu0 %v3292_v11, %s2654_s15  ;;  %v2469_v11 = vld [vmem:[%s4627_s0 + $0x3a8] sm:$0x1f]  ;;  %v555_v38 = vsel %vm101_vm8, %v554_v35, %v546_v57 }
 0x163   :  { %1130 = vrot.lane.b32.xlu1 %v2498_v7, %s2661_s13 }
 0x164   :  { %v3392_v47 = vpop.permute.xlu2 %627  ;;  %v563_v46 = vpop.permute.xlu0 %562 }
 0x165   :  { %v567_v54 = vpop.permute.xlu1 %566  ;;  %v586_v32 = vsel %vm91_vm3, %v585_v61, %v563_v46  ;;  %v863_v46 = vrot.slane %v3490_v14, 1 }
 0x166   :  { %v587_v28 = vsel %vm93_vm4, %v586_v32, %v567_v54  ;;  %v2499_v32 = vld [vmem:[%s4627_s0 + $0x2a8] sm:$0x1f] }
 0x167   :  { %v588_v29 = vsel %vm95_vm5, %v587_v28, %v571_v44  ;;  %v852_v44 = vrot.slane %v2467_v5, 1  ;;  %v1212_v28 = vrot.slane %v2499_v32, 1 }
 0x16a   :  { %1134 = vrot.lane.b32.xlu2 %v1133_v18, %s2660_s12  ;;  %845 = vrot.lane.b32.xlu0 %v2469_v11, %s2655_s16 }
 0x16b   :  { %1090 = vrot.lane.b32.xlu1 %v3390_v16, %s2657_s24 }
 0x16c   :  { %v3408_v27 = vpop.permute.xlu2 %736  ;;  %v574_v30 = vpop.permute.xlu0 %573 }
 0x16d   :  { %v578_v26 = vpop.permute.xlu1 %577  ;;  %v589_v0 = vsel %vm97_vm6, %v588_v29, %v574_v30 }
 0x16e   :  { %v590_v36 = vsel %vm99_vm7, %v589_v0, %v578_v26  ;;  %v3517_v0 = vld [vmem:[%s4627_s0 + $0x190] sm:$0x1f] }
 0x16f   :  { %v591_v13 = vsel %vm101_vm8, %v590_v36, %v582_v52 }
 0x170   :  { %v1521_v19 = vrot.slane %v591_v13, 4 }
 0x172   :  { %1094 = vrot.lane.b32.xlu2 %v2496_v23, %s2661_s13  ;;  %801 = vrot.lane.b32.xlu0 %v3424_v20, %s2659_s26  ;;  %v1535_v39 = vsel %vm1529_vm0, %v555_v38, %v1521_v19  ;;  %v3540_v38 = vld [vmem:[%s4627_s0 + $0x3b0] sm:$0x1f] }
 0x173   :  { %849 = vrot.lane.b32.xlu1 %v2470_v37, %s2658_s25  ;;  %2537 = vmatmul.msk.f32.gmra.mxu0 %vm1579_vm9, %v1535_v39  ;;  %v2506_v39 = vld [vmem:[%s4627_s0 + $0x220] sm:$0x1f] }
 0x174   :  { %v3440_v42 = vpop.permute.xlu2 %742  ;;  %v3442_v43 = vpop.permute.xlu0 %608 }
 0x175   :  { %v3435_v40 = vpop.permute.xlu1 %611 }
 0x17a   :  { %853 = vrot.lane.b32.xlu2 %v852_v44, %s2654_s15  ;;  %1199 = vrot.lane.b32.xlu0 %v2498_v7, %s2656_s17  ;;  %v764_v44 = vsel %vm87_vm1, %v3189_v15, %v3408_v27 }
 0x17b   :  { %805 = vrot.lane.b32.xlu1 %v2467_v5, %s2655_s16  ;;  %v3552_v5 = vld [vmem:[%s4627_s0 + $0x70] sm:$0x1f] }
 0x17c   :  { %v3449_v3 = vpop.permute.xlu2 %1109  ;;  %v3451_v24 = vpop.permute.xlu0 %619 }
 0x17d   :  { %v3447_v45 = vpop.permute.xlu1 %623 }
 0x182   :  { %809 = vrot.lane.b32.xlu2 %v2468_v48, %s2658_s25  ;;  %1098 = vrot.lane.b32.xlu0 %v3361_v60, %s2660_s12 }
 0x183   :  { %1202 = vrot.lane.b32.xlu1 %v1133_v18, %s2659_s26 }
 0x184   :  { %v3462_v52 = vpop.permute.xlu2 %1112  ;;  %v3464_v51 = vpop.permute.xlu0 %631 }
 0x185   :  { %v3460_v6 = vpop.permute.xlu1 %635 }
 0x18a   :  { %1205 = vrot.lane.b32.xlu2 %v2501_v56, %s2655_s16  ;;  %856 = vrot.lane.b32.xlu0 %v3472_v63, %s2657_s24 }
 0x18b   :  { %1161 = vrot.lane.b32.xlu1 %v2496_v23, %s2656_s17 }
 0x18c   :  { %v3478_v7 = vpop.permute.xlu2 %1071  ;;  %v740_v10 = vpop.permute.xlu0 %739 }
 0x18d   :  { %v699_v57 = vpop.permute.xlu1 %698 }
 0x192   :  { %1164 = vrot.lane.b32.xlu2 %v3361_v60, %s2659_s26  ;;  %813 = vrot.lane.b32.xlu0 %v2469_v11, %s2654_s15 }
 0x193   :  { %860 = vrot.lane.b32.xlu1 %v2474_v58, %s2661_s13 }
 0x194   :  { %v758_v54 = vpop.permute.xlu2 %757  ;;  %v702_v61 = vpop.permute.xlu0 %701 }
 0x195   :  { %v747_v12 = vpop.permute.xlu1 %746 }
 0x19a   :  { %864 = vrot.lane.b32.xlu2 %v863_v46, %s2660_s12  ;;  %1209 = vrot.lane.b32.xlu0 %v2502_v55, %s2658_s25  ;;  %v765_v55 = vsel %vm89_vm2, %v764_v44, %v740_v10 }
 0x19b   :  { %817 = vrot.lane.b32.xlu1 %v3490_v14, %s2657_s24 }
 0x19c   :  { %v718_v11 = vpop.permute.xlu2 %717  ;;  %v706_v4 = vpop.permute.xlu0 %705 }
 0x19d   :  { %v751_v18 = vpop.permute.xlu1 %750 }
 0x1a2   :  { %821 = vrot.lane.b32.xlu2 %v2472_v21, %s2661_s13  ;;  %1168 = vrot.lane.b32.xlu0 %v2499_v32, %s2655_s16  ;;  %v728_v32 = vsel %vm87_vm1, %v3170_v9, %v699_v57 }
 0x1a3   :  { %1213 = vrot.lane.b32.xlu1 %v1212_v28, %s2654_s15  ;;  %v766_v28 = vsel %vm91_vm3, %v765_v55, %v3440_v42  ;;  %v729_v10 = vsel %vm89_vm2, %v728_v32, %v702_v61  ;;  %v2478_v61 = vld [vmem:[%s4627_s0 + $0x440] sm:$0x1f] }
 0x1a4   :  { %v3509_v29 = vpop.permute.xlu2 %1123  ;;  %v710_v30 = vpop.permute.xlu0 %709  ;;  %v730_v55 = vsel %vm91_vm3, %v729_v10, %v706_v4 }
 0x1a5   :  { %v754_v26 = vpop.permute.xlu1 %753 }
 0x1aa   :  { %1216 = vrot.lane.b32.xlu2 %v3517_v0, %s2657_s24  ;;  %929 = vrot.lane.b32.xlu0 %v2474_v58, %s2656_s17 }
 0x1ab   :  { %1172 = vrot.lane.b32.xlu1 %v2500_v33, %s2658_s25 }
 0x1ac   :  { %v3523_v37 = vpop.permute.xlu2 %1082  ;;  %v3525_v13 = vpop.permute.xlu0 %1115 }
 0x1ad   :  { %v714_v36 = vpop.permute.xlu1 %713 }
 0x1b2   :  { %1176 = vrot.lane.b32.xlu2 %v2501_v56, %s2654_s15  ;;  %825 = vrot.lane.b32.xlu0 %v3472_v63, %s2660_s12 }
 0x1b3   :  { %932 = vrot.lane.b32.xlu1 %v863_v46, %s2659_s26  ;;  %v1223_v46 = vrot.slane %v3552_v5, 1 }
 0x1b4   :  { %v3533_v35 = vpop.permute.xlu2 %842  ;;  %v3535_v19 = vpop.permute.xlu0 %1074 }
 0x1b5   :  { %v3531_v23 = vpop.permute.xlu1 %1119 }
 0x1ba   :  { %935 = vrot.lane.b32.xlu2 %v3540_v38, %s2655_s16  ;;  %1220 = vrot.lane.b32.xlu0 %v2506_v39, %s2661_s13 }
 0x1bb   :  { %891 = vrot.lane.b32.xlu1 %v2472_v21, %s2656_s17  ;;  %v767_v21 = vsel %vm93_vm4, %v766_v28, %v747_v12  ;;  %v731_v12 = vsel %vm93_vm4, %v730_v55, %v710_v30  ;;  %v2504_v28 = vld [vmem:[%s4627_s0 + $0x100] sm:$0x1f]  ;;  %v2475_v30 = vld [vmem:[%s4627_s0 + $0x290] sm:$0x1f]  ;;  %v3614_v55 = vld [vmem:[%s4627_s0 + $0x178] sm:$0x1f] }
 0x1bc   :  { %v3559_v56 = vpop.permute.xlu2 %797  ;;  %v762_v58 = vpop.permute.xlu0 %761  ;;  %v768_v27 = vsel %vm95_vm5, %v767_v21, %v751_v18  ;;  %v732_v53 = vsel %vm95_vm5, %v731_v12, %v714_v36 }
 0x1bd   :  { %v3557_v48 = vpop.permute.xlu1 %1078  ;;  %v769_v57 = vsel %vm97_vm6, %v768_v27, %v754_v26  ;;  %v733_v4 = vsel %vm97_vm6, %v732_v53, %v718_v11 }
 0x1be   :  { %v770_v18 = vsel %vm99_vm7, %v769_v57, %v758_v54  ;;  %v942_v57 = vrot.slane %v2475_v30, 1 }
 0x1bf   :  { %v771_v26 = vsel %vm101_vm8, %v770_v18, %v762_v58 }
 0x1c0   :  { %v1527_v36 = vrot.slane %v771_v26, 4  ;;  %v3627_v26 = vld [vmem:[%s4627_s0 + $0x3d0] sm:$0x1f] }
 0x1c2   :  { %894 = vrot.lane.b32.xlu2 %v3472_v63, %s2659_s26  ;;  %1180 = vrot.lane.b32.xlu0 %v3552_v5, %s2657_s24 }
 0x1c3   :  { %1224 = vrot.lane.b32.xlu1 %v1223_v46, %s2660_s12 }
 0x1c4   :  { %v3578_v44 = vpop.permute.xlu2 %1134  ;;  %v722_v42 = vpop.permute.xlu0 %721 }
 0x1c5   :  { %v3574_v33 = vpop.permute.xlu1 %837  ;;  %v734_v54 = vsel %vm99_vm7, %v733_v4, %v722_v42  ;;  %v2476_v42 = vld [vmem:[%s4627_s0 + $0x320] sm:$0x1f] }
 0x1ca   :  { %1289 = vrot.lane.b32.xlu2 %v2506_v39, %s2656_s17  ;;  %939 = vrot.lane.b32.xlu0 %v2478_v61, %s2658_s25 }
 0x1cb   :  { %1184 = vrot.lane.b32.xlu1 %v2504_v28, %s2661_s13 }
 0x1cc   :  { %v1095_v27 = vpop.permute.xlu2 %1094  ;;  %v1127_v58 = vpop.permute.xlu0 %1126 }
 0x1cd   :  { %v726_v32 = vpop.permute.xlu1 %725 }
 0x1ce   :  { %v735_v21 = vsel %vm101_vm8, %v734_v54, %v726_v32  ;;  %v2482_v54 = vld [vmem:[%s4627_s0 + $0x208] sm:$0x1f] }
 0x1cf   :  { %v1537_v10 = vsel %vm1529_vm0, %v735_v21, %v1527_v36 }
 0x1d0   :  { %2539 = vmatmul.msk.f32.vlgmr.msra.gmra.mxu2 %vm1579_vm9, %v1537_v10 }
 0x1d2   :  { %1188 = vrot.lane.b32.xlu2 %v3517_v0, %s2660_s12  ;;  %898 = vrot.lane.b32.xlu0 %v2475_v30, %s2655_s16 }
 0x1d3   :  { %943 = vrot.lane.b32.xlu1 %v942_v57, %s2654_s15 }
 0x1d4   :  { %v3606_v11 = vpop.permute.xlu2 %853  ;;  %v1087_v39 = vpop.permute.xlu0 %1086 }
 0x1d5   :  { %v1131_v53 = vpop.permute.xlu1 %1130 }
 0x1da   :  { %946 = vrot.lane.b32.xlu2 %v3614_v55, %s2657_s24  ;;  %1292 = vrot.lane.b32.xlu0 %v1223_v46, %s2659_s26  ;;  %v1137_v46 = vsel %vm87_vm1, %v3316_v22, %v3449_v3  ;;  %v1101_v3 = vsel %vm87_vm1, %v3252_v41, %v3478_v7 }
 0x1db   :  { %902 = vrot.lane.b32.xlu1 %v2476_v42, %s2658_s25  ;;  %v1138_v32 = vsel %vm89_vm2, %v1137_v46, %v3462_v52  ;;  %v1102_v52 = vsel %vm89_vm2, %v1101_v3, %v3535_v19  ;;  %v3679_v19 = vld [vmem:[%s4627_s0 + $0x58] sm:$0x1f] }
 0x1dc   :  { %v3620_v18 = vpop.permute.xlu2 %809  ;;  %v3622_v61 = vpop.permute.xlu0 %845  ;;  %v953_v25 = vrot.slane %v3679_v19, 1 }
 0x1dd   :  { %v1091_v12 = vpop.permute.xlu1 %1090 }
 0x1e2   :  { %646 = vrot.lane.b32.xlu2 %v3142_v50, %s2656_s17  ;;  %1251 = vrot.lane.b32.xlu0 %v2504_v28, %s2656_s17  ;;  %v1139_v50 = vsel %vm91_vm3, %v1138_v32, %v3525_v13  ;;  %v1103_v13 = vsel %vm91_vm3, %v1102_v52, %v3557_v48 }
 0x1e3   :  { %1295 = vrot.lane.b32.xlu1 %v3627_v26, %s2655_s16  ;;  %v1140_v28 = vsel %vm93_vm4, %v1139_v50, %v3531_v23 }
 0x1e4   :  { %v3639_v30 = vpop.permute.xlu2 %1205  ;;  %v3641_v36 = vpop.permute.xlu0 %801  ;;  %v1141_v23 = vsel %vm95_vm5, %v1140_v28, %v3509_v29  ;;  %v2510_v29 = vld [vmem:[%s4627_s0 + $0x460] sm:$0x1f] }
 0x1e5   :  { %v3634_v4 = vpop.permute.xlu1 %849  ;;  %v1142_v57 = vsel %vm97_vm6, %v1141_v23, %v1127_v58 }
 0x1e6   :  { %v1143_v42 = vsel %vm99_vm7, %v1142_v57, %v1131_v53  ;;  %v2507_v53 = vld [vmem:[%s4627_s0 + $0x2b0] sm:$0x1f] }
 0x1e7   :  { %v1144_v46 = vsel %vm101_vm8, %v1143_v42, %v3578_v44  ;;  %v1302_v28 = vrot.slane %v2507_v53, 1 }
 0x1ea   :  { %1254 = vrot.lane.b32.xlu2 %v3517_v0, %s2659_s26  ;;  %906 = vrot.lane.b32.xlu0 %v3540_v38, %s2654_s15  ;;  %v1104_v38 = vsel %vm93_vm4, %v1103_v13, %v3523_v37  ;;  %v2480_v13 = vld [vmem:[%s4627_s0 + $0xe8] sm:$0x1f] }
 0x1eb   :  { %950 = vrot.lane.b32.xlu1 %v2482_v54, %s2661_s13  ;;  %v1105_v48 = vsel %vm95_vm5, %v1104_v38, %v1087_v39  ;;  %v1548_v39 = vrot.slane %v1144_v46, 4  ;;  %v3721_v38 = vld [vmem:[%s4627_s0 + $0x198] sm:$0x1f] }
 0x1ec   :  { %v3668_v10 = vpop.permute.xlu2 %1164  ;;  %v3670_v7 = vpop.permute.xlu0 %1199  ;;  %v1106_v58 = vsel %vm97_vm6, %v1105_v48, %v1091_v12 }
 0x1ed   :  { %v3662_v21 = vpop.permute.xlu1 %805  ;;  %v1107_v44 = vsel %vm99_vm7, %v1106_v58, %v1095_v27 }
 0x1f2   :  { %910 = vrot.lane.b32.xlu2 %v3679_v19, %s2657_s24  ;;  %1299 = vrot.lane.b32.xlu0 %v2510_v29, %s2658_s25  ;;  %v2450_v29 = vld [vmem:[%s4627_s0 + $0x420] sm:$0x1f] }
 0x1f3   :  { %649 = vrot.lane.b32.xlu1 %v580_v62, %s2659_s26 }
 0x1f4   :  { %v865_v32 = vpop.permute.xlu2 %864  ;;  %v1099_v12 = vpop.permute.xlu0 %1098 }
 0x1f5   :  { %v3694_v37 = vpop.permute.xlu1 %1202  ;;  %v1108_v50 = vsel %vm101_vm8, %v1107_v44, %v1099_v12  ;;  %v659_v12 = vrot.slane %v3154_v2, 1 }
 0x1f6   :  { %v1565_v62 = vsel %vm1529_vm0, %v1108_v50, %v1548_v39 }
 0x1f7   :  { %2543 = vmatmul.msk.f32.vlgmr.msra.gmra.mxu3 %vm1579_vm9, %v1565_v62 }
 0x1fa   :  { %1303 = vrot.lane.b32.xlu2 %v1302_v28, %s2654_s15  ;;  %954 = vrot.lane.b32.xlu0 %v953_v25, %s2660_s12 }
 0x1fb   :  { %1258 = vrot.lane.b32.xlu1 %v2507_v53, %s2655_s16  ;;  %v867_v53 = vsel %vm87_vm1, %v3424_v20, %v3574_v33  ;;  %v828_v20 = vsel %vm87_vm1, %v3355_v49, %v3559_v56  ;;  %v3766_v33 = vld [vmem:[%s4627_s0 + $0x78] sm:$0x1f] }
 0x1fc   :  { %v822_v52 = vpop.permute.xlu2 %821  ;;  %v857_v27 = vpop.permute.xlu0 %856  ;;  %v868_v50 = vsel %vm89_vm2, %v867_v53, %v3533_v35  ;;  %v829_v2 = vsel %vm89_vm2, %v828_v20, %v3641_v36  ;;  %v1227_v20 = vsel %vm87_vm1, %v3361_v60, %v3670_v7  ;;  %v2483_v60 = vld [vmem:[%s4627_s0 + $0x298] sm:$0x1f] }
 0x1fd   :  { %v3707_v3 = vpop.permute.xlu1 %1161 }
 0x202   :  { %1019 = vrot.lane.b32.xlu2 %v2482_v54, %s2656_s17  ;;  %652 = vrot.lane.b32.xlu0 %v3165_v8, %s2655_s16  ;;  %v2508_v54 = vld [vmem:[%s4627_s0 + $0x340] sm:$0x1f] }
 0x203   :  { %914 = vrot.lane.b32.xlu1 %v2480_v13, %s2661_s13 }
 0x204   :  { %v3716_v57 = vpop.permute.xlu2 %1216  ;;  %v814_v42 = vpop.permute.xlu0 %813 }
 0x205   :  { %v861_v23 = vpop.permute.xlu1 %860 }
 0x20a   :  { %656 = vrot.lane.b32.xlu2 %v2450_v29, %s2658_s25  ;;  %1262 = vrot.lane.b32.xlu0 %v2508_v54, %s2658_s25 }
 0x20b   :  { %1306 = vrot.lane.b32.xlu1 %v3721_v38, %s2657_s24 }
 0x20c   :  { %v3733_v48 = vpop.permute.xlu2 %1176  ;;  %v1210_v46 = vpop.permute.xlu0 %1209 }
 0x20d   :  { %v818_v8 = vpop.permute.xlu1 %817 }
 0x212   :  { %1266 = vrot.lane.b32.xlu2 %v3627_v26, %s2654_s15  ;;  %918 = vrot.lane.b32.xlu0 %v3614_v55, %s2660_s12  ;;  %v2514_v26 = vld [vmem:[%s4627_s0 + $0x228] sm:$0x1f] }
 0x213   :  { %1022 = vrot.lane.b32.xlu1 %v953_v25, %s2659_s26  ;;  %v869_v25 = vsel %vm91_vm3, %v868_v50, %v3622_v61  ;;  %v830_v61 = vsel %vm91_vm3, %v829_v2, %v3662_v21  ;;  %v3784_v21 = vld [vmem:[%s4627_s0 + $0x3b8] sm:$0x1f]  ;;  %v2486_v50 = vld [vmem:[%s4627_s0 + $0x448] sm:$0x1f]  ;;  %v1228_v2 = vsel %vm89_vm2, %v1227_v20, %v3694_v37 }
 0x214   :  { %v3743_v39 = vpop.permute.xlu2 %935  ;;  %v1169_v44 = vpop.permute.xlu0 %1168  ;;  %v870_v62 = vsel %vm93_vm4, %v869_v25, %v3634_v4  ;;  %v831_v29 = vsel %vm93_vm4, %v830_v61, %v3620_v18  ;;  %v2512_v61 = vld [vmem:[%s4627_s0 + $0x108] sm:$0x1f] }
 0x215   :  { %v1214_v58 = vpop.permute.xlu1 %1213  ;;  %v871_v4 = vsel %vm95_vm5, %v870_v62, %v3606_v11  ;;  %v832_v11 = vsel %vm95_vm5, %v831_v29, %v814_v42 }
 0x216   :  { %v872_v28 = vsel %vm97_vm6, %v871_v4, %v857_v27  ;;  %v833_v53 = vsel %vm97_vm6, %v832_v11, %v818_v8  ;;  %v1229_v4 = vsel %vm91_vm3, %v1228_v2, %v3639_v30  ;;  %v2518_v2 = vld [vmem:[%s4627_s0 + $0x468] sm:$0x1f] }
 0x217   :  { %v873_v36 = vsel %vm99_vm7, %v872_v28, %v861_v23  ;;  %v1230_v7 = vsel %vm93_vm4, %v1229_v4, %v1210_v46 }
 0x218   :  { %v874_v54 = vsel %vm101_vm8, %v873_v36, %v865_v32 }
 0x219   :  { %v1539_v27 = vrot.slane %v874_v54, 4 }
 0x21a   :  { %981 = vrot.lane.b32.xlu2 %v2480_v13, %s2656_s17  ;;  %1310 = vrot.lane.b32.xlu0 %v2514_v26, %s2661_s13  ;;  %v1313_v13 = vrot.slane %v3766_v33, 1 }
 0x21b   :  { %660 = vrot.lane.b32.xlu1 %v659_v12, %s2654_s15  ;;  %v834_v12 = vsel %vm99_vm7, %v833_v53, %v822_v52 }
 0x21c   :  { %v3772_v49 = vpop.permute.xlu2 %894  ;;  %v3774_v56 = vpop.permute.xlu0 %929 }
 0x21d   :  { %v1173_v35 = vpop.permute.xlu1 %1172 }
 0x222   :  { %1314 = vrot.lane.b32.xlu2 %v1313_v13, %s2660_s12  ;;  %1025 = vrot.lane.b32.xlu0 %v3784_v21, %s2655_s16 }
 0x223   :  { %1270 = vrot.lane.b32.xlu1 %v3766_v33, %s2657_s24 }
 0x224   :  { %v3796_v23 = vpop.permute.xlu2 %1289  ;;  %v826_v42 = vpop.permute.xlu0 %825 }
 0x225   :  { %v3794_v18 = vpop.permute.xlu1 %932  ;;  %v835_v32 = vsel %vm101_vm8, %v834_v12, %v826_v42 }
 0x226   :  { %v1562_v8 = vsel %vm1529_vm0, %v835_v32, %v1539_v27 }
 0x227   :  { %2540 = vmatmul.msk.f32.gmra.mxu2 %vm1579_vm9, %v1562_v8 }
 0x22a   :  { %1029 = vrot.lane.b32.xlu2 %v2486_v50, %s2658_s25  ;;  %663 = vrot.lane.b32.xlu0 %v3189_v15, %s2657_s24  ;;  %v1191_v15 = vsel %vm87_vm1, %v3390_v16, %v3707_v3  ;;  %v1032_v3 = vrot.slane %v2483_v60, 1  ;;  %v2517_v50 = vld [vmem:[%s4627_s0 + $0x3d8] sm:$0x1f] }
 0x22b   :  { %984 = vrot.lane.b32.xlu1 %v3614_v55, %s2659_s26  ;;  %v1192_v30 = vsel %vm89_vm2, %v1191_v15, %v3668_v10 }
 0x22c   :  { %v1189_v25 = vpop.permute.xlu2 %1188  ;;  %v1221_v62 = vpop.permute.xlu0 %1220 }
 0x22d   :  { %v3810_v52 = vpop.permute.xlu1 %891 }
 0x232   :  { %667 = vrot.lane.b32.xlu2 %v3195_v17, %s2661_s13  ;;  %1274 = vrot.lane.b32.xlu0 %v2512_v61, %s2661_s13  ;;  %v1193_v17 = vsel %vm91_vm3, %v1192_v30, %v1169_v44 }
 0x233   :  { %1379 = vrot.lane.b32.xlu1 %v2514_v26, %s2656_s17  ;;  %v1231_v26 = vsel %vm95_vm5, %v1230_v7, %v1214_v58  ;;  %v1194_v36 = vsel %vm93_vm4, %v1193_v17, %v1173_v35  ;;  %v2522_v17 = vld [vmem:[%s4627_s0 + $0x230] sm:$0x1f] }
 0x234   :  { %v3834_v28 = vpop.permute.xlu2 %946  ;;  %v1181_v16 = vpop.permute.xlu0 %1180  ;;  %v1232_v29 = vsel %vm97_vm6, %v1231_v26, %v3716_v57  ;;  %v1195_v58 = vsel %vm95_vm5, %v1194_v36, %v3733_v48  ;;  %v2484_v48 = vld [vmem:[%s4627_s0 + $0x328] sm:$0x1f]  ;;  %v3915_v26 = vld [vmem:[%s4627_s0 + $0x1a0] sm:$0x1f] }
 0x235   :  { %v1225_v37 = vpop.permute.xlu1 %1224  ;;  %v1233_v11 = vsel %vm99_vm7, %v1232_v29, %v1221_v62  ;;  %v1196_v10 = vsel %vm97_vm6, %v1195_v58, %v1181_v16  ;;  %v2516_v16 = vld [vmem:[%s4627_s0 + $0x348] sm:$0x1f]  ;;  %v3935_v36 = vld [vmem:[%s4627_s0 + $0x80] sm:$0x1f] }
 0x236   :  { %v1234_v46 = vsel %vm101_vm8, %v1233_v11, %v1225_v37 }
 0x237   :  { %v1551_v35 = vrot.slane %v1234_v46, 4 }
 0x23a   :  { %1278 = vrot.lane.b32.xlu2 %v3721_v38, %s2660_s12  ;;  %988 = vrot.lane.b32.xlu0 %v2483_v60, %s2655_s16 }
 0x23b   :  { %1033 = vrot.lane.b32.xlu1 %v1032_v3, %s2654_s15 }
 0x23c   :  { %v647_v54 = vpop.permute.xlu2 %646  ;;  %v3852_v53 = vpop.permute.xlu0 %939 }
 0x23d   :  { %v1185_v44 = vpop.permute.xlu1 %1184 }
 0x23e   :  { %v1197_v57 = vsel %vm99_vm7, %v1196_v10, %v1185_v44 }
 0x23f   :  { %v1198_v27 = vsel %vm101_vm8, %v1197_v57, %v1189_v25  ;;  %v1403_v57 = vrot.slane %v3935_v36, 1 }
 0x240   :  { %v1566_v12 = vsel %vm1529_vm0, %v1198_v27, %v1551_v35  ;;  %v957_v35 = vsel %vm87_vm1, %v3472_v63, %v3774_v56  ;;  %v2520_v27 = vld [vmem:[%s4627_s0 + $0x110] sm:$0x1f] }
 0x241   :  { %2544 = vmatmul.msk.f32.gmra.mxu3 %vm1579_vm9, %v1566_v12  ;;  %v958_v12 = vsel %vm89_vm2, %v957_v35, %v3794_v18 }
 0x242   :  { %992 = vrot.lane.b32.xlu2 %v2484_v48, %s2658_s25  ;;  %1382 = vrot.lane.b32.xlu0 %v1313_v13, %s2659_s26  ;;  %v921_v48 = vsel %vm87_vm1, %v3490_v14, %v3810_v52  ;;  %v959_v63 = vsel %vm91_vm3, %v958_v12, %v3743_v39  ;;  %v2530_v12 = vld [vmem:[%s4627_s0 + $0x238] sm:$0x1f] }
 0x243   :  { %671 = vrot.lane.b32.xlu1 %v670_v31, %s2660_s12  ;;  %v960_v56 = vsel %vm93_vm4, %v959_v63, %v3852_v53  ;;  %v922_v14 = vsel %vm89_vm2, %v921_v48, %v3772_v49  ;;  %v2529_v48 = vld [vmem:[%s4627_s0 + $0x1a8] sm:$0x1f] }
 0x244   :  { %v3867_v32 = vpop.permute.xlu2 %1254  ;;  %v3869_v8 = vpop.permute.xlu0 %898 }
 0x245   :  { %v3865_v42 = vpop.permute.xlu1 %943  ;;  %v923_v39 = vsel %vm91_vm3, %v922_v14, %v3869_v8 }
 0x246   :  { %v961_v18 = vsel %vm95_vm5, %v960_v56, %v3865_v42 }
 0x247   :  { %v962_v53 = vsel %vm97_vm6, %v961_v18, %v3834_v28 }
 0x24a   :  { %1385 = vrot.lane.b32.xlu2 %v2517_v50, %s2655_s16  ;;  %1036 = vrot.lane.b32.xlu0 %v3316_v22, %s2657_s24 }
 0x24b   :  { %1341 = vrot.lane.b32.xlu1 %v2512_v61, %s2656_s17 }
 0x24c   :  { %v3878_v31 = vpop.permute.xlu2 %910  ;;  %v3880_v13 = vpop.permute.xlu0 %1292 }
 0x24d   :  { %v903_v9 = vpop.permute.xlu1 %902 }
 0x24e   :  { %v924_v52 = vsel %vm93_vm4, %v923_v39, %v903_v9 }
 0x252   :  { %1344 = vrot.lane.b32.xlu2 %v3721_v38, %s2659_s26  ;;  %996 = vrot.lane.b32.xlu0 %v3784_v21, %s2654_s15  ;;  %v2515_v21 = vld [vmem:[%s4627_s0 + $0x2b8] sm:$0x1f] }
 0x253   :  { %1040 = vrot.lane.b32.xlu1 %v3237_v34, %s2661_s13  ;;  %v4638_v34 = vrot.slane %v3252_v41, 1  ;;  %v1392_v60 = vrot.slane %v2515_v21, 1 }
 0x254   :  { %v3890_v62 = vpop.permute.xlu2 %1303  ;;  %v3892_v20 = vpop.permute.xlu0 %1251 }
 0x255   :  { %v3888_v25 = vpop.permute.xlu1 %1295 }
 0x25a   :  { %1044 = vrot.lane.b32.xlu2 %v4638_v34, %s2660_s12  ;;  %1389 = vrot.lane.b32.xlu0 %v2518_v2, %s2658_s25 }
 0x25b   :  { %1000 = vrot.lane.b32.xlu1 %v3252_v41, %s2657_s24 }
 0x25c   :  { %v1020_v15 = vpop.permute.xlu2 %1019  ;;  %v907_v4 = vpop.permute.xlu0 %906 }
 0x25d   :  { %v951_v61 = vpop.permute.xlu1 %950  ;;  %v1047_v49 = vsel %vm87_vm1, %v3614_v55, %v1020_v15  ;;  %v2526_v55 = vld [vmem:[%s4627_s0 + $0x470] sm:$0x1f]  ;;  %v2523_v15 = vld [vmem:[%s4627_s0 + $0x2c0] sm:$0x1f] }
 0x262   :  { %1004 = vrot.lane.b32.xlu2 %v3270_v59, %s2661_s13  ;;  %1348 = vrot.lane.b32.xlu0 %v2515_v21, %s2655_s16  ;;  %v963_v21 = vsel %vm99_vm7, %v962_v53, %v951_v61  ;;  %v4064_v53 = vld [vmem:[%s4629_s2] ss:$0 sm:$0xff] }
 0x263   :  { %1393 = vrot.lane.b32.xlu1 %v1392_v60, %s2654_s15  ;;  %v925_v60 = vsel %vm95_vm5, %v924_v52, %v907_v4 }
 0x264   :  { %v657_v41 = vpop.permute.xlu2 %656  ;;  %v3910_v37 = vpop.permute.xlu0 %1299  ;;  %v926_v8 = vsel %vm97_vm6, %v925_v60, %v3878_v31  ;;  %v2525_v31 = vld [vmem:[%s4627_s0 + $0x3e0] sm:$0x1f] }
 0x265   :  { %v650_v7 = vpop.permute.xlu1 %649 }
 0x26a   :  { %1008 = vrot.lane.b32.xlu2 %v3316_v22, %s2660_s12  ;;  %1352 = vrot.lane.b32.xlu0 %v2516_v16, %s2658_s25  ;;  %v2652_v22 = vld [vmem:[%s4627_s0 + $0x150] sm:$0x1f] }
 0x26b   :  { %1396 = vrot.lane.b32.xlu1 %v3915_v26, %s2657_s24  ;;  %v674_v29 = vsel %vm87_vm1, %v2652_v22, %v647_v54 }
 0x26c   :  { %v3927_v30 = vpop.permute.xlu2 %1266  ;;  %v955_v3 = vpop.permute.xlu0 %954  ;;  %v675_v46 = vsel %vm89_vm2, %v674_v29, %v650_v7 }
 0x26d   :  { %v3925_v59 = vpop.permute.xlu1 %1258  ;;  %v964_v42 = vsel %vm101_vm8, %v963_v21, %v955_v3 }
 0x26e   :  { %v1542_v9 = vrot.slane %v964_v42, 4 }
 0x272   :  { %1360 = vrot.lane.b32.xlu2 %v3935_v36, %s2657_s24  ;;  %1356 = vrot.lane.b32.xlu0 %v2517_v50, %s2654_s15 }
 0x273   :  { %1400 = vrot.lane.b32.xlu1 %v2522_v17, %s2661_s13 }
 0x274   :  { %v3946_v58 = vpop.permute.xlu2 %981  ;;  %v653_v10 = vpop.permute.xlu0 %652 }
 0x275   :  { %v915_v11 = vpop.permute.xlu1 %914  ;;  %v676_v44 = vsel %vm91_vm3, %v675_v46, %v653_v10  ;;  %v2524_v46 = vld [vmem:[%s4627_s0 + $0x350] sm:$0x1f]  ;;  %v1648_v10 = vpop.f32.mrf.mxu0 }
 0x276   :  { %v3957_v54 = vsel %vm93_vm4, %v676_v44, %v657_v41  ;;  %v927_v61 = vsel %vm99_vm7, %v926_v8, %v915_v11  ;;  %v1482_v11 = vrot.slane %v2523_v15, 1 }
 0x27a   :  { %1469 = vrot.lane.b32.xlu2 %v2522_v17, %s2656_s17  ;;  %1404 = vrot.lane.b32.xlu0 %v1403_v57, %s2660_s12 }
 0x27b   :  { %1364 = vrot.lane.b32.xlu1 %v2520_v27, %s2661_s13 }
 0x27c   :  { %v3975_v2 = vpop.permute.xlu2 %1314  ;;  %v3977_v34 = vpop.permute.xlu0 %1262 }
 0x27d   :  { %v3971_v50 = vpop.permute.xlu1 %1306  ;;  %v1651_v18 = vpop.f32.mrf.mxu0 }
 0x27e   :  { %v1652_v42 = vadd.f32 %v4064_v53, %v1651_v18 }
 0x282   :  { %1431 = vrot.lane.b32.xlu2 %v2520_v27, %s2656_s17  ;;  %1368 = vrot.lane.b32.xlu0 %v3915_v26, %s2660_s12  ;;  %v1317_v27 = vsel %vm87_vm1, %v3517_v0, %v3796_v23  ;;  %v2527_v23 = vld [vmem:[%s4627_s0 + $0x88] sm:$0x1f] }
 0x283   :  { %1472 = vrot.lane.b32.xlu1 %v1403_v57, %s2659_s26  ;;  %v1318_v63 = vsel %vm89_vm2, %v1317_v27, %v3880_v13  ;;  %v1281_v13 = vsel %vm87_vm1, %v3552_v5, %v3892_v20  ;;  %v1493_v52 = vrot.slane %v2527_v23, 1 }
 0x284   :  { %v4001_v7 = vpop.permute.xlu2 %1029  ;;  %v919_v41 = vpop.permute.xlu0 %918  ;;  %v1319_v56 = vsel %vm91_vm3, %v1318_v63, %v3888_v25  ;;  %v1282_v21 = vsel %vm89_vm2, %v1281_v13, %v3867_v32 }
 0x285   :  { %v1023_v28 = vpop.permute.xlu1 %1022  ;;  %v928_v16 = vsel %vm101_vm8, %v927_v61, %v919_v41  ;;  %v1320_v0 = vsel %vm93_vm4, %v1319_v56, %v3910_v37  ;;  %v1283_v20 = vsel %vm91_vm3, %v1282_v21, %v3925_v59  ;;  %v1654_v32 = vpop.f32.mrf.mxu0 }
 0x286   :  { %v3999_v4 = vsel %vm89_vm2, %v1047_v49, %v1023_v28  ;;  %v1563_v3 = vsel %vm1529_vm0, %v928_v16, %v1542_v9  ;;  %v1321_v37 = vsel %vm95_vm5, %v1320_v0, %v3890_v62  ;;  %v2528_v62 = vld [vmem:[%s4627_s0 + $0x118] sm:$0x1f]  ;;  %v1284_v49 = vsel %vm93_vm4, %v1283_v20, %v3977_v34 }
 0x287   :  { %2541 = vmatmul.msk.f32.gmra.mxu2 %vm1579_vm9, %v1563_v3  ;;  %v1322_v5 = vsel %vm97_vm6, %v1321_v37, %v3971_v50  ;;  %v1285_v59 = vsel %vm95_vm5, %v1284_v49, %v3927_v30  ;;  %v1649_v28 = vadd.f32 %v4064_v53, %v1648_v10  ;;  %v4087_v9 = vmax.f32 %v1652_v42, 0.0 }
 0x288   :  { %v1655_v41 = vadd.f32 %v4064_v53, %v1654_v32 }
 0x28a   :  { %1479 = vrot.lane.b32.xlu2 %v2526_v55, %s2658_s25  ;;  %1475 = vrot.lane.b32.xlu0 %v2525_v31, %s2655_s16  ;;  %v1698_v10 = vmax.f32 %v1655_v41, 0.0 }
 0x28b   :  { %1434 = vrot.lane.b32.xlu1 %v3915_v26, %s2659_s26 }
 0x28c   :  { %v4021_v22 = vpop.permute.xlu2 %667  ;;  %v1311_v29 = vpop.permute.xlu0 %1310  ;;  %v1754_v63 = vrot.slane %v1698_v10, 3 }
 0x28d   :  { %v4019_v17 = vpop.permute.xlu1 %660  ;;  %v1323_v60 = vsel %vm99_vm7, %v1322_v5, %v1311_v29 }
 0x28e   :  { %v1324_v50 = vsel %vm101_vm8, %v1323_v60, %v3975_v2  ;;  %v2653_v2 = vld [vmem:[%s4627_s0 + $0x30] sm:$0x1f]  ;;  %v678_v18 = vsel %vm95_vm5, %v3957_v54, %v4019_v17  ;;  %s2662_s0 = smov 40  }
 0x28f   :  { %v638_v16 = vsel %vm87_vm1, %v2653_v2, %v3442_v43  ;;  %v1554_v3 = vrot.slane %v1324_v50, 4  ;;  %v1657_v43 = vpop.f32.mrf.mxu0  ;;  %v1718_v50 = vrot.slane %v4087_v9, 3 }
 0x290   :  { %v639_v29 = vsel %vm89_vm2, %v638_v16, %v3435_v40 }
 0x292   :  { %1442 = vrot.lane.b32.xlu2 %v2524_v46, %s2658_s25  ;;  %1438 = vrot.lane.b32.xlu0 %v2523_v15, %s2655_s16  ;;  %v1696_v46 = vmax.f32 %v1649_v28, 0.0 }
 0x293   :  { %1483 = vrot.lane.b32.xlu1 %v1482_v11, %s2654_s15  ;;  %v1739_v11 = vrot.slane %v4087_v9, 4 }
 0x294   :  { %v1279_v35 = vpop.permute.xlu2 %1278  ;;  %v4029_v57 = vpop.permute.xlu0 %1025  ;;  %v1713_v56 = vrot.slane %v1696_v46, 3 }
 0x295   :  { %v1271_v44 = vpop.permute.xlu1 %1270  ;;  %v1049_v28 = vsel %vm91_vm3, %v3999_v4, %v4029_v57  ;;  %v1011_v57 = vsel %vm87_vm1, %v3679_v19, %v3946_v58 }
 0x296   :  { %v1286_v34 = vsel %vm97_vm6, %v1285_v59, %v1271_v44  ;;  %v640_v44 = vsel %vm91_vm3, %v639_v29, %v3368_v1  ;;  %v1716_v13 = vsel %vm1715_vm10, 0.0, %v1713_v56  ;;  %v1728_v59 = vrot.slane %v1696_v46, 4 }
 0x297   :  { %v1050_v16 = vsel %vm93_vm4, %v1049_v28, %v4001_v7 }
 0x29a   :  { %1490 = vrot.lane.b32.xlu2 %v2530_v12, %s2661_s13  ;;  %1486 = vrot.lane.b32.xlu0 %v2529_v48, %s2657_s24  ;;  %v1658_v12 = vadd.f32 %v4064_v53, %v1657_v43 }
 0x29b   :  { %1446 = vrot.lane.b32.xlu1 %v2525_v31, %s2654_s15 }
 0x29c   :  { %v4057_v25 = vpop.permute.xlu2 %992  ;;  %v664_v39 = vpop.permute.xlu0 %663 }
 0x29d   :  { %v4055_v14 = vpop.permute.xlu1 %984  ;;  %v679_v1 = vsel %vm97_vm6, %v678_v18, %v664_v39 }
 0x29e   :  { %v680_v17 = vsel %vm99_vm7, %v679_v1, %v4021_v22  ;;  %v1774_v22 = vrot.slane %v1698_v10, 4 }
 0x2a2   :  { %1454 = vrot.lane.b32.xlu2 %v2528_v62, %s2661_s13  ;;  %1450 = vrot.lane.b32.xlu0 %v2527_v23, %s2657_s24  ;;  %v4122_v23 = vmax.f32 %v1658_v12, 0.0  ;;  %s2663_s13 = smov 48  }
 0x2a3   :  { %1494 = vrot.lane.b32.xlu1 %v1493_v52, %s2660_s12 }
 0x2a4   :  { %v1275_v61 = vpop.permute.xlu0 %1274  ;;  %v1386_v55 = vpop.permute.xlu2 %1385  ;;  %v1758_v20 = vrot.slane %v4122_v23, 3  ;;  %v1785_v7 = vrot.slane %v4122_v23, 4 }
 0x2a5   :  { %v1380_v8 = vpop.permute.xlu1 %1379  ;;  %v1287_v30 = vsel %vm99_vm7, %v1286_v34, %v1275_v61  ;;  %v4163_v34 = vsel %vm1715_vm10, 0.0, %v1718_v50 }
 0x2a6   :  { %v1288_v31 = vsel %vm101_vm8, %v1287_v30, %v1279_v35  ;;  %v641_v35 = vsel %vm93_vm4, %v640_v44, %v3451_v24  ;;  %v1756_v24 = vsel %vm1715_vm10, 0.0, %v1754_v63  ;;  %v1407_v39 = vsel %vm87_vm1, %v3721_v38, %v1380_v8  ;;  %v4147_v38 = vpop.f32.mrf.mxu0 }
 0x2a7   :  { %v1567_v15 = vsel %vm1529_vm0, %v1288_v31, %v1554_v3  ;;  %v4151_v49 = vsel %vm1715_vm10, 0.0, %v1758_v20 }
 0x2a8   :  { %2545 = vmatmul.msk.f32.gmra.mxu3 %vm1579_vm9, %v1567_v15 }
 0x2aa   :  { %1458 = vrot.lane.b32.xlu0 %v2529_v48, %s2660_s12  ;;  %1764 = vrot.lane.b32.xlu2 %v1739_v11, %s2658_s25  ;;  %v642_v48 = vsel %vm95_vm5, %v641_v35, %v3447_v45 }
 0x2ab   :  { %1761 = vrot.lane.b32.xlu1 %v4087_v9, %s2659_s26  ;;  %v643_v37 = vsel %vm97_vm6, %v642_v48, %v3392_v47 }
 0x2ac   :  { %v989_v27 = vpop.permute.xlu0 %988  ;;  %v4119_v0 = vpop.permute.xlu2 %1344  ;;  %v644_v45 = vsel %vm99_vm7, %v643_v37, %v3464_v51 }
 0x2ad   :  { %v1034_v40 = vpop.permute.xlu1 %1033  ;;  %v645_v60 = vsel %vm101_vm8, %v644_v45, %v3460_v6 }
 0x2ae   :  { %v1663_v8 = vpop.f32.mrf.mxu0  ;;  %v1051_v3 = vsel %vm95_vm5, %v1050_v16, %v1034_v40 }
 0x2af   :  { %v1664_v2 = vadd.f32 %v4064_v53, %v1663_v8 }
 0x2b1   :  { %v4180_v29 = vmax.f32 %v1664_v2, 0.0 }
 0x2b2   :  { %1768 = vrot.lane.b32.xlu0 %v1756_v24, %s2657_s24  ;;  %1722 = vrot.lane.b32.xlu2 %v1716_v13, %s2657_s24 }
 0x2b3   :  { %1771 = vrot.lane.b32.xlu1 %v1698_v10, %s2660_s12  ;;  %v1829_v12 = vrot.slane %v4180_v29, 4 }
 0x2b4   :  { %v1383_v21 = vpop.permute.xlu0 %1382  ;;  %v1045_v42 = vpop.permute.xlu2 %1044 }
 0x2b5   :  { %v672_v54 = vpop.permute.xlu1 %671  ;;  %v1408_v47 = vsel %vm89_vm2, %v1407_v39, %v1383_v21 }
 0x2b6   :  { %v681_v52 = vsel %vm101_vm8, %v680_v17, %v672_v54  ;;  %v4143_v51 = vsel %vm91_vm3, %v1408_v47, %v1386_v55  ;;  %v1012_v55 = vsel %vm89_vm2, %v1011_v57, %v4055_v14 }
 0x2b7   :  { %v1524_v5 = vrot.slane %v681_v52, 4  ;;  %v1013_v31 = vsel %vm91_vm3, %v1012_v55, %v989_v27 }
 0x2b8   :  { %v1014_v58 = vsel %vm93_vm4, %v1013_v31, %v4057_v25 }
 0x2b9   :  { %v1536_v62 = vsel %vm1529_vm0, %v645_v60, %v1524_v5 }
 0x2ba   :  { %2538 = vmatmul.msk.f32.gmra.mxu0 %vm1579_vm9, %v1536_v62  ;;  %1775 = vrot.lane.b32.xlu0 %v1774_v22, %s2662_s0 }
 0x2bb   :  { %1725 = vrot.lane.b32.xlu1 %v1696_v46, %s2660_s12  ;;  %1779 = vrot.lane.b32.xlu2 %v4151_v49, %s2663_s13 }
 0x2bc   :  { %v1037_v32 = vpop.permute.xlu0 %1036  ;;  %v1005_v61 = vpop.permute.xlu2 %1004 }
 0x2bd   :  { %v1342_v6 = vpop.permute.xlu1 %1341  ;;  %v1052_v30 = vsel %vm97_vm6, %v1051_v3, %v1037_v32 }
 0x2be   :  { %v1371_v45 = vsel %vm87_vm1, %v3766_v33, %v1342_v6 }
 0x2c2   :  { %1729 = vrot.lane.b32.xlu0 %v1728_v59, %s2662_s0 }
 0x2c3   :  { %1782 = vrot.lane.b32.xlu1 %v4122_v23, %s2664_s19  ;;  %1733 = vrot.lane.b32.xlu2 %v4163_v34, %s2663_s13 }
 0x2c4   :  { %v997_v4 = vpop.permute.xlu0 %996  ;;  %v1009_v40 = vpop.permute.xlu2 %1008 }
 0x2c5   :  { %v1041_v41 = vpop.permute.xlu1 %1040  ;;  %v1015_v14 = vsel %vm95_vm5, %v1014_v58, %v997_v4 }
 0x2c6   :  { %v1053_v15 = vsel %vm99_vm7, %v1052_v30, %v1041_v41 }
 0x2c7   :  { %v1054_v19 = vsel %vm101_vm8, %v1053_v15, %v1045_v42 }
 0x2c8   :  { %v1545_v44 = vrot.slane %v1054_v19, 4 }
 0x2ca   :  { %1786 = vrot.lane.b32.xlu0 %v1785_v7, %s2665_s20 }
 0x2cb   :  { %1736 = vrot.lane.b32.xlu1 %v4087_v9, %s2664_s19  ;;  %1849 = vrot.lane.b32.xlu2 %v4180_v29, %s2659_s26 }
 0x2cc   :  { %v1390_v43 = vpop.permute.xlu0 %1389  ;;  %v1361_v1 = vpop.permute.xlu2 %1360 }
 0x2cd   :  { %v1001_v46 = vpop.permute.xlu1 %1000  ;;  %v1410_v9 = vsel %vm93_vm4, %v4143_v51, %v1390_v43  ;;  %v2076_v43 = vld [vmem:[%s4630_s3 + $0x38] sm:$0xff] }
 0x2ce   :  { %v1016_v10 = vsel %vm97_vm6, %v1015_v14, %v1001_v46  ;;  %v2077_v14 = vld [vmem:[%s4630_s3 + $0x40] sm:$0xff] }
 0x2cf   :  { %v1017_v35 = vsel %vm99_vm7, %v1016_v10, %v1005_v61  ;;  %2102 = vmatpush.msra.mxu1 %v2077_v14 }
 0x2d0   :  { %v1018_v27 = vsel %vm101_vm8, %v1017_v35, %v1009_v40 }
 0x2d1   :  { %v1564_v25 = vsel %vm1529_vm0, %v1018_v27, %v1545_v44  ;;  %2103 = vmatpush.msra.mxu1 %v2076_v43  ;;  %v2075_v27 = vld [vmem:[%s4630_s3 + $0x30] sm:$0xff] }
 0x2d2   :  { %2542 = vmatmul.msk.f32.gmra.mxu2 %vm1579_vm9, %v1564_v25  ;;  %1740 = vrot.lane.b32.xlu0 %v1739_v11, %s2665_s20  ;;  %v1372_v11 = vsel %vm89_vm2, %v1371_v45, %v4119_v0  ;;  %v2074_v25 = vld [vmem:[%s4630_s3 + $0x28] sm:$0xff]  ;;  %v2071_v45 = vld [vmem:[%s4630_s3 + $0x10] sm:$0xff] }
 0x2d3   :  { %1852 = vrot.lane.b32.xlu1 %v1829_v12, %s2658_s25  ;;  %1805 = vrot.lane.b32.xlu2 %v4122_v23, %s2659_s26 }
 0x2d4   :  { %v1349_v56 = vpop.permute.xlu0 %1348  ;;  %v1470_v37 = vpop.permute.xlu2 %1469  ;;  %2104 = vmatpush.msra.mxu1 %v2075_v27 }
 0x2d5   :  { %v1394_v63 = vpop.permute.xlu1 %1393  ;;  %v1373_v39 = vsel %vm91_vm3, %v1372_v11, %v1349_v56  ;;  %v1497_v2 = vsel %vm87_vm1, %v3915_v26, %v1470_v37  ;;  %v2072_v37 = vld [vmem:[%s4630_s3 + $0x18] sm:$0xff] }
 0x2d6   :  { %v1411_v23 = vsel %vm95_vm5, %v1410_v9, %v1394_v63  ;;  %2105 = vmatpush.msra.mxu1 %v2074_v25 }
 0x2db   :  { %1808 = vrot.lane.b32.xlu1 %v1785_v7, %s2658_s25 }
 0x2dc   :  { %v1353_v18 = vpop.permute.xlu0 %1352  ;;  %v1432_v20 = vpop.permute.xlu2 %1431 }
 0x2dd   :  { %v1397_v48 = vpop.permute.xlu1 %1396  ;;  %v1374_v21 = vsel %vm93_vm4, %v1373_v39, %v1353_v18  ;;  %v1461_v57 = vsel %vm87_vm1, %v3935_v36, %v1432_v20  ;;  %vm2192_vm1 = vcmask 785408  }
 0x2de   :  { %v1412_v52 = vsel %vm97_vm6, %v1411_v23, %v1397_v48  ;;  %v2069_v23 = vld [vmem:[%s4630_s3] sm:$0xff] }
 0x2e4   :  { %v1357_v13 = vpop.permute.xlu0 %1356  ;;  %v1480_v50 = vpop.permute.xlu2 %1479 }
 0x2e5   :  { %v1401_v24 = vpop.permute.xlu1 %1400  ;;  %v1375_v33 = vsel %vm95_vm5, %v1374_v21, %v1357_v13  ;;  %v2073_v13 = vld [vmem:[%s4630_s3 + $0x20] sm:$0xff] }
 0x2e6   :  { %v1413_v5 = vsel %vm99_vm7, %v1412_v52, %v1401_v24  ;;  %v1376_v60 = vsel %vm97_vm6, %v1375_v33, %v1361_v1  ;;  %2106 = vmatpush.msra.mxu1 %v2073_v13 }
 0x2e8   :  { %2107 = vmatpush.msra.mxu1 %v2072_v37 }
 0x2ea   :  { %2108 = vmatpush.msra.mxu1 %v2071_v45  ;;  %v1681_v45 = vpop.f32.mrf.mxu3 }
 0x2ec   :  { %v1405_v17 = vpop.permute.xlu0 %1404  ;;  %v1443_v61 = vpop.permute.xlu2 %1442 }
 0x2ed   :  { %v1365_v54 = vpop.permute.xlu1 %1364  ;;  %v1414_v47 = vsel %vm101_vm8, %v1413_v5, %v1405_v17 }
 0x2ee   :  { %v1377_v0 = vsel %vm99_vm7, %v1376_v60, %v1365_v54  ;;  %v1557_v62 = vrot.slane %v1414_v47, 4  ;;  %v2070_v54 = vld [vmem:[%s4630_s3 + $0x8] sm:$0xff]  ;;  %v1661_v60 = vadd.f32 %v4064_v53, %v4147_v38 }
 0x2ef   :  { %2109 = vmatpush.msra.mxu1 %v2070_v54 }
 0x2f1   :  { %2110 = vmatpush.msra.mxu1 %v2069_v23 }
 0x2f4   :  { %v1369_v22 = vpop.permute.xlu0 %1368  ;;  %v1491_v3 = vpop.permute.xlu2 %1490 }
 0x2f5   :  { %v1473_v51 = vpop.permute.xlu1 %1472  ;;  %v1378_v42 = vsel %vm101_vm8, %v1377_v0, %v1369_v22 }
 0x2f6   :  { %v1568_v6 = vsel %vm1529_vm0, %v1378_v42, %v1557_v62  ;;  %v1498_v4 = vsel %vm89_vm2, %v1497_v2, %v1473_v51 }
 0x2f7   :  { %2546 = vmatmul.msk.f32.gmra.mxu3 %vm1579_vm9, %v1568_v6 }
 0x2fc   :  { %v1476_v59 = vpop.permute.xlu0 %1475  ;;  %v1455_v35 = vpop.permute.xlu2 %1454 }
 0x2fd   :  { %v1435_v32 = vpop.permute.xlu1 %1434  ;;  %v1499_v55 = vsel %vm91_vm3, %v1498_v4, %v1476_v59 }
 0x2fe   :  { %v1462_v30 = vsel %vm89_vm2, %v1461_v57, %v1435_v32  ;;  %v1500_v31 = vsel %vm93_vm4, %v1499_v55, %v1480_v50  ;;  %v1669_v50 = vpop.f32.mrf.mxu2 }
 0x2ff   :  { %v1670_v4 = vadd.f32 %v4064_v53, %v1669_v50 }
 0x304   :  { %v1439_v28 = vpop.permute.xlu0 %1438  ;;  %v1765_v9 = vpop.permute.xlu2 %1764 }
 0x305   :  { %v1484_v8 = vpop.permute.xlu1 %1483  ;;  %v1463_v19 = vsel %vm91_vm3, %v1462_v30, %v1439_v28 }
 0x306   :  { %v1501_v7 = vsel %vm95_vm5, %v1500_v31, %v1484_v8  ;;  %v1464_v36 = vsel %vm93_vm4, %v1463_v19, %v1443_v61 }
 0x30c   :  { %v1487_v16 = vpop.permute.xlu0 %1486  ;;  %v1723_v21 = vpop.permute.xlu2 %1722 }
 0x30d   :  { %v1447_v41 = vpop.permute.xlu1 %1446  ;;  %v1502_v26 = vsel %vm97_vm6, %v1501_v7, %v1487_v16  ;;  %v1743_v61 = vsel %vm97_vm6, 0.0, %v1723_v21  ;;  %v1672_v7 = vpop.f32.mrf.mxu2 }
 0x30e   :  { %v1465_v46 = vsel %vm95_vm5, %v1464_v36, %v1447_v41  ;;  %v1503_v10 = vsel %vm99_vm7, %v1502_v26, %v1491_v3  ;;  %v1703_v26 = vmax.f32 %v1670_v4, 0.0 }
 0x314   :  { %v1451_v58 = vpop.permute.xlu0 %1450 }
 0x315   :  { %v1495_v15 = vpop.permute.xlu1 %1494  ;;  %v1466_v40 = vsel %vm97_vm6, %v1465_v46, %v1451_v58  ;;  %v1780_v62 = vpop.permute.xlu2 %1779 }
 0x316   :  { %v1504_v44 = vsel %vm101_vm8, %v1503_v10, %v1495_v15  ;;  %v1467_v48 = vsel %vm99_vm7, %v1466_v40, %v1455_v35  ;;  %v1873_v40 = vrot.slane %v1703_v26, 4  ;;  %v1675_v35 = vpop.f32.mrf.mxu2 }
 0x317   :  { %v1560_v56 = vrot.slane %v1504_v44, 4  ;;  %v1846_v44 = vrot.slane %v1703_v26, 3  ;;  %v1676_v25 = vadd.f32 %v4064_v53, %v1675_v35 }
 0x319   :  { %v1848_v27 = vsel %vm1715_vm10, 0.0, %v1846_v44 }
 0x31c   :  { %v1459_v18 = vpop.permute.xlu0 %1458 }
 0x31d   :  { %v1762_v63 = vpop.permute.xlu1 %1761  ;;  %v1468_v1 = vsel %vm101_vm8, %v1467_v48, %v1459_v18  ;;  %v1734_v15 = vpop.permute.xlu2 %1733  ;;  %v1705_v48 = vmax.f32 %v1676_v25, 0.0 }
 0x31e   :  { %v1569_v24 = vsel %vm1529_vm0, %v1468_v1, %v1560_v56  ;;  %v1789_v5 = vsel %vm89_vm2, %v4163_v34, %v1762_v63  ;;  %v1700_v34 = vmax.f32 %v1661_v60, 0.0  ;;  %v1802_v63 = vrot.slane %v4180_v29, 3 }
 0x31f   :  { %2547 = vmatmul.msk.f32.gmra.mxu3 %vm1579_vm9, %v1569_v24  ;;  %v1790_v51 = vsel %vm93_vm4, %v1789_v5, %v1765_v9  ;;  %v1673_v1 = vadd.f32 %v4064_v53, %v1672_v7  ;;  %v1911_v13 = vrot.slane %v1705_v48, 4 }
 0x320   :  { %v1798_v16 = vrot.slane %v1700_v34, 3  ;;  %v1818_v31 = vrot.slane %v1700_v34, 4  ;;  %v4310_v18 = vsel %vm1715_vm10, 0.0, %v1802_v63 }
 0x321   :  { %v1704_v37 = vmax.f32 %v1673_v1, 0.0 }
 0x322   :  { %v1800_v58 = vsel %vm1715_vm10, 0.0, %v1798_v16 }
 0x324   :  { %v1769_v11 = vpop.permute.xlu0 %1768 }
 0x325   :  { %v1772_v17 = vpop.permute.xlu1 %1771  ;;  %v1791_v22 = vsel %vm97_vm6, %v1790_v51, %v1769_v11  ;;  %v1900_v51 = vrot.slane %v1704_v37, 4 }
 0x326   :  { %v1792_v59 = vsel %vm101_vm8, %v1791_v22, %v1772_v17  ;;  %v1682_v17 = vadd.f32 %v4064_v53, %v1681_v45 }
 0x328   :  { %v1707_v9 = vmax.f32 %v1682_v17, 0.0 }
 0x32a   :  { %v1953_v22 = vrot.slane %v1707_v9, 4 }
 0x32c   :  { %v1776_v39 = vpop.permute.xlu0 %1775 }
 0x32d   :  { %v1726_v52 = vpop.permute.xlu1 %1725  ;;  %v1793_v8 = vsel %vm1745_vm11, %v1792_v59, %v1776_v39  ;;  %v1926_v39 = vrot.slane %v1707_v9, 3 }
 0x32e   :  { %v1744_v41 = vsel %vm101_vm8, %v1743_v61, %v1726_v52  ;;  %v1794_v2 = vsel %vm1747_vm12, %v1793_v8, %v1780_v62  ;;  %v1684_v52 = vpop.f32.mrf.mxu3 }
 0x32f   :  { %v4329_v21 = vsel %vm1715_vm10, 0.0, %v1926_v39 }
 0x334   :  { %v1730_v33 = vpop.permute.xlu0 %1729 }
 0x335   :  { %v1783_v0 = vpop.permute.xlu1 %1782  ;;  %v1746_v3 = vsel %vm1745_vm11, %v1744_v41, %v1730_v33  ;;  %v1890_v33 = vrot.slane %v1705_v48, 3 }
 0x336   :  { %v1795_v57 = vsel %vm1749_vm13, %v1794_v2, %v1783_v0  ;;  %v1748_v19 = vsel %vm1747_vm12, %v1746_v3, %v1734_v15  ;;  %v1850_v2 = vpop.permute.xlu2 %1849 }
 0x337   :  { %v1666_v47 = vpop.f32.mrf.mxu0 }
 0x338   :  { %v1667_v20 = vadd.f32 %v4064_v53, %v1666_v47  ;;  %v1687_v47 = vpop.f32.mrf.mxu3 }
 0x339   :  { %v1688_v60 = vadd.f32 %v4064_v53, %v1687_v47 }
 0x33a   :  { %v1702_v42 = vmax.f32 %v1667_v20, 0.0  ;;  %v4336_v20 = vsel %vm1715_vm10, 0.0, %v1890_v33 }
 0x33b   :  { %v1709_v0 = vmax.f32 %v1688_v60, 0.0 }
 0x33c   :  { %v1862_v6 = vrot.slane %v1702_v42, 4  ;;  %1859 = vrot.lane.b32.xlu2 %v1702_v42, %s2660_s12  ;;  %v1842_v32 = vrot.slane %v1702_v42, 3  ;;  %v1787_v38 = vpop.permute.xlu0 %1786 }
 0x33d   :  { %v1737_v55 = vpop.permute.xlu1 %1736  ;;  %v1796_v30 = vsel %vm1751_vm14, %v1795_v57, %v1787_v38  ;;  %v1997_v62 = vrot.slane %v1709_v0, 4 }
 0x33e   :  { %1863 = vrot.lane.b32.xlu1 %v1862_v6, %s2662_s0  ;;  %v1844_v28 = vsel %vm1715_vm10, 0.0, %v1842_v32  ;;  %v1750_v14 = vsel %vm1749_vm13, %v1748_v19, %v1737_v55  ;;  %v2054_v36 = vrot.slane %v1796_v30, 4  ;;  %v1806_v4 = vpop.permute.xlu2 %1805 }
 0x33f   :  { %1856 = vrot.lane.b32.xlu0 %v1844_v28, %s2657_s24  ;;  %v1833_v25 = vsel %vm89_vm2, %v4151_v49, %v1806_v4 }
 0x344   :  { %1815 = vrot.lane.b32.xlu2 %v1700_v34, %s2660_s12  ;;  %v1741_v46 = vpop.permute.xlu0 %1740  ;;  %v1685_v34 = vadd.f32 %v4064_v53, %v1684_v52 }
 0x345   :  { %v1752_v10 = vsel %vm1751_vm14, %v1750_v14, %v1741_v46  ;;  %v1853_v16 = vpop.permute.xlu1 %1852 }
 0x346   :  { %1819 = vrot.lane.b32.xlu1 %v1818_v31, %s2662_s0  ;;  %v2065_v43 = vsel %vm1529_vm0, %v1752_v10, %v2054_v36  ;;  %v1708_v8 = vmax.f32 %v1685_v34, 0.0  ;;  %v1877_v10 = vsel %vm89_vm2, %v4310_v18, %v1850_v2 }
 0x347   :  { %1812 = vrot.lane.b32.xlu0 %v1800_v58, %s2657_s24  ;;  %2548 = vmatmul.msk.f32.vlgmr.msra.gmra.mxu1 %vm2082_vm15, %v2065_v43  ;;  %v1970_v58 = vrot.slane %v1709_v0, 3  ;;  %v1878_v44 = vsel %vm93_vm4, %v1877_v10, %v1853_v16 }
 0x348   :  { %v1966_v28 = vrot.slane %v1708_v8, 3  ;;  %v1986_v61 = vrot.slane %v1708_v8, 4 }
 0x34a   :  { %v1968_v41 = vsel %vm1715_vm10, 0.0, %v1966_v28 }
 0x34c   :  { %1870 = vrot.lane.b32.xlu2 %v1703_v26, %s2664_s19 }
 0x34d   :  { %v1809_v30 = vpop.permute.xlu1 %1808 }
 0x34e   :  { %1874 = vrot.lane.b32.xlu1 %v1873_v40, %s2665_s20  ;;  %v1834_v1 = vsel %vm93_vm4, %v1833_v25, %v1809_v30 }
 0x34f   :  { %1867 = vrot.lane.b32.xlu0 %v1848_v27, %s2663_s13 }
 0x354   :  { %1826 = vrot.lane.b32.xlu2 %v4180_v29, %s2664_s19  ;;  %v1886_v29 = vrot.slane %v1704_v37, 3 }
 0x355   :  { %v1678_v56 = vpop.f32.mrf.mxu2 }
 0x356   :  { %1830 = vrot.lane.b32.xlu1 %v1829_v12, %s2665_s20  ;;  %v1679_v24 = vadd.f32 %v4064_v53, %v1678_v56  ;;  %v1888_v11 = vsel %vm1715_vm10, 0.0, %v1886_v29 }
 0x357   :  { %1823 = vrot.lane.b32.xlu0 %v4310_v18, %s2663_s13 }
 0x358   :  { %v1706_v54 = vmax.f32 %v1679_v24, 0.0 }
 0x35a   :  { %v1922_v12 = vrot.slane %v1706_v54, 3  ;;  %v1942_v5 = vrot.slane %v1706_v54, 4 }
 0x35c   :  { %1932 = vrot.lane.b32.xlu2 %v1911_v13, %s2658_s25  ;;  %v1924_v23 = vsel %vm1715_vm10, 0.0, %v1922_v12 }
 0x35e   :  { %1939 = vrot.lane.b32.xlu1 %v1706_v54, %s2660_s12 }
 0x35f   :  { %1929 = vrot.lane.b32.xlu0 %v1705_v48, %s2659_s26 }
 0x364   :  { %1894 = vrot.lane.b32.xlu2 %v1888_v11, %s2657_s24 }
 0x366   :  { %1897 = vrot.lane.b32.xlu1 %v1704_v37, %s2660_s12 }
 0x367   :  { %1936 = vrot.lane.b32.xlu0 %v1924_v23, %s2657_s24 }
 0x36c   :  { %1947 = vrot.lane.b32.xlu2 %v4329_v21, %s2663_s13 }
 0x36e   :  { %1950 = vrot.lane.b32.xlu1 %v1707_v9, %s2664_s19 }
 0x36f   :  { %1943 = vrot.lane.b32.xlu0 %v1942_v5, %s2662_s0 }
 0x374   :  { %1905 = vrot.lane.b32.xlu2 %v4336_v20, %s2663_s13 }
 0x376   :  { %1908 = vrot.lane.b32.xlu1 %v1705_v48, %s2664_s19 }
 0x377   :  { %1901 = vrot.lane.b32.xlu0 %v1900_v51, %s2662_s0 }
 0x37a   :  { %v1690_v42 = vpop.f32.mrf.mxu3 }
 0x37b   :  { %v1691_v6 = vadd.f32 %v4064_v53, %v1690_v42 }
 0x37c   :  { %2017 = vrot.lane.b32.xlu2 %v1709_v0, %s2659_s26 }
 0x37d   :  { %v1710_v32 = vmax.f32 %v1691_v6, 0.0 }
 0x37e   :  { %2020 = vrot.lane.b32.xlu1 %v1997_v62, %s2658_s25 }
 0x37f   :  { %1954 = vrot.lane.b32.xlu0 %v1953_v22, %s2665_s20  ;;  %v2010_v50 = vrot.slane %v1710_v32, 3  ;;  %v2030_v59 = vrot.slane %v1710_v32, 4 }
 0x381   :  { %v2012_v38 = vsel %vm1715_vm10, 0.0, %v2010_v50 }
 0x384   :  { %1973 = vrot.lane.b32.xlu2 %v1707_v9, %s2659_s26  ;;  %s2667_s26 = smov 96  }
 0x386   :  { %1976 = vrot.lane.b32.xlu1 %v1953_v22, %s2658_s25 }
 0x387   :  { %1912 = vrot.lane.b32.xlu0 %v1911_v13, %s2665_s20 }
 0x38c   :  { %2027 = vrot.lane.b32.xlu2 %v1710_v32, %s2660_s12 }
 0x38e   :  { %2031 = vrot.lane.b32.xlu1 %v2030_v59, %s2662_s0 }
 0x38f   :  { %2024 = vrot.lane.b32.xlu0 %v2012_v38, %s2657_s24 }
 0x394   :  { %1983 = vrot.lane.b32.xlu2 %v1708_v8, %s2660_s12 }
 0x396   :  { %1987 = vrot.lane.b32.xlu1 %v1986_v61, %s2662_s0  ;;  %v1860_v19 = vpop.permute.xlu2 %1859 }
 0x397   :  { %1980 = vrot.lane.b32.xlu0 %v1968_v41, %s2657_s24 }
 0x39e   :  { %v1816_v36 = vpop.permute.xlu2 %1815 }
 0x3a2   :  { %v1693_v57 = vpop.f32.mrf.mxu3 }
 0x3a3   :  { %v1694_v3 = vadd.f32 %v4064_v53, %v1693_v57  ;;  %v4366_v53 = vsel %vm1715_vm10, 0.0, %v1970_v58 }
 0x3a5   :  { %v1711_v55 = vmax.f32 %v1694_v3, 0.0 }
 0x3a6   :  { %v1871_v27 = vpop.permute.xlu2 %1870 }
 0x3a7   :  { %v2041_v31 = vrot.slane %v1711_v55, 4  ;;  %2038 = vrot.lane.b32.xlu2 %v1711_v55, %s2664_s19  ;;  %v2014_v15 = vrot.slane %v1711_v55, 3 }
 0x3a9   :  { %2042 = vrot.lane.b32.xlu1 %v2041_v31, %s2665_s20  ;;  %v2016_v7 = vsel %vm1715_vm10, 0.0, %v2014_v15 }
 0x3aa   :  { %2035 = vrot.lane.b32.xlu0 %v2016_v7, %s2663_s13 }
 0x3ae   :  { %v1827_v49 = vpop.permute.xlu2 %1826 }
 0x3af   :  { %1994 = vrot.lane.b32.xlu2 %v1709_v0, %s2664_s19 }
 0x3b0   :  { %v1864_v26 = vpop.permute.xlu1 %1863 }
 0x3b1   :  { %v1857_v14 = vpop.permute.xlu0 %1856 }
 0x3b2   :  { %1991 = vrot.lane.b32.xlu0 %v4366_v53, %s2663_s13  ;;  %v1879_v40 = vsel %vm97_vm6, %v1878_v44, %v1857_v14 }
 0x3b3   :  { %v1880_v35 = vsel %vm101_vm8, %v1879_v40, %v1860_v19 }
 0x3b4   :  { %v1881_v48 = vsel %vm1745_vm11, %v1880_v35, %v1864_v26 }
 0x3b6   :  { %v1933_v5 = vpop.permute.xlu2 %1932 }
 0x3b8   :  { %v1820_v46 = vpop.permute.xlu1 %1819 }
 0x3b9   :  { %v1813_v43 = vpop.permute.xlu0 %1812 }
 0x3ba   :  { %1998 = vrot.lane.b32.xlu0 %v1997_v62, %s2665_s20  ;;  %v1835_v24 = vsel %vm97_vm6, %v1834_v1, %v1813_v43 }
 0x3bb   :  { %v1836_v37 = vsel %vm101_vm8, %v1835_v24, %v1816_v36 }
 0x3bc   :  { %v1837_v17 = vsel %vm1745_vm11, %v1836_v37, %v1820_v46 }
 0x3be   :  { %v1895_v60 = vpop.permute.xlu2 %1894 }
 0x3bf   :  { %v1915_v8 = vsel %vm97_vm6, 0.0, %v1895_v60 }
 0x3c0   :  { %v1875_v63 = vpop.permute.xlu1 %1874 }
 0x3c1   :  { %v1868_v56 = vpop.permute.xlu0 %1867 }
 0x3c2   :  { %v1882_v18 = vsel %vm1747_vm12, %v1881_v48, %v1868_v56 }
 0x3c3   :  { %v1883_v13 = vsel %vm1749_vm13, %v1882_v18, %v1871_v27 }
 0x3c4   :  { %v1884_v45 = vsel %vm1751_vm14, %v1883_v13, %v1875_v63 }
 0x3c5   :  { %v2057_v11 = vrot.slane %v1884_v45, 4 }
 0x3c6   :  { %v1948_v22 = vpop.permute.xlu2 %1947 }
 0x3c8   :  { %v1831_v12 = vpop.permute.xlu1 %1830 }
 0x3c9   :  { %v1824_v54 = vpop.permute.xlu0 %1823 }
 0x3ca   :  { %v1838_v29 = vsel %vm1747_vm12, %v1837_v17, %v1824_v54 }
 0x3cb   :  { %v1839_v9 = vsel %vm1749_vm13, %v1838_v29, %v1827_v49 }
 0x3cc   :  { %v1840_v23 = vsel %vm1751_vm14, %v1839_v9, %v1831_v12 }
 0x3cd   :  { %v2066_v39 = vsel %vm1529_vm0, %v1840_v23, %v2057_v11 }
 0x3ce   :  { %2549 = vmatmul.msk.f32.gmra.mxu1 %vm2082_vm15, %v2066_v39  ;;  %v1906_v41 = vpop.permute.xlu2 %1905 }
 0x3d0   :  { %v1940_v47 = vpop.permute.xlu1 %1939 }
 0x3d1   :  { %v1930_v52 = vpop.permute.xlu0 %1929 }
 0x3d2   :  { %v1957_v62 = vsel %vm89_vm2, %v4336_v20, %v1930_v52  ;;  %v2112_v52 = vpop.f32.mrf.mxu1 }
 0x3d3   :  { %v1958_v6 = vsel %vm93_vm4, %v1957_v62, %v1933_v5  ;;  %v2649_v5 = vld [vmem:[%s4631_s4] ss:$0 sm:$0xff]  ;;  %s2666_s4 = smov 112  }
 0x3d6   :  { %v2018_v7 = vpop.permute.xlu2 %2017 }
 0x3d7   :  { %v2045_v44 = vsel %vm89_vm2, %v4366_v53, %v2018_v7 }
 0x3d8   :  { %v1898_v0 = vpop.permute.xlu1 %1897 }
 0x3d9   :  { %v1937_v33 = vpop.permute.xlu0 %1936  ;;  %v1916_v28 = vsel %vm101_vm8, %v1915_v8, %v1898_v0 }
 0x3da   :  { %v1959_v32 = vsel %vm97_vm6, %v1958_v6, %v1937_v33 }
 0x3db   :  { %v1960_v50 = vsel %vm101_vm8, %v1959_v32, %v1940_v47  ;;  %v2113_v47 = vadd.f32 %v2649_v5, %v2112_v52  ;;  %v2292_v52 = vld [vmem:[%s4633_s5 + $0x48] sm:$0xff] }
 0x3dd   :  { %v4431_v60 = vmax.f32 %v2113_v47, 0.0  ;;  %v2290_v47 = vld [vmem:[%s4633_s5 + $0x38] sm:$0xff] }
 0x3de   :  { %v1974_v58 = vpop.permute.xlu2 %1973 }
 0x3df   :  { %v2001_v63 = vsel %vm89_vm2, %v4329_v21, %v1974_v58  ;;  %vm2194_vm2 = vcmask 916480  }
 0x3e0   :  { %v1951_v34 = vpop.permute.xlu1 %1950 }
 0x3e1   :  { %v1944_v51 = vpop.permute.xlu0 %1943 }
 0x3e2   :  { %v1961_v59 = vsel %vm1745_vm11, %v1960_v50, %v1944_v51 }
 0x3e3   :  { %v1962_v61 = vsel %vm1747_vm12, %v1961_v59, %v1948_v22  ;;  %v2137_v22 = vrot.slane %v4431_v60, 3 }
 0x3e4   :  { %v1963_v2 = vsel %vm1749_vm13, %v1962_v61, %v1951_v34  ;;  %v2129_v34 = vrot.slane %v4431_v60, 1  ;;  %v2141_v61 = vrot.slane %v4431_v60, 4 }
 0x3e6   :  { %v2028_v36 = vpop.permute.xlu2 %2027 }
 0x3e8   :  { %v1909_v57 = vpop.permute.xlu1 %1908 }
 0x3e9   :  { %v1902_v42 = vpop.permute.xlu0 %1901 }
 0x3ea   :  { %v1917_v20 = vsel %vm1745_vm11, %v1916_v28, %v1902_v42  ;;  %v2133_v42 = vrot.slane %v4431_v60, 2 }
 0x3eb   :  { %v1918_v16 = vsel %vm1747_vm12, %v1917_v20, %v1906_v41 }
 0x3ec   :  { %v1919_v30 = vsel %vm1749_vm13, %v1918_v16, %v1909_v57 }
 0x3ee   :  { %v1984_v43 = vpop.permute.xlu2 %1983 }
 0x3f0   :  { %v2021_v19 = vpop.permute.xlu1 %2020 }
 0x3f1   :  { %v1955_v38 = vpop.permute.xlu0 %1954  ;;  %v2046_v40 = vsel %vm93_vm4, %v2045_v44, %v2021_v19  ;;  %v2145_v44 = vrot.slane %v4431_v60, 5 }
 0x3f2   :  { %v1964_v4 = vsel %vm1751_vm14, %v1963_v2, %v1955_v38 }
 0x3f3   :  { %v2060_v3 = vrot.slane %v1964_v4, 4 }
 0x3f8   :  { %v1977_v14 = vpop.permute.xlu1 %1976 }
 0x3f9   :  { %v1913_v55 = vpop.permute.xlu0 %1912  ;;  %v2002_v48 = vsel %vm93_vm4, %v2001_v63, %v1977_v14 }
 0x3fa   :  { %v1920_v31 = vsel %vm1751_vm14, %v1919_v30, %v1913_v55 }
 0x3fb   :  { %v2067_v15 = vsel %vm1529_vm0, %v1920_v31, %v2060_v3 }
 0x3fc   :  { %2550 = vmatmul.msk.f32.gmra.mxu1 %vm2082_vm15, %v2067_v15 }
 0x400   :  { %v2032_v10 = vpop.permute.xlu1 %2031 }
 0x401   :  { %v2025_v26 = vpop.permute.xlu0 %2024  ;;  %v2039_v1 = vpop.permute.xlu2 %2038 }
 0x402   :  { %v2047_v35 = vsel %vm97_vm6, %v2046_v40, %v2025_v26 }
 0x403   :  { %v2048_v25 = vsel %vm101_vm8, %v2047_v35, %v2028_v36 }
 0x404   :  { %v2049_v24 = vsel %vm1745_vm11, %v2048_v25, %v2032_v10  ;;  %v2153_v10 = vrot.slane %v4431_v60, 7 }
 0x408   :  { %v1988_v56 = vpop.permute.xlu1 %1987 }
 0x409   :  { %v1981_v46 = vpop.permute.xlu0 %1980  ;;  %v1995_v29 = vpop.permute.xlu2 %1994 }
 0x40a   :  { %v2003_v18 = vsel %vm97_vm6, %v2002_v48, %v1981_v46 }
 0x40b   :  { %v2004_v37 = vsel %vm101_vm8, %v2003_v18, %v1984_v43  ;;  %v2149_v43 = vrot.slane %v4431_v60, 6 }
 0x40c   :  { %v2005_v17 = vsel %vm1745_vm11, %v2004_v37, %v1988_v56 }
 0x41b   :  { %v2043_v54 = vpop.permute.xlu1 %2042 }
 0x41c   :  { %v2036_v27 = vpop.permute.xlu0 %2035 }
 0x41d   :  { %v2050_v53 = vsel %vm1747_vm12, %v2049_v24, %v2036_v27 }
 0x41e   :  { %v2051_v45 = vsel %vm1749_vm13, %v2050_v53, %v2039_v1 }
 0x41f   :  { %v2052_v21 = vsel %vm1751_vm14, %v2051_v45, %v2043_v54 }
 0x420   :  { %v2063_v11 = vrot.slane %v2052_v21, 4  ;;  %v2297_v21 = vld [vmem:[%s4633_s5 + $0x70] sm:$0xff] }
 0x424   :  { %v1992_v13 = vpop.permute.xlu0 %1991 }
 0x425   :  { %v2006_v49 = vsel %vm1747_vm12, %v2005_v17, %v1992_v13  ;;  %v2298_v17 = vld [vmem:[%s4633_s5 + $0x78] sm:$0xff] }
 0x426   :  { %v2007_v9 = vsel %vm1749_vm13, %v2006_v49, %v1995_v29  ;;  %2319 = vmatpush.msrb.mxu2 %v2298_v17  ;;  %v2314_v49 = vld [vmem:[%s4633_s5 + $0xf8] sm:$0xff]  ;;  %v2296_v29 = vld [vmem:[%s4633_s5 + $0x68] sm:$0xff] }
 0x427   :  { %2339 = vmatpush.msrb.mxu3 %v2314_v49 }
 0x428   :  { %2320 = vmatpush.msrb.mxu2 %v2297_v21 }
 0x42a   :  { %2321 = vmatpush.msrb.mxu2 %v2296_v29 }
 0x42c   :  { %v1999_v12 = vpop.permute.xlu0 %1998 }
 0x42d   :  { %v2008_v23 = vsel %vm1751_vm14, %v2007_v9, %v1999_v12  ;;  %v2295_v12 = vld [vmem:[%s4633_s5 + $0x60] sm:$0xff]  ;;  %v2294_v9 = vld [vmem:[%s4633_s5 + $0x58] sm:$0xff] }
 0x42e   :  { %v2068_v39 = vsel %vm1529_vm0, %v2008_v23, %v2063_v11  ;;  %2322 = vmatpush.msrb.mxu2 %v2295_v12  ;;  %v2313_v11 = vld [vmem:[%s4633_s5 + $0xf0] sm:$0xff]  ;;  %vm2190_vm0 = vcmask 654336  }
 0x42f   :  { %2551 = vmatmul.msk.f32.gmra.mxu1 %vm2082_vm15, %v2068_v39  ;;  %v2293_v23 = vld [vmem:[%s4633_s5 + $0x50] sm:$0xff]  ;;  %2340 = vmatpush.msrb.mxu3 %v2313_v11  ;;  %v2312_v39 = vld [vmem:[%s4633_s5 + $0xe8] sm:$0xff] }
 0x430   :  { %2323 = vmatpush.msrb.mxu2 %v2294_v9 }
 0x431   :  { %2341 = vmatpush.msrb.mxu3 %v2312_v39 }
 0x432   :  { %2324 = vmatpush.msrb.mxu2 %v2293_v23 }
 0x434   :  { %2325 = vmatpush.msrb.mxu2 %v2292_v52 }
 0x44b   :  { %v2115_v33 = vpop.f32.mrf.mxu1 }
 0x44c   :  { %v2116_v20 = vadd.f32 %v2649_v5, %v2115_v33  ;;  %v2291_v33 = vld [vmem:[%s4633_s5 + $0x40] sm:$0xff] }
 0x44d   :  { %2326 = vmatpush.msrb.mxu2 %v2291_v33 }
 0x44e   :  { %v4447_v2 = vmax.f32 %v2116_v20, 0.0  ;;  %v2304_v20 = vld [vmem:[%s4633_s5 + $0xa8] sm:$0xff] }
 0x44f   :  { %2327 = vmatpush.msrb.mxu2 %v2290_v47 }
 0x450   :  { %v2166_v3 = vrot.slane %v4447_v2, 3  ;;  %v2162_v55 = vrot.slane %v4447_v2, 2  ;;  %v2158_v15 = vrot.slane %v4447_v2, 1  ;;  %v2182_v48 = vrot.slane %v4447_v2, 7 }
 0x451   :  { %v2174_v1 = vrot.slane %v4447_v2, 5  ;;  %v2170_v18 = vrot.slane %v4447_v2, 4  ;;  %v2178_v45 = vrot.slane %v4447_v2, 6 }
 0x479   :  { %v2118_v51 = vpop.f32.mrf.mxu1 }
 0x47a   :  { %v2119_v0 = vadd.f32 %v2649_v5, %v2118_v51  ;;  %v2310_v51 = vld [vmem:[%s4633_s5 + $0xd8] sm:$0xff] }
 0x47c   :  { %v4433_v62 = vmax.f32 %v2119_v0, 0.0  ;;  %v2289_v0 = vld [vmem:[%s4633_s5 + $0x30] sm:$0xff] }
 0x47d   :  { %2328 = vmatpush.msrb.mxu2 %v2289_v0 }
 0x47e   :  { %v2212_v6 = vrot.slane %v4433_v62, 3  ;;  %v2208_v32 = vrot.slane %v4433_v62, 2  ;;  %v2204_v50 = vrot.slane %v4433_v62, 1  ;;  %v2216_v28 = vrot.slane %v4433_v62, 4 }
 0x47f   :  { %v2228_v14 = vrot.slane %v4433_v62, 7  ;;  %v2224_v36 = vrot.slane %v4433_v62, 6  ;;  %v2220_v46 = vrot.slane %v4433_v62, 5 }
 0x480   :  { %v2588_v59 = vpack.i.bf16 %v2137_v22, %v2212_v6  ;;  %v2583_v8 = vpack.i.bf16 %v2133_v42, %v2208_v32  ;;  %v2578_v38 = vpack.i.bf16 %v2129_v34, %v2204_v50  ;;  %v2598_v41 = vpack.i.bf16 %v2141_v61, %v2216_v28  ;;  %v2309_v22 = vld [vmem:[%s4633_s5 + $0xd0] sm:$0xff]  ;;  %v2288_v42 = vld [vmem:[%s4633_s5 + $0x28] sm:$0xff]  ;;  %v2287_v32 = vld [vmem:[%s4633_s5 + $0x20] sm:$0xff] }
 0x481   :  { %v2628_v40 = vpack.i.bf16 %v2153_v10, %v2228_v14  ;;  %v2618_v35 = vpack.i.bf16 %v2149_v43, %v2224_v36  ;;  %v2608_v27 = vpack.i.bf16 %v2145_v44, %v2220_v46  ;;  %v2308_v6 = vld [vmem:[%s4633_s5 + $0xc8] sm:$0xff]  ;;  %2329 = vmatpush.msrb.mxu2 %v2288_v42  ;;  %v2286_v34 = vld [vmem:[%s4633_s5 + $0x18] sm:$0xff]  ;;  %v2305_v61 = vld [vmem:[%s4633_s5 + $0xb0] sm:$0xff] }
 0x482   :  { %2589 = vrot.lane.b32.xlu0 %v2588_v59, %s2663_s13  ;;  %2584 = vrot.lane.b32.xlu2 %v2583_v8, %s2660_s12  ;;  %v2307_v59 = vld [vmem:[%s4633_s5 + $0xc0] sm:$0xff]  ;;  %v2285_v8 = vld [vmem:[%s4633_s5 + $0x10] sm:$0xff] }
 0x483   :  { %2579 = vrot.lane.b32.xlu1 %v2578_v38, %s2658_s25  ;;  %2330 = vmatpush.msrb.mxu2 %v2287_v32  ;;  %v2306_v38 = vld [vmem:[%s4633_s5 + $0xb8] sm:$0xff]  ;;  %v2284_v28 = vld [vmem:[%s4633_s5 + $0x8] sm:$0xff] }
 0x485   :  { %2331 = vmatpush.msrb.mxu2 %v2286_v34 }
 0x487   :  { %2332 = vmatpush.msrb.mxu2 %v2285_v8 }
 0x489   :  { %2333 = vmatpush.msrb.mxu2 %v2284_v28 }
 0x48a   :  { %2599 = vrot.lane.b32.xlu2 %v2598_v41, %s2665_s20  ;;  %v2283_v41 = vld [vmem:[%s4633_s5] sm:$0xff] }
 0x48b   :  { %2334 = vmatpush.msrb.mxu2 %v2283_v41 }
 0x4ac   :  { %v2121_v16 = vpop.f32.mrf.mxu1 }
 0x4ad   :  { %v2122_v4 = vadd.f32 %v2649_v5, %v2121_v16  ;;  %v2311_v5 = vld [vmem:[%s4633_s5 + $0xe0] sm:$0xff] }
 0x4ae   :  { %2342 = vmatpush.msrb.mxu3 %v2311_v5  ;;  %v2303_v16 = vld [vmem:[%s4633_s5 + $0xa0] sm:$0xff] }
 0x4af   :  { %v4449_v57 = vmax.f32 %v2122_v4, 0.0  ;;  %v2302_v4 = vld [vmem:[%s4633_s5 + $0x98] sm:$0xff] }
 0x4b0   :  { %2343 = vmatpush.msrb.mxu3 %v2310_v51 }
 0x4b1   :  { %v2241_v30 = vrot.slane %v4449_v57, 3  ;;  %v2237_v31 = vrot.slane %v4449_v57, 2  ;;  %v2233_v7 = vrot.slane %v4449_v57, 1  ;;  %v2257_v25 = vrot.slane %v4449_v57, 7 }
 0x4b2   :  { %v2249_v63 = vrot.slane %v4449_v57, 5  ;;  %v2245_v56 = vrot.slane %v4449_v57, 4  ;;  %v2253_v37 = vrot.slane %v4449_v57, 6  ;;  %2344 = vmatpush.msrb.mxu3 %v2309_v22 }
 0x4b3   :  { %v2613_v19 = vpack.i.bf16 %v2166_v3, %v2241_v30  ;;  %v2603_v58 = vpack.i.bf16 %v2162_v55, %v2237_v31  ;;  %v2593_v26 = vpack.i.bf16 %v2158_v15, %v2233_v7  ;;  %v2643_v24 = vpack.i.bf16 %v2182_v48, %v2257_v25  ;;  %v2301_v31 = vld [vmem:[%s4633_s5 + $0x90] sm:$0xff]  ;;  %v2300_v15 = vld [vmem:[%s4633_s5 + $0x88] sm:$0xff] }
 0x4b4   :  { %v2633_v53 = vpack.i.bf16 %v2174_v1, %v2249_v63  ;;  %v2623_v13 = vpack.i.bf16 %v2170_v18, %v2245_v56  ;;  %v2638_v54 = vpack.i.bf16 %v2178_v45, %v2253_v37  ;;  %2345 = vmatpush.msrb.mxu3 %v2308_v6 }
 0x4b5   :  { %2614 = vrot.lane.b32.xlu2 %v2613_v19, %s2663_s13  ;;  %2604 = vrot.lane.b32.xlu0 %v2603_v58, %s2660_s12  ;;  %v2299_v58 = vld [vmem:[%s4633_s5 + $0x80] sm:$0xff] }
 0x4b6   :  { %2594 = vrot.lane.b32.xlu1 %v2593_v26, %s2658_s25  ;;  %s2668_s25 = smov 80   ;;  %2346 = vmatpush.msrb.mxu3 %v2307_v59 }
 0x4b8   :  { %2347 = vmatpush.msrb.mxu3 %v2306_v38 }
 0x4ba   :  { %2348 = vmatpush.msrb.mxu3 %v2305_v61 }
 0x4bc   :  { %2349 = vmatpush.msrb.mxu3 %v2304_v20 }
 0x4bd   :  { %2629 = vrot.lane.b32.xlu2 %v2628_v40, %s2666_s4  ;;  %2619 = vrot.lane.b32.xlu0 %v2618_v35, %s2667_s26 }
 0x4be   :  { %2609 = vrot.lane.b32.xlu1 %v2608_v27, %s2668_s25  ;;  %2350 = vmatpush.msrb.mxu3 %v2303_v16 }
 0x4c0   :  { %2351 = vmatpush.msrb.mxu3 %v2302_v4 }
 0x4c2   :  { %2352 = vmatpush.msrb.mxu3 %v2301_v31 }
 0x4c4   :  { %2353 = vmatpush.msrb.mxu3 %v2300_v15 }
 0x4c5   :  { %2644 = vrot.lane.b32.xlu2 %v2643_v24, %s2666_s4  ;;  %2634 = vrot.lane.b32.xlu0 %v2633_v53, %s2668_s25 }
 0x4c6   :  { %2624 = vrot.lane.b32.xlu1 %v2623_v13, %s2665_s20  ;;  %2354 = vmatpush.msrb.mxu3 %v2299_v58 }
 0x4ce   :  { %2639 = vrot.lane.b32.xlu1 %v2638_v54, %s2667_s26 }
 0x4dc   :  { %v2585_v50 = vpop.permute.xlu2 %2584 }
 0x4dd   :  { %v2587_v43 = vunpack.i.h.bf16 %v2585_v50  ;;  %v2586_v44 = vunpack.i.l.bf16 %v2585_v50 }
 0x4e4   :  { %v2600_v3 = vpop.permute.xlu2 %2599 }
 0x4e5   :  { %v2602_v63 = vunpack.i.h.bf16 %v2600_v3  ;;  %v2601_v18 = vunpack.i.l.bf16 %v2600_v3 }
 0x4f4   :  { %v2590_v55 = vpop.permute.xlu0 %2589 }
 0x4f5   :  { %v2580_v30 = vpop.permute.xlu1 %2579  ;;  %v2592_v27 = vunpack.i.h.bf16 %v2590_v55  ;;  %v2591_v25 = vunpack.i.l.bf16 %v2590_v55 }
 0x4f6   :  { %v2582_v7 = vunpack.i.h.bf16 %v2580_v30  ;;  %v2581_v19 = vunpack.i.l.bf16 %v2580_v30 }
 0x4f8   :  { %v2186_v46 = vsel %vm93_vm4, %v4431_v60, %v2582_v7  ;;  %v2261_v10 = vsel %vm93_vm4, %v4433_v62, %v2581_v19 }
 0x4f9   :  { %v2187_v40 = vsel %vm101_vm8, %v2186_v46, %v2587_v43  ;;  %v2262_v35 = vsel %vm101_vm8, %v2261_v10, %v2586_v44  ;;  %v2363_v10 = vld [vmem:[%s4635_s7 + $0x18] sm:$0xff]  ;;  %v2362_v43 = vld [vmem:[%s4635_s7 + $0x10] sm:$0xff]  ;;  %v2361_v44 = vld [vmem:[%s4635_s7 + $0x8] sm:$0xff] }
 0x4fa   :  { %v2188_v48 = vsel %vm1747_vm12, %v2187_v40, %v2592_v27  ;;  %v2263_v1 = vsel %vm1747_vm12, %v2262_v35, %v2591_v25  ;;  %2383 = vmatpush.msra.mxu2 %v2363_v10  ;;  %v2360_v40 = vld [vmem:[%s4635_s7] sm:$0xff] }
 0x4fb   :  { %v2189_v45 = vsel %vm1751_vm14, %v2188_v48, %v2602_v63  ;;  %v2264_v54 = vsel %vm1751_vm14, %v2263_v1, %v2601_v18  ;;  %v2650_v35 = vld [vmem:[%s4632_s6] ss:$0 sm:$0xff] }
 0x4fc   :  { %2384 = vmatpush.msra.mxu2 %v2362_v43  ;;  %v2651_v1 = vld [vmem:[%s4634_s8] ss:$0 sm:$0xff] }
 0x4fe   :  { %2385 = vmatpush.msra.mxu2 %v2361_v44 }
 0x500   :  { %2386 = vmatpush.msra.mxu2 %v2360_v40 }
 0x50f   :  { %v2615_v26 = vpop.permute.xlu2 %2614 }
 0x510   :  { %v2617_v8 = vunpack.i.h.bf16 %v2615_v26  ;;  %v2616_v38 = vunpack.i.l.bf16 %v2615_v26 }
 0x517   :  { %v2630_v24 = vpop.permute.xlu2 %2629 }
 0x518   :  { %v2631_v17 = vunpack.i.l.bf16 %v2630_v24  ;;  %v2632_v23 = vunpack.i.h.bf16 %v2630_v24 }
 0x527   :  { %v2605_v14 = vpop.permute.xlu0 %2604 }
 0x528   :  { %v2595_v36 = vpop.permute.xlu1 %2594  ;;  %v2607_v5 = vunpack.i.h.bf16 %v2605_v14  ;;  %v2606_v33 = vunpack.i.l.bf16 %v2605_v14 }
 0x529   :  { %v2597_v29 = vunpack.i.h.bf16 %v2595_v36  ;;  %v2596_v12 = vunpack.i.l.bf16 %v2595_v36 }
 0x52b   :  { %v2196_v51 = vsel %vm93_vm4, %v4447_v2, %v2597_v29  ;;  %v2268_v0 = vsel %vm93_vm4, %v4449_v57, %v2596_v12  ;;  %v2645_v57 = vpop.permute.xlu2 %2644 }
 0x52c   :  { %v2197_v6 = vsel %vm101_vm8, %v2196_v51, %v2607_v5  ;;  %v2269_v32 = vsel %vm101_vm8, %v2268_v0, %v2606_v33  ;;  %v2646_v30 = vunpack.i.l.bf16 %v2645_v57  ;;  %v2647_v58 = vunpack.i.h.bf16 %v2645_v57 }
 0x52d   :  { %v2198_v2 = vsel %vm1747_vm12, %v2197_v6, %v2617_v8  ;;  %v2270_v41 = vsel %vm1747_vm12, %v2269_v32, %v2616_v38 }
 0x52f   :  { %v2620_v56 = vpop.permute.xlu0 %2619 }
 0x530   :  { %v2622_v60 = vunpack.i.h.bf16 %v2620_v56  ;;  %v2621_v53 = vunpack.i.l.bf16 %v2620_v56  ;;  %v2610_v62 = vpop.permute.xlu1 %2609 }
 0x531   :  { %v2612_v13 = vunpack.i.h.bf16 %v2610_v62  ;;  %v2611_v37 = vunpack.i.l.bf16 %v2610_v62 }
 0x533   :  { %v2191_v21 = vsel %vm2190_vm0, %v2189_v45, %v2612_v13  ;;  %v2265_v49 = vsel %vm2190_vm0, %v2264_v54, %v2611_v37 }
 0x534   :  { %v2266_v9 = vsel %vm2192_vm1, %v2265_v49, %v2621_v53  ;;  %v2193_v11 = vsel %vm2192_vm1, %v2191_v21, %v2622_v60 }
 0x535   :  { %v2267_v39 = vsel %vm2194_vm2, %v2266_v9, %v2631_v17  ;;  %v2195_v47 = vsel %vm2194_vm2, %v2193_v11, %v2632_v23 }
 0x536   :  { %v2277_v52 = vrot.slane %v2267_v39, 7 }
 0x537   :  { %v2635_v34 = vpop.permute.xlu0 %2634 }
 0x538   :  { %v2625_v22 = vpop.permute.xlu1 %2624  ;;  %v2281_v42 = vsel %vm1715_vm10, %v2195_v47, %v2277_v52  ;;  %v2637_v28 = vunpack.i.h.bf16 %v2635_v34  ;;  %v2636_v61 = vunpack.i.l.bf16 %v2635_v34 }
 0x539   :  { %2335 = vmatmul.f32.vlgmr.msrb.gmra.mxu2 %v2281_v42  ;;  %v2627_v50 = vunpack.i.h.bf16 %v2625_v22  ;;  %v2626_v59 = vunpack.i.l.bf16 %v2625_v22 }
 0x53b   :  { %v2199_v20 = vsel %vm1751_vm14, %v2198_v2, %v2627_v50  ;;  %v2271_v16 = vsel %vm1751_vm14, %v2270_v41, %v2626_v59 }
 0x53c   :  { %v2200_v31 = vsel %vm2190_vm0, %v2199_v20, %v2637_v28  ;;  %v2272_v15 = vsel %vm2190_vm0, %v2271_v16, %v2636_v61 }
 0x540   :  { %v2640_v4 = vpop.permute.xlu1 %2639 }
 0x541   :  { %v2642_v3 = vunpack.i.h.bf16 %v2640_v4  ;;  %v2641_v55 = vunpack.i.l.bf16 %v2640_v4 }
 0x543   :  { %v2201_v7 = vsel %vm2192_vm1, %v2200_v31, %v2642_v3  ;;  %v2273_v19 = vsel %vm2192_vm1, %v2272_v15, %v2641_v55 }
 0x544   :  { %v2274_v26 = vsel %vm2194_vm2, %v2273_v19, %v2646_v30  ;;  %v2202_v36 = vsel %vm2194_vm2, %v2201_v7, %v2647_v58 }
 0x545   :  { %v2278_v14 = vrot.slane %v2274_v26, 7 }
 0x547   :  { %v2282_v46 = vsel %vm1715_vm10, %v2202_v36, %v2278_v14 }
 0x548   :  { %2355 = vmatmul.f32.vlgmr.msrb.gmra.mxu3 %v2282_v46 }
 0x5bc   :  { %v2336_v27 = vpop.f32.mrf.mxu2 }
 0x5bd   :  { %v2337_v25 = vadd.f32 %v2650_v35, %v2336_v27 }
 0x5cb   :  { %v2356_v63 = vpop.f32.mrf.mxu3 }
 0x5cc   :  { %v2357_v56 = vadd.f32 %v2356_v63, %v2337_v25 }
 0x5ce   :  { %v2359_v48 = vmax.f32 %v2357_v56, 0.0 }
 0x5d0   :  { %2552 = vmatmul.msk.f32.vlgmr.msra.gmra.mxu2 %vm101_vm8, %v2359_v48 }
 0x653   :  { %v2388_v18 = vpop.f32.mrf.mxu2 }
 0x654   :  { %v2389_v24 = vadd.f32 %v2651_v1, %v2388_v18 }
 0x656   :  { %2391 = vst [vmem:[%s4636_s9] sm:$0x3] %v2389_v24 }

</bundles_post_ra>
